<compile_context>
chip_gen: v7x
topology: tpu7x:2x2x1
jax: 0.10.0
libtpu: 0.0.40
codegen_flags: <defaults>
</compile_context>

<pallas_src>
import numpy as np
import jax
import jax.numpy as jnp
from jax.experimental import pallas as pl
from jax.experimental.pallas import tpu as pltpu


# ---------------------------------------------------------------------------
# host-side helpers: tiny separable resampling operators
# ---------------------------------------------------------------------------
def _bilinear_matrix(dst, src):
    """U (dst, src): U @ v is 1-D bilinear upsample, align_corners=False."""
    if dst == src:
        return np.eye(dst, dtype=np.float32)
    scale = src / dst
    d = np.arange(dst)
    sc = np.clip((d + 0.5) * scale - 0.5, 0.0, src - 1)
    lo = np.floor(sc).astype(np.int64)
    hi = np.minimum(lo + 1, src - 1)
    frac = (sc - lo).astype(np.float32)
    m = np.zeros((dst, src), np.float32)
    m[d, lo] += 1.0 - frac
    m[d, hi] += frac
    return m


def _avg_pool_w_matrix(W, p):
    """(W, W//p) right-multiply matrix: column means over windows of size p."""
    pw = W // p
    m = np.zeros((W, pw), np.float32)
    for r in range(pw):
        m[r * p:(r + 1) * p, r] = 1.0 / p
    return m


def _mish(v):
    # x * tanh(softplus(x)) with a numerically-stable softplus
    sp = jnp.maximum(v, 0.0) + jnp.log1p(jnp.exp(-jnp.abs(v)))
    return v * jnp.tanh(sp)


# ---------------------------------------------------------------------------
# fused Pallas kernel: conv(+BN) + all pyramid paths + concat, per batch elem
# ---------------------------------------------------------------------------
def _make_kernel(C, Co, H, W, path_info, compute_dtype):
    n_paths = len(path_info)
    n_pooled = sum(1 for p, _, _ in path_info if p > 1)

    def kernel(*refs):
        x_ref = refs[0]                       # (1, C, H, W)
        w_ref = refs[1]                       # (n*Co, C)      BN-scaled conv weights
        b_ref = refs[2]                       # (n, Co, 1, 1)  BN-folded biases
        mat_refs = refs[3:3 + 3 * n_pooled]   # per pooled path: awT, uwT, uh_b
        o_ref = refs[3 + 3 * n_pooled]        # (1, C + n*Co, H, W)
        y_scr = refs[3 + 3 * n_pooled + 1]    # VMEM scratch (n, Co, H, W) f32

        # ---- passthrough slab (the torch.cat copy of x), written in-kernel ----
        o_ref[0, :C] = x_ref[0].astype(o_ref.dtype)

        # ---- 1x1 conv (BN scale folded in) for ALL paths at full resolution ----
        # avg_pool is linear, so conv-then-pool == pool-then-conv.
        wmat = w_ref[...].astype(compute_dtype)                       # (n*Co, C)
        for h in range(H):
            xs = x_ref[0, :, h, :].astype(compute_dtype)              # (C, W)
            yh = jnp.dot(wmat, xs, preferred_element_type=jnp.float32)  # (n*Co, W)
            y_scr[:, :, h, :] = yh.reshape(n_paths, Co, W)

        mi = 0
        for i, (p, ph, pw) in enumerate(path_info):
            y = y_scr[i]                                              # (Co, H, W)
            bi = b_ref[i]                                             # (Co, 1, 1)

            if p == 1:
                # identity pool & identity upsample: just bias + Mish
                z = _mish(y + bi)
                o_ref[0, C + i * Co: C + (i + 1) * Co] = z.astype(o_ref.dtype)
                continue

            awT = mat_refs[mi][...].astype(compute_dtype)             # (W, pw)
            uwT = mat_refs[mi + 1][...].astype(compute_dtype)         # (pw, W)
            uh_ref = mat_refs[mi + 2]                                 # (ph, H, 1)
            mi += 3

            # ---- avg pool along H: grouped row mean (no matrix) ----
            y3 = y.reshape(Co * ph, p, W)
            acc = y3[:, 0, :]
            for o in range(1, p):
                acc = acc + y3[:, o, :]
            acc = acc * (1.0 / p)                                     # (Co*ph, W)

            # ---- avg pool along W: tiny right matmul ----
            pooled = jnp.dot(acc.astype(compute_dtype), awT,
                             preferred_element_type=jnp.float32)      # (Co*ph, pw)

            # ---- bias (BN shift) + Mish (applied on the pooled tensor) ----
            z = _mish(pooled.reshape(Co, ph, pw) + bi)                # (Co, ph, pw)

            # ---- bilinear upsample along H: weighted sum of ph pooled rows ----
            up = z[:, 0:1, :] * uh_ref[0]                             # (Co,1,pw)*(H,1)->(Co,H,pw)
            for q in range(1, ph):
                up = up + z[:, q:q + 1, :] * uh_ref[q]

            # ---- bilinear upsample along W: tiny right matmul ----
            out = jnp.dot(up.reshape(Co * H, pw).astype(compute_dtype), uwT,
                          preferred_element_type=jnp.float32)         # (Co*H, W)
            o_ref[0, C + i * Co: C + (i + 1) * Co] = (
                out.reshape(Co, H, W).astype(o_ref.dtype))

    return kernel


# ---------------------------------------------------------------------------
# Module-level forward (fusion_mode='cat', model_name='pspnet')
# ---------------------------------------------------------------------------
def pyramid_pooling_forward(x, params, pool_sizes, eps=1e-5,
                            compute_dtype=jnp.float32):
    # TODO(synk): only fusion_mode='cat', model_name='pspnet', explicit
    # pool_sizes with H, W divisible by each window are implemented; BN is
    # applied in eval mode with running stats (training-mode batch statistics
    # are not reproduced).
    B, C, H, W = x.shape
    n = len(pool_sizes)
    Co = params[0][0].shape[0]
    Ctot = C + n * Co

    # fold eval-mode BatchNorm into the 1x1 conv weight / bias
    w_list, b_list = [], []
    for (wgt, gamma, beta, rmean, rvar) in params:
        scale = gamma / jnp.sqrt(rvar + eps)
        w_list.append(wgt * scale[:, None])
        b_list.append(beta - rmean * scale)
    w_all = jnp.concatenate(w_list, axis=0)                         # (n*Co, C)
    b_all = jnp.concatenate(b_list, axis=0).reshape(n, Co, 1, 1)    # (n,Co,1,1)

    # tiny separable resampling operators (per pooled path)
    path_info, mats = [], []
    for p in pool_sizes:
        p = int(p)
        assert H % p == 0 and W % p == 0, "pool window must divide H and W"
        ph, pw = H // p, W // p
        path_info.append((p, ph, pw))
        if p > 1:
            awT = _avg_pool_w_matrix(W, p)                          # (W, pw)
            uwT = np.ascontiguousarray(_bilinear_matrix(W, pw).T)   # (pw, W)
            uh_b = np.ascontiguousarray(
                _bilinear_matrix(H, ph).T)[:, :, None]              # (ph, H, 1)
            mats += [jnp.asarray(awT), jnp.asarray(uwT), jnp.asarray(uh_b)]

    kernel = _make_kernel(C, Co, H, W, path_info, compute_dtype)

    in_specs = [
        pl.BlockSpec((1, C, H, W), lambda b: (b, 0, 0, 0)),
        pl.BlockSpec(w_all.shape, lambda b: (0, 0)),
        pl.BlockSpec(b_all.shape, lambda b: (0, 0, 0, 0)),
    ]
    for m in mats:
        in_specs.append(pl.BlockSpec(m.shape, lambda b, _nd=m.ndim: (0,) * _nd))

    return pl.pallas_call(
        kernel,
        out_shape=jax.ShapeDtypeStruct((B, Ctot, H, W), x.dtype),
        grid=(B,),
        in_specs=in_specs,
        out_specs=pl.BlockSpec((1, Ctot, H, W), lambda b: (b, 0, 0, 0)),
        scratch_shapes=[pltpu.VMEM((n, Co, H, W), jnp.float32)],
        compiler_params=pltpu.CompilerParams(dimension_semantics=("parallel",)),
    )(x, w_all, b_all, *mats)


# ---------------------------------------------------------------------------
# numpy reference (pool -> conv -> BN -> Mish -> bilinear upsample -> concat)
# ---------------------------------------------------------------------------
def _ref_forward(x, params, pool_sizes, eps=1e-5):
    x = np.asarray(x)
    B, C, H, W = x.shape
    slices = [x]
    for (wgt, gamma, beta, rmean, rvar), p in zip(params, pool_sizes):
        ph, pw = H // p, W // p
        pooled = x.reshape(B, C, ph, p, pw, p).mean(axis=(3, 5))
        y = np.einsum("oc,bcpq->bopq", np.asarray(wgt), pooled)
        scale = np.asarray(gamma) / np.sqrt(np.asarray(rvar) + eps)
        shift = np.asarray(beta) - np.asarray(rmean) * scale
        y = y * scale[None, :, None, None] + shift[None, :, None, None]
        sp = np.maximum(y, 0.0) + np.log1p(np.exp(-np.abs(y)))
        y = y * np.tanh(sp)
        uh = _bilinear_matrix(H, ph)
        uw = _bilinear_matrix(W, pw)
        out = np.einsum("hp,bopq,wq->bohw", uh, y, uw)
        slices.append(out)
    return np.concatenate(slices, axis=1)


if __name__ == "__main__":
    B, C, H, W = 2, 8, 16, 16
    pool_sizes = [8, 4, 2, 1]        # avg_pool2d kernel == stride windows
    Co = C // len(pool_sizes)        # conv2DBatchNormRelu(in, in/len(pool_sizes), 1, 1, 0)

    key = jax.random.PRNGKey(0)
    kx, kp = jax.random.split(key)
    x = jax.random.normal(kx, (B, C, H, W), jnp.float32)

    # deterministic synthetic parameters per path (conv weight, BN stats).
    params = []
    for k in jax.random.split(kp, len(pool_sizes)):
        kw, kg, kb, km, kv = jax.random.split(k, 5)
        wgt = jax.random.normal(kw, (Co, C), jnp.float32) / np.sqrt(C)
        gamma = 1.0 + 0.1 * jax.random.normal(kg, (Co,), jnp.float32)
        beta = 0.1 * jax.random.normal(kb, (Co,), jnp.float32)
        rmean = 0.1 * jax.random.normal(km, (Co,), jnp.float32)
        rvar = 1.0 + 0.5 * jax.nn.softplus(jax.random.normal(kv, (Co,), jnp.float32))
        params.append((wgt, gamma, beta, rmean, rvar))

    out = pyramid_pooling_forward(x, params, pool_sizes)
    out = jax.block_until_ready(out)

    assert out.shape == (B, C + Co * len(pool_sizes), H, W), out.shape
    ref = _ref_forward(x, params, pool_sizes)
    np.testing.assert_allclose(np.asarray(out), ref, rtol=1e-4, atol=1e-4)

    print("KERNEL_OK")
</pallas_src>

<mosaic_0001>
module attributes {stable_mosaic.version = 11 : i64} {
  func.func @kernel(%arg0: i32, %arg1: memref<1x8x16x16xf32, #tpu.memory_space<vmem>>, %arg2: memref<8x8xf32, #tpu.memory_space<vmem>>, %arg3: memref<4x2x1x1xf32, #tpu.memory_space<vmem>>, %arg4: memref<16x2xf32, #tpu.memory_space<vmem>>, %arg5: memref<2x16xf32, #tpu.memory_space<vmem>>, %arg6: memref<2x16x1xf32, #tpu.memory_space<vmem>>, %arg7: memref<16x4xf32, #tpu.memory_space<vmem>>, %arg8: memref<4x16xf32, #tpu.memory_space<vmem>>, %arg9: memref<4x16x1xf32, #tpu.memory_space<vmem>>, %arg10: memref<16x8xf32, #tpu.memory_space<vmem>>, %arg11: memref<8x16xf32, #tpu.memory_space<vmem>>, %arg12: memref<8x16x1xf32, #tpu.memory_space<vmem>>, %arg13: memref<1x16x16x16xf32, #tpu.memory_space<vmem>>, %arg14: memref<4x2x16x16xf32, #tpu.memory_space<vmem>>) attributes {dimension_semantics = [#tpu.dimension_semantics<parallel>], iteration_bounds = array<i64: 2>, scalar_prefetch = 0 : i64, scratch_operands = 1 : i64, tpu.core_type = #tpu.core_type<tc>, window_params = [{transform_indices = @transform_0, window_bounds = array<i64: 1, 8, 16, 16>}, {pipeline_mode = #tpu.pipeline_mode<synchronous>, transform_indices = @transform_1, window_bounds = array<i64: 8, 8>}, {pipeline_mode = #tpu.pipeline_mode<synchronous>, transform_indices = @transform_2, window_bounds = array<i64: 4, 2, 1, 1>}, {pipeline_mode = #tpu.pipeline_mode<synchronous>, transform_indices = @transform_3, window_bounds = array<i64: 16, 2>}, {pipeline_mode = #tpu.pipeline_mode<synchronous>, transform_indices = @transform_4, window_bounds = array<i64: 2, 16>}, {pipeline_mode = #tpu.pipeline_mode<synchronous>, transform_indices = @transform_5, window_bounds = array<i64: 2, 16, 1>}, {pipeline_mode = #tpu.pipeline_mode<synchronous>, transform_indices = @transform_6, window_bounds = array<i64: 16, 4>}, {pipeline_mode = #tpu.pipeline_mode<synchronous>, transform_indices = @transform_7, window_bounds = array<i64: 4, 16>}, {pipeline_mode = #tpu.pipeline_mode<synchronous>, transform_indices = @transform_8, window_bounds = array<i64: 4, 16, 1>}, {pipeline_mode = #tpu.pipeline_mode<synchronous>, transform_indices = @transform_9, window_bounds = array<i64: 16, 8>}, {pipeline_mode = #tpu.pipeline_mode<synchronous>, transform_indices = @transform_10, window_bounds = array<i64: 8, 16>}, {pipeline_mode = #tpu.pipeline_mode<synchronous>, transform_indices = @transform_11, window_bounds = array<i64: 8, 16, 1>}, {transform_indices = @transform_12, window_bounds = array<i64: 1, 16, 16, 16>}]} {
    %c0 = arith.constant 0 : index
    %c0_0 = arith.constant 0 : index
    %c0_1 = arith.constant 0 : index
    %c0_2 = arith.constant 0 : index
    %0 = vector.load %arg1[%c0, %c0_0, %c0_1, %c0_2] : memref<1x8x16x16xf32, #tpu.memory_space<vmem>>, vector<1x8x16x16xf32>
    %1 = vector.shape_cast %0 : vector<1x8x16x16xf32> to vector<8x16x16xf32>
    %c0_3 = arith.constant 0 : index
    %c0_4 = arith.constant 0 : index
    %c0_5 = arith.constant 0 : index
    %c0_6 = arith.constant 0 : index
    %2 = vector.load %arg13[%c0_3, %c0_4, %c0_5, %c0_6] : memref<1x16x16x16xf32, #tpu.memory_space<vmem>>, vector<1x8x16x16xf32>
    %3 = vector.shape_cast %2 : vector<1x8x16x16xf32> to vector<8x16x16xf32>
    %4 = vector.shape_cast %1 : vector<8x16x16xf32> to vector<1x8x16x16xf32>
    tpu.vector_store %arg13[%c0_3, %c0_4, %c0_5, %c0_6], %4 {strides = array<i32>} : memref<1x16x16x16xf32, #tpu.memory_space<vmem>>, vector<1x8x16x16xf32>,
    %c0_7 = arith.constant 0 : index
    %c0_8 = arith.constant 0 : index
    %5 = vector.load %arg2[%c0_7, %c0_8] : memref<8x8xf32, #tpu.memory_space<vmem>>, vector<8x8xf32>
    %c0_9 = arith.constant 0 : index
    %c0_10 = arith.constant 0 : index
    %c0_11 = arith.constant 0 : index
    %c0_12 = arith.constant 0 : index
    %6 = vector.load %arg1[%c0_9, %c0_10, %c0_11, %c0_12] : memref<1x8x16x16xf32, #tpu.memory_space<vmem>>, vector<1x8x1x16xf32>
    %7 = vector.shape_cast %6 : vector<1x8x1x16xf32> to vector<8x16xf32>
    %cst = arith.constant dense<0.000000e+00> : vector<8x16xf32>
    %8 = tpu.matmul %5, %7, %cst {dimension_numbers = #tpu.dot_dimension_numbers<[1], [0], [0], [1], [0, 0, 1, 1], [], []>} : vector<8x8xf32>, vector<8x16xf32>, vector<8x16xf32> -> vector<8x16xf32>
    %9 = vector.shape_cast %8 : vector<8x16xf32> to vector<4x2x16xf32>
    %c0_13 = arith.constant 0 : index
    %c0_14 = arith.constant 0 : index
    %c0_15 = arith.constant 0 : index
    %c0_16 = arith.constant 0 : index
    %10 = vector.load %arg14[%c0_13, %c0_14, %c0_15, %c0_16] : memref<4x2x16x16xf32, #tpu.memory_space<vmem>>, vector<4x2x1x16xf32>
    %11 = vector.shape_cast %10 : vector<4x2x1x16xf32> to vector<4x2x16xf32>
    %12 = vector.shape_cast %9 : vector<4x2x16xf32> to vector<4x2x1x16xf32>
    tpu.vector_store %arg14[%c0_13, %c0_14, %c0_15, %c0_16], %12 {strides = array<i32>} : memref<4x2x16x16xf32, #tpu.memory_space<vmem>>, vector<4x2x1x16xf32>,
    %c0_17 = arith.constant 0 : index
    %c0_18 = arith.constant 0 : index
    %c1 = arith.constant 1 : index
    %c0_19 = arith.constant 0 : index
    %13 = vector.load %arg1[%c0_17, %c0_18, %c1, %c0_19] : memref<1x8x16x16xf32, #tpu.memory_space<vmem>>, vector<1x8x1x16xf32>
    %14 = vector.shape_cast %13 : vector<1x8x1x16xf32> to vector<8x16xf32>
    %cst_20 = arith.constant dense<0.000000e+00> : vector<8x16xf32>
    %15 = tpu.matmul %5, %14, %cst_20 {dimension_numbers = #tpu.dot_dimension_numbers<[1], [0], [0], [1], [0, 0, 1, 1], [], []>} : vector<8x8xf32>, vector<8x16xf32>, vector<8x16xf32> -> vector<8x16xf32>
    %16 = vector.shape_cast %15 : vector<8x16xf32> to vector<4x2x16xf32>
    %c0_21 = arith.constant 0 : index
    %c0_22 = arith.constant 0 : index
    %c1_23 = arith.constant 1 : index
    %c0_24 = arith.constant 0 : index
    %17 = vector.load %arg14[%c0_21, %c0_22, %c1_23, %c0_24] : memref<4x2x16x16xf32, #tpu.memory_space<vmem>>, vector<4x2x1x16xf32>
    %18 = vector.shape_cast %17 : vector<4x2x1x16xf32> to vector<4x2x16xf32>
    %19 = vector.shape_cast %16 : vector<4x2x16xf32> to vector<4x2x1x16xf32>
    tpu.vector_store %arg14[%c0_21, %c0_22, %c1_23, %c0_24], %19 {strides = array<i32>} : memref<4x2x16x16xf32, #tpu.memory_space<vmem>>, vector<4x2x1x16xf32>,
    %c0_25 = arith.constant 0 : index
    %c0_26 = arith.constant 0 : index
    %c2 = arith.constant 2 : index
    %c0_27 = arith.constant 0 : index
    %20 = vector.load %arg1[%c0_25, %c0_26, %c2, %c0_27] : memref<1x8x16x16xf32, #tpu.memory_space<vmem>>, vector<1x8x1x16xf32>
    %21 = vector.shape_cast %20 : vector<1x8x1x16xf32> to vector<8x16xf32>
    %cst_28 = arith.constant dense<0.000000e+00> : vector<8x16xf32>
    %22 = tpu.matmul %5, %21, %cst_28 {dimension_numbers = #tpu.dot_dimension_numbers<[1], [0], [0], [1], [0, 0, 1, 1], [], []>} : vector<8x8xf32>, vector<8x16xf32>, vector<8x16xf32> -> vector<8x16xf32>
    %23 = vector.shape_cast %22 : vector<8x16xf32> to vector<4x2x16xf32>
    %c0_29 = arith.constant 0 : index
    %c0_30 = arith.constant 0 : index
    %c2_31 = arith.constant 2 : index
    %c0_32 = arith.constant 0 : index
    %24 = vector.load %arg14[%c0_29, %c0_30, %c2_31, %c0_32] : memref<4x2x16x16xf32, #tpu.memory_space<vmem>>, vector<4x2x1x16xf32>
    %25 = vector.shape_cast %24 : vector<4x2x1x16xf32> to vector<4x2x16xf32>
    %26 = vector.shape_cast %23 : vector<4x2x16xf32> to vector<4x2x1x16xf32>
    tpu.vector_store %arg14[%c0_29, %c0_30, %c2_31, %c0_32], %26 {strides = array<i32>} : memref<4x2x16x16xf32, #tpu.memory_space<vmem>>, vector<4x2x1x16xf32>,
    %c0_33 = arith.constant 0 : index
    %c0_34 = arith.constant 0 : index
    %c3 = arith.constant 3 : index
    %c0_35 = arith.constant 0 : index
    %27 = vector.load %arg1[%c0_33, %c0_34, %c3, %c0_35] : memref<1x8x16x16xf32, #tpu.memory_space<vmem>>, vector<1x8x1x16xf32>
    %28 = vector.shape_cast %27 : vector<1x8x1x16xf32> to vector<8x16xf32>
    %cst_36 = arith.constant dense<0.000000e+00> : vector<8x16xf32>
    %29 = tpu.matmul %5, %28, %cst_36 {dimension_numbers = #tpu.dot_dimension_numbers<[1], [0], [0], [1], [0, 0, 1, 1], [], []>} : vector<8x8xf32>, vector<8x16xf32>, vector<8x16xf32> -> vector<8x16xf32>
    %30 = vector.shape_cast %29 : vector<8x16xf32> to vector<4x2x16xf32>
    %c0_37 = arith.constant 0 : index
    %c0_38 = arith.constant 0 : index
    %c3_39 = arith.constant 3 : index
    %c0_40 = arith.constant 0 : index
    %31 = vector.load %arg14[%c0_37, %c0_38, %c3_39, %c0_40] : memref<4x2x16x16xf32, #tpu.memory_space<vmem>>, vector<4x2x1x16xf32>
    %32 = vector.shape_cast %31 : vector<4x2x1x16xf32> to vector<4x2x16xf32>
    %33 = vector.shape_cast %30 : vector<4x2x16xf32> to vector<4x2x1x16xf32>
    tpu.vector_store %arg14[%c0_37, %c0_38, %c3_39, %c0_40], %33 {strides = array<i32>} : memref<4x2x16x16xf32, #tpu.memory_space<vmem>>, vector<4x2x1x16xf32>,
    %c0_41 = arith.constant 0 : index
    %c0_42 = arith.constant 0 : index
    %c4 = arith.constant 4 : index
    %c0_43 = arith.constant 0 : index
    %34 = vector.load %arg1[%c0_41, %c0_42, %c4, %c0_43] : memref<1x8x16x16xf32, #tpu.memory_space<vmem>>, vector<1x8x1x16xf32>
    %35 = vector.shape_cast %34 : vector<1x8x1x16xf32> to vector<8x16xf32>
    %cst_44 = arith.constant dense<0.000000e+00> : vector<8x16xf32>
    %36 = tpu.matmul %5, %35, %cst_44 {dimension_numbers = #tpu.dot_dimension_numbers<[1], [0], [0], [1], [0, 0, 1, 1], [], []>} : vector<8x8xf32>, vector<8x16xf32>, vector<8x16xf32> -> vector<8x16xf32>
    %37 = vector.shape_cast %36 : vector<8x16xf32> to vector<4x2x16xf32>
    %c0_45 = arith.constant 0 : index
    %c0_46 = arith.constant 0 : index
    %c4_47 = arith.constant 4 : index
    %c0_48 = arith.constant 0 : index
    %38 = vector.load %arg14[%c0_45, %c0_46, %c4_47, %c0_48] : memref<4x2x16x16xf32, #tpu.memory_space<vmem>>, vector<4x2x1x16xf32>
    %39 = vector.shape_cast %38 : vector<4x2x1x16xf32> to vector<4x2x16xf32>
    %40 = vector.shape_cast %37 : vector<4x2x16xf32> to vector<4x2x1x16xf32>
    tpu.vector_store %arg14[%c0_45, %c0_46, %c4_47, %c0_48], %40 {strides = array<i32>} : memref<4x2x16x16xf32, #tpu.memory_space<vmem>>, vector<4x2x1x16xf32>,
    %c0_49 = arith.constant 0 : index
    %c0_50 = arith.constant 0 : index
    %c5 = arith.constant 5 : index
    %c0_51 = arith.constant 0 : index
    %41 = vector.load %arg1[%c0_49, %c0_50, %c5, %c0_51] : memref<1x8x16x16xf32, #tpu.memory_space<vmem>>, vector<1x8x1x16xf32>
    %42 = vector.shape_cast %41 : vector<1x8x1x16xf32> to vector<8x16xf32>
    %cst_52 = arith.constant dense<0.000000e+00> : vector<8x16xf32>
    %43 = tpu.matmul %5, %42, %cst_52 {dimension_numbers = #tpu.dot_dimension_numbers<[1], [0], [0], [1], [0, 0, 1, 1], [], []>} : vector<8x8xf32>, vector<8x16xf32>, vector<8x16xf32> -> vector<8x16xf32>
    %44 = vector.shape_cast %43 : vector<8x16xf32> to vector<4x2x16xf32>
    %c0_53 = arith.constant 0 : index
    %c0_54 = arith.constant 0 : index
    %c5_55 = arith.constant 5 : index
    %c0_56 = arith.constant 0 : index
    %45 = vector.load %arg14[%c0_53, %c0_54, %c5_55, %c0_56] : memref<4x2x16x16xf32, #tpu.memory_space<vmem>>, vector<4x2x1x16xf32>
    %46 = vector.shape_cast %45 : vector<4x2x1x16xf32> to vector<4x2x16xf32>
    %47 = vector.shape_cast %44 : vector<4x2x16xf32> to vector<4x2x1x16xf32>
    tpu.vector_store %arg14[%c0_53, %c0_54, %c5_55, %c0_56], %47 {strides = array<i32>} : memref<4x2x16x16xf32, #tpu.memory_space<vmem>>, vector<4x2x1x16xf32>,
    %c0_57 = arith.constant 0 : index
    %c0_58 = arith.constant 0 : index
    %c6 = arith.constant 6 : index
    %c0_59 = arith.constant 0 : index
    %48 = vector.load %arg1[%c0_57, %c0_58, %c6, %c0_59] : memref<1x8x16x16xf32, #tpu.memory_space<vmem>>, vector<1x8x1x16xf32>
    %49 = vector.shape_cast %48 : vector<1x8x1x16xf32> to vector<8x16xf32>
    %cst_60 = arith.constant dense<0.000000e+00> : vector<8x16xf32>
    %50 = tpu.matmul %5, %49, %cst_60 {dimension_numbers = #tpu.dot_dimension_numbers<[1], [0], [0], [1], [0, 0, 1, 1], [], []>} : vector<8x8xf32>, vector<8x16xf32>, vector<8x16xf32> -> vector<8x16xf32>
    %51 = vector.shape_cast %50 : vector<8x16xf32> to vector<4x2x16xf32>
    %c0_61 = arith.constant 0 : index
    %c0_62 = arith.constant 0 : index
    %c6_63 = arith.constant 6 : index
    %c0_64 = arith.constant 0 : index
    %52 = vector.load %arg14[%c0_61, %c0_62, %c6_63, %c0_64] : memref<4x2x16x16xf32, #tpu.memory_space<vmem>>, vector<4x2x1x16xf32>
    %53 = vector.shape_cast %52 : vector<4x2x1x16xf32> to vector<4x2x16xf32>
    %54 = vector.shape_cast %51 : vector<4x2x16xf32> to vector<4x2x1x16xf32>
    tpu.vector_store %arg14[%c0_61, %c0_62, %c6_63, %c0_64], %54 {strides = array<i32>} : memref<4x2x16x16xf32, #tpu.memory_space<vmem>>, vector<4x2x1x16xf32>,
    %c0_65 = arith.constant 0 : index
    %c0_66 = arith.constant 0 : index
    %c7 = arith.constant 7 : index
    %c0_67 = arith.constant 0 : index
    %55 = vector.load %arg1[%c0_65, %c0_66, %c7, %c0_67] : memref<1x8x16x16xf32, #tpu.memory_space<vmem>>, vector<1x8x1x16xf32>
    %56 = vector.shape_cast %55 : vector<1x8x1x16xf32> to vector<8x16xf32>
    %cst_68 = arith.constant dense<0.000000e+00> : vector<8x16xf32>
    %57 = tpu.matmul %5, %56, %cst_68 {dimension_numbers = #tpu.dot_dimension_numbers<[1], [0], [0], [1], [0, 0, 1, 1], [], []>} : vector<8x8xf32>, vector<8x16xf32>, vector<8x16xf32> -> vector<8x16xf32>
    %58 = vector.shape_cast %57 : vector<8x16xf32> to vector<4x2x16xf32>
    %c0_69 = arith.constant 0 : index
    %c0_70 = arith.constant 0 : index
    %c7_71 = arith.constant 7 : index
    %c0_72 = arith.constant 0 : index
    %59 = vector.load %arg14[%c0_69, %c0_70, %c7_71, %c0_72] : memref<4x2x16x16xf32, #tpu.memory_space<vmem>>, vector<4x2x1x16xf32>
    %60 = vector.shape_cast %59 : vector<4x2x1x16xf32> to vector<4x2x16xf32>
    %61 = vector.shape_cast %58 : vector<4x2x16xf32> to vector<4x2x1x16xf32>
    tpu.vector_store %arg14[%c0_69, %c0_70, %c7_71, %c0_72], %61 {strides = array<i32>} : memref<4x2x16x16xf32, #tpu.memory_space<vmem>>, vector<4x2x1x16xf32>,
    %c0_73 = arith.constant 0 : index
    %c0_74 = arith.constant 0 : index
    %c8 = arith.constant 8 : index
    %c0_75 = arith.constant 0 : index
    %62 = vector.load %arg1[%c0_73, %c0_74, %c8, %c0_75] : memref<1x8x16x16xf32, #tpu.memory_space<vmem>>, vector<1x8x1x16xf32>
    %63 = vector.shape_cast %62 : vector<1x8x1x16xf32> to vector<8x16xf32>
    %cst_76 = arith.constant dense<0.000000e+00> : vector<8x16xf32>
    %64 = tpu.matmul %5, %63, %cst_76 {dimension_numbers = #tpu.dot_dimension_numbers<[1], [0], [0], [1], [0, 0, 1, 1], [], []>} : vector<8x8xf32>, vector<8x16xf32>, vector<8x16xf32> -> vector<8x16xf32>
    %65 = vector.shape_cast %64 : vector<8x16xf32> to vector<4x2x16xf32>
    %c0_77 = arith.constant 0 : index
    %c0_78 = arith.constant 0 : index
    %c8_79 = arith.constant 8 : index
    %c0_80 = arith.constant 0 : index
    %66 = vector.load %arg14[%c0_77, %c0_78, %c8_79, %c0_80] : memref<4x2x16x16xf32, #tpu.memory_space<vmem>>, vector<4x2x1x16xf32>
    %67 = vector.shape_cast %66 : vector<4x2x1x16xf32> to vector<4x2x16xf32>
    %68 = vector.shape_cast %65 : vector<4x2x16xf32> to vector<4x2x1x16xf32>
    tpu.vector_store %arg14[%c0_77, %c0_78, %c8_79, %c0_80], %68 {strides = array<i32>} : memref<4x2x16x16xf32, #tpu.memory_space<vmem>>, vector<4x2x1x16xf32>,
    %c0_81 = arith.constant 0 : index
    %c0_82 = arith.constant 0 : index
    %c9 = arith.constant 9 : index
    %c0_83 = arith.constant 0 : index
    %69 = vector.load %arg1[%c0_81, %c0_82, %c9, %c0_83] : memref<1x8x16x16xf32, #tpu.memory_space<vmem>>, vector<1x8x1x16xf32>
    %70 = vector.shape_cast %69 : vector<1x8x1x16xf32> to vector<8x16xf32>
    %cst_84 = arith.constant dense<0.000000e+00> : vector<8x16xf32>
    %71 = tpu.matmul %5, %70, %cst_84 {dimension_numbers = #tpu.dot_dimension_numbers<[1], [0], [0], [1], [0, 0, 1, 1], [], []>} : vector<8x8xf32>, vector<8x16xf32>, vector<8x16xf32> -> vector<8x16xf32>
    %72 = vector.shape_cast %71 : vector<8x16xf32> to vector<4x2x16xf32>
    %c0_85 = arith.constant 0 : index
    %c0_86 = arith.constant 0 : index
    %c9_87 = arith.constant 9 : index
    %c0_88 = arith.constant 0 : index
    %73 = vector.load %arg14[%c0_85, %c0_86, %c9_87, %c0_88] : memref<4x2x16x16xf32, #tpu.memory_space<vmem>>, vector<4x2x1x16xf32>
    %74 = vector.shape_cast %73 : vector<4x2x1x16xf32> to vector<4x2x16xf32>
    %75 = vector.shape_cast %72 : vector<4x2x16xf32> to vector<4x2x1x16xf32>
    tpu.vector_store %arg14[%c0_85, %c0_86, %c9_87, %c0_88], %75 {strides = array<i32>} : memref<4x2x16x16xf32, #tpu.memory_space<vmem>>, vector<4x2x1x16xf32>,
    %c0_89 = arith.constant 0 : index
    %c0_90 = arith.constant 0 : index
    %c10 = arith.constant 10 : index
    %c0_91 = arith.constant 0 : index
    %76 = vector.load %arg1[%c0_89, %c0_90, %c10, %c0_91] : memref<1x8x16x16xf32, #tpu.memory_space<vmem>>, vector<1x8x1x16xf32>
    %77 = vector.shape_cast %76 : vector<1x8x1x16xf32> to vector<8x16xf32>
    %cst_92 = arith.constant dense<0.000000e+00> : vector<8x16xf32>
    %78 = tpu.matmul %5, %77, %cst_92 {dimension_numbers = #tpu.dot_dimension_numbers<[1], [0], [0], [1], [0, 0, 1, 1], [], []>} : vector<8x8xf32>, vector<8x16xf32>, vector<8x16xf32> -> vector<8x16xf32>
    %79 = vector.shape_cast %78 : vector<8x16xf32> to vector<4x2x16xf32>
    %c0_93 = arith.constant 0 : index
    %c0_94 = arith.constant 0 : index
    %c10_95 = arith.constant 10 : index
    %c0_96 = arith.constant 0 : index
    %80 = vector.load %arg14[%c0_93, %c0_94, %c10_95, %c0_96] : memref<4x2x16x16xf32, #tpu.memory_space<vmem>>, vector<4x2x1x16xf32>
    %81 = vector.shape_cast %80 : vector<4x2x1x16xf32> to vector<4x2x16xf32>
    %82 = vector.shape_cast %79 : vector<4x2x16xf32> to vector<4x2x1x16xf32>
    tpu.vector_store %arg14[%c0_93, %c0_94, %c10_95, %c0_96], %82 {strides = array<i32>} : memref<4x2x16x16xf32, #tpu.memory_space<vmem>>, vector<4x2x1x16xf32>,
    %c0_97 = arith.constant 0 : index
    %c0_98 = arith.constant 0 : index
    %c11 = arith.constant 11 : index
    %c0_99 = arith.constant 0 : index
    %83 = vector.load %arg1[%c0_97, %c0_98, %c11, %c0_99] : memref<1x8x16x16xf32, #tpu.memory_space<vmem>>, vector<1x8x1x16xf32>
    %84 = vector.shape_cast %83 : vector<1x8x1x16xf32> to vector<8x16xf32>
    %cst_100 = arith.constant dense<0.000000e+00> : vector<8x16xf32>
    %85 = tpu.matmul %5, %84, %cst_100 {dimension_numbers = #tpu.dot_dimension_numbers<[1], [0], [0], [1], [0, 0, 1, 1], [], []>} : vector<8x8xf32>, vector<8x16xf32>, vector<8x16xf32> -> vector<8x16xf32>
    %86 = vector.shape_cast %85 : vector<8x16xf32> to vector<4x2x16xf32>
    %c0_101 = arith.constant 0 : index
    %c0_102 = arith.constant 0 : index
    %c11_103 = arith.constant 11 : index
    %c0_104 = arith.constant 0 : index
    %87 = vector.load %arg14[%c0_101, %c0_102, %c11_103, %c0_104] : memref<4x2x16x16xf32, #tpu.memory_space<vmem>>, vector<4x2x1x16xf32>
    %88 = vector.shape_cast %87 : vector<4x2x1x16xf32> to vector<4x2x16xf32>
    %89 = vector.shape_cast %86 : vector<4x2x16xf32> to vector<4x2x1x16xf32>
    tpu.vector_store %arg14[%c0_101, %c0_102, %c11_103, %c0_104], %89 {strides = array<i32>} : memref<4x2x16x16xf32, #tpu.memory_space<vmem>>, vector<4x2x1x16xf32>,
    %c0_105 = arith.constant 0 : index
    %c0_106 = arith.constant 0 : index
    %c12 = arith.constant 12 : index
    %c0_107 = arith.constant 0 : index
    %90 = vector.load %arg1[%c0_105, %c0_106, %c12, %c0_107] : memref<1x8x16x16xf32, #tpu.memory_space<vmem>>, vector<1x8x1x16xf32>
    %91 = vector.shape_cast %90 : vector<1x8x1x16xf32> to vector<8x16xf32>
    %cst_108 = arith.constant dense<0.000000e+00> : vector<8x16xf32>
    %92 = tpu.matmul %5, %91, %cst_108 {dimension_numbers = #tpu.dot_dimension_numbers<[1], [0], [0], [1], [0, 0, 1, 1], [], []>} : vector<8x8xf32>, vector<8x16xf32>, vector<8x16xf32> -> vector<8x16xf32>
    %93 = vector.shape_cast %92 : vector<8x16xf32> to vector<4x2x16xf32>
    %c0_109 = arith.constant 0 : index
    %c0_110 = arith.constant 0 : index
    %c12_111 = arith.constant 12 : index
    %c0_112 = arith.constant 0 : index
    %94 = vector.load %arg14[%c0_109, %c0_110, %c12_111, %c0_112] : memref<4x2x16x16xf32, #tpu.memory_space<vmem>>, vector<4x2x1x16xf32>
    %95 = vector.shape_cast %94 : vector<4x2x1x16xf32> to vector<4x2x16xf32>
    %96 = vector.shape_cast %93 : vector<4x2x16xf32> to vector<4x2x1x16xf32>
    tpu.vector_store %arg14[%c0_109, %c0_110, %c12_111, %c0_112], %96 {strides = array<i32>} : memref<4x2x16x16xf32, #tpu.memory_space<vmem>>, vector<4x2x1x16xf32>,
    %c0_113 = arith.constant 0 : index
    %c0_114 = arith.constant 0 : index
    %c13 = arith.constant 13 : index
    %c0_115 = arith.constant 0 : index
    %97 = vector.load %arg1[%c0_113, %c0_114, %c13, %c0_115] : memref<1x8x16x16xf32, #tpu.memory_space<vmem>>, vector<1x8x1x16xf32>
    %98 = vector.shape_cast %97 : vector<1x8x1x16xf32> to vector<8x16xf32>
    %cst_116 = arith.constant dense<0.000000e+00> : vector<8x16xf32>
    %99 = tpu.matmul %5, %98, %cst_116 {dimension_numbers = #tpu.dot_dimension_numbers<[1], [0], [0], [1], [0, 0, 1, 1], [], []>} : vector<8x8xf32>, vector<8x16xf32>, vector<8x16xf32> -> vector<8x16xf32>
    %100 = vector.shape_cast %99 : vector<8x16xf32> to vector<4x2x16xf32>
    %c0_117 = arith.constant 0 : index
    %c0_118 = arith.constant 0 : index
    %c13_119 = arith.constant 13 : index
    %c0_120 = arith.constant 0 : index
    %101 = vector.load %arg14[%c0_117, %c0_118, %c13_119, %c0_120] : memref<4x2x16x16xf32, #tpu.memory_space<vmem>>, vector<4x2x1x16xf32>
    %102 = vector.shape_cast %101 : vector<4x2x1x16xf32> to vector<4x2x16xf32>
    %103 = vector.shape_cast %100 : vector<4x2x16xf32> to vector<4x2x1x16xf32>
    tpu.vector_store %arg14[%c0_117, %c0_118, %c13_119, %c0_120], %103 {strides = array<i32>} : memref<4x2x16x16xf32, #tpu.memory_space<vmem>>, vector<4x2x1x16xf32>,
    %c0_121 = arith.constant 0 : index
    %c0_122 = arith.constant 0 : index
    %c14 = arith.constant 14 : index
    %c0_123 = arith.constant 0 : index
    %104 = vector.load %arg1[%c0_121, %c0_122, %c14, %c0_123] : memref<1x8x16x16xf32, #tpu.memory_space<vmem>>, vector<1x8x1x16xf32>
    %105 = vector.shape_cast %104 : vector<1x8x1x16xf32> to vector<8x16xf32>
    %cst_124 = arith.constant dense<0.000000e+00> : vector<8x16xf32>
    %106 = tpu.matmul %5, %105, %cst_124 {dimension_numbers = #tpu.dot_dimension_numbers<[1], [0], [0], [1], [0, 0, 1, 1], [], []>} : vector<8x8xf32>, vector<8x16xf32>, vector<8x16xf32> -> vector<8x16xf32>
    %107 = vector.shape_cast %106 : vector<8x16xf32> to vector<4x2x16xf32>
    %c0_125 = arith.constant 0 : index
    %c0_126 = arith.constant 0 : index
    %c14_127 = arith.constant 14 : index
    %c0_128 = arith.constant 0 : index
    %108 = vector.load %arg14[%c0_125, %c0_126, %c14_127, %c0_128] : memref<4x2x16x16xf32, #tpu.memory_space<vmem>>, vector<4x2x1x16xf32>
    %109 = vector.shape_cast %108 : vector<4x2x1x16xf32> to vector<4x2x16xf32>
    %110 = vector.shape_cast %107 : vector<4x2x16xf32> to vector<4x2x1x16xf32>
    tpu.vector_store %arg14[%c0_125, %c0_126, %c14_127, %c0_128], %110 {strides = array<i32>} : memref<4x2x16x16xf32, #tpu.memory_space<vmem>>, vector<4x2x1x16xf32>,
    %c0_129 = arith.constant 0 : index
    %c0_130 = arith.constant 0 : index
    %c15 = arith.constant 15 : index
    %c0_131 = arith.constant 0 : index
    %111 = vector.load %arg1[%c0_129, %c0_130, %c15, %c0_131] : memref<1x8x16x16xf32, #tpu.memory_space<vmem>>, vector<1x8x1x16xf32>
    %112 = vector.shape_cast %111 : vector<1x8x1x16xf32> to vector<8x16xf32>
    %cst_132 = arith.constant dense<0.000000e+00> : vector<8x16xf32>
    %113 = tpu.matmul %5, %112, %cst_132 {dimension_numbers = #tpu.dot_dimension_numbers<[1], [0], [0], [1], [0, 0, 1, 1], [], []>} : vector<8x8xf32>, vector<8x16xf32>, vector<8x16xf32> -> vector<8x16xf32>
    %114 = vector.shape_cast %113 : vector<8x16xf32> to vector<4x2x16xf32>
    %c0_133 = arith.constant 0 : index
    %c0_134 = arith.constant 0 : index
    %c15_135 = arith.constant 15 : index
    %c0_136 = arith.constant 0 : index
    %115 = vector.load %arg14[%c0_133, %c0_134, %c15_135, %c0_136] : memref<4x2x16x16xf32, #tpu.memory_space<vmem>>, vector<4x2x1x16xf32>
    %116 = vector.shape_cast %115 : vector<4x2x1x16xf32> to vector<4x2x16xf32>
    %117 = vector.shape_cast %114 : vector<4x2x16xf32> to vector<4x2x1x16xf32>
    tpu.vector_store %arg14[%c0_133, %c0_134, %c15_135, %c0_136], %117 {strides = array<i32>} : memref<4x2x16x16xf32, #tpu.memory_space<vmem>>, vector<4x2x1x16xf32>,
    %c0_137 = arith.constant 0 : index
    %c0_138 = arith.constant 0 : index
    %c0_139 = arith.constant 0 : index
    %c0_140 = arith.constant 0 : index
    %118 = vector.load %arg14[%c0_137, %c0_138, %c0_139, %c0_140] : memref<4x2x16x16xf32, #tpu.memory_space<vmem>>, vector<1x2x16x16xf32>
    %119 = vector.shape_cast %118 : vector<1x2x16x16xf32> to vector<2x16x16xf32>
    %c0_141 = arith.constant 0 : index
    %c0_142 = arith.constant 0 : index
    %c0_143 = arith.constant 0 : index
    %c0_144 = arith.constant 0 : index
    %120 = vector.load %arg3[%c0_141, %c0_142, %c0_143, %c0_144] : memref<4x2x1x1xf32, #tpu.memory_space<vmem>>, vector<1x2x1x1xf32>
    %121 = vector.shape_cast %120 : vector<1x2x1x1xf32> to vector<2x1x1xf32>
    %c0_145 = arith.constant 0 : index
    %c0_146 = arith.constant 0 : index
    %122 = vector.load %arg4[%c0_145, %c0_146] : memref<16x2xf32, #tpu.memory_space<vmem>>, vector<16x2xf32>
    %c0_147 = arith.constant 0 : index
    %c0_148 = arith.constant 0 : index
    %123 = vector.load %arg5[%c0_147, %c0_148] : memref<2x16xf32, #tpu.memory_space<vmem>>, vector<2x16xf32>
    %124 = vector.shape_cast %119 : vector<2x16x16xf32> to vector<4x8x16xf32>
    %125 = vector.extract_strided_slice %124 {offsets = [0, 0, 0], sizes = [4, 1, 16], strides = [1, 1, 1]} : vector<4x8x16xf32> to vector<4x1x16xf32>
    %126 = vector.shape_cast %125 : vector<4x1x16xf32> to vector<4x16xf32>
    %127 = vector.extract_strided_slice %124 {offsets = [0, 1, 0], sizes = [4, 1, 16], strides = [1, 1, 1]} : vector<4x8x16xf32> to vector<4x1x16xf32>
    %128 = vector.shape_cast %127 : vector<4x1x16xf32> to vector<4x16xf32>
    %129 = arith.addf %126, %128 : vector<4x16xf32>
    %130 = vector.extract_strided_slice %124 {offsets = [0, 2, 0], sizes = [4, 1, 16], strides = [1, 1, 1]} : vector<4x8x16xf32> to vector<4x1x16xf32>
    %131 = vector.shape_cast %130 : vector<4x1x16xf32> to vector<4x16xf32>
    %132 = arith.addf %129, %131 : vector<4x16xf32>
    %133 = vector.extract_strided_slice %124 {offsets = [0, 3, 0], sizes = [4, 1, 16], strides = [1, 1, 1]} : vector<4x8x16xf32> to vector<4x1x16xf32>
    %134 = vector.shape_cast %133 : vector<4x1x16xf32> to vector<4x16xf32>
    %135 = arith.addf %132, %134 : vector<4x16xf32>
    %136 = vector.extract_strided_slice %124 {offsets = [0, 4, 0], sizes = [4, 1, 16], strides = [1, 1, 1]} : vector<4x8x16xf32> to vector<4x1x16xf32>
    %137 = vector.shape_cast %136 : vector<4x1x16xf32> to vector<4x16xf32>
    %138 = arith.addf %135, %137 : vector<4x16xf32>
    %139 = vector.extract_strided_slice %124 {offsets = [0, 5, 0], sizes = [4, 1, 16], strides = [1, 1, 1]} : vector<4x8x16xf32> to vector<4x1x16xf32>
    %140 = vector.shape_cast %139 : vector<4x1x16xf32> to vector<4x16xf32>
    %141 = arith.addf %138, %140 : vector<4x16xf32>
    %142 = vector.extract_strided_slice %124 {offsets = [0, 6, 0], sizes = [4, 1, 16], strides = [1, 1, 1]} : vector<4x8x16xf32> to vector<4x1x16xf32>
    %143 = vector.shape_cast %142 : vector<4x1x16xf32> to vector<4x16xf32>
    %144 = arith.addf %141, %143 : vector<4x16xf32>
    %145 = vector.extract_strided_slice %124 {offsets = [0, 7, 0], sizes = [4, 1, 16], strides = [1, 1, 1]} : vector<4x8x16xf32> to vector<4x1x16xf32>
    %146 = vector.shape_cast %145 : vector<4x1x16xf32> to vector<4x16xf32>
    %147 = arith.addf %144, %146 : vector<4x16xf32>
    %cst_149 = arith.constant 1.250000e-01 : f32
    %148 = vector.broadcast %cst_149 : f32 to vector<4x16xf32>
    %149 = arith.mulf %147, %148 : vector<4x16xf32>
    %cst_150 = arith.constant dense<0.000000e+00> : vector<4x2xf32>
    %150 = tpu.matmul %149, %122, %cst_150 {dimension_numbers = #tpu.dot_dimension_numbers<[1], [0], [0], [1], [0, 0, 1, 1], [], []>} : vector<4x16xf32>, vector<16x2xf32>, vector<4x2xf32> -> vector<4x2xf32>
    %151 = vector.shape_cast %150 : vector<4x2xf32> to vector<2x2x2xf32>
    %152 = vector.broadcast %121 : vector<2x1x1xf32> to vector<2x2x2xf32>
    %153 = arith.addf %151, %152 : vector<2x2x2xf32>
    %cst_151 = arith.constant 0.000000e+00 : f32
    %154 = vector.broadcast %cst_151 : f32 to vector<2x2x2xf32>
    %155 = arith.maximumf %153, %154 : vector<2x2x2xf32>
    %156 = math.absf %153 : vector<2x2x2xf32>
    %cst_152 = arith.constant 0.000000e+00 : f32
    %157 = vector.broadcast %cst_152 : f32 to vector<2x2x2xf32>
    %158 = arith.subf %157, %156 : vector<2x2x2xf32>
    %159 = math.exp %158 : vector<2x2x2xf32>
    %160 = math.log1p %159 : vector<2x2x2xf32>
    %161 = arith.addf %155, %160 : vector<2x2x2xf32>
    %162 = math.tanh %161 : vector<2x2x2xf32>
    %163 = arith.mulf %153, %162 : vector<2x2x2xf32>
    %164 = vector.extract_strided_slice %163 {offsets = [0, 0, 0], sizes = [2, 1, 2], strides = [1, 1, 1]} : vector<2x2x2xf32> to vector<2x1x2xf32>
    %c0_153 = arith.constant 0 : index
    %c0_154 = arith.constant 0 : index
    %c0_155 = arith.constant 0 : index
    %165 = vector.load %arg6[%c0_153, %c0_154, %c0_155] : memref<2x16x1xf32, #tpu.memory_space<vmem>>, vector<1x16x1xf32>
    %166 = vector.shape_cast %165 : vector<1x16x1xf32> to vector<16x1xf32>
    %167 = vector.shape_cast %166 : vector<16x1xf32> to vector<1x16x1xf32>
    %168 = vector.broadcast %164 : vector<2x1x2xf32> to vector<2x16x2xf32>
    %169 = vector.broadcast %167 : vector<1x16x1xf32> to vector<2x16x2xf32>
    %170 = arith.mulf %168, %169 : vector<2x16x2xf32>
    %171 = vector.extract_strided_slice %163 {offsets = [0, 1, 0], sizes = [2, 1, 2], strides = [1, 1, 1]} : vector<2x2x2xf32> to vector<2x1x2xf32>
    %c1_156 = arith.constant 1 : index
    %c0_157 = arith.constant 0 : index
    %c0_158 = arith.constant 0 : index
    %172 = vector.load %arg6[%c1_156, %c0_157, %c0_158] : memref<2x16x1xf32, #tpu.memory_space<vmem>>, vector<1x16x1xf32>
    %173 = vector.shape_cast %172 : vector<1x16x1xf32> to vector<16x1xf32>
    %174 = vector.shape_cast %173 : vector<16x1xf32> to vector<1x16x1xf32>
    %175 = vector.broadcast %171 : vector<2x1x2xf32> to vector<2x16x2xf32>
    %176 = vector.broadcast %174 : vector<1x16x1xf32> to vector<2x16x2xf32>
    %177 = arith.mulf %175, %176 : vector<2x16x2xf32>
    %178 = arith.addf %170, %177 : vector<2x16x2xf32>
    %179 = vector.shape_cast %178 : vector<2x16x2xf32> to vector<32x2xf32>
    %cst_159 = arith.constant dense<0.000000e+00> : vector<32x16xf32>
    %180 = tpu.matmul %179, %123, %cst_159 {dimension_numbers = #tpu.dot_dimension_numbers<[1], [0], [0], [1], [0, 0, 1, 1], [], []>} : vector<32x2xf32>, vector<2x16xf32>, vector<32x16xf32> -> vector<32x16xf32>
    %181 = vector.shape_cast %180 : vector<32x16xf32> to vector<2x16x16xf32>
    %c0_160 = arith.constant 0 : index
    %c8_161 = arith.constant 8 : index
    %c0_162 = arith.constant 0 : index
    %c0_163 = arith.constant 0 : index
    %182 = vector.load %arg13[%c0_160, %c8_161, %c0_162, %c0_163] : memref<1x16x16x16xf32, #tpu.memory_space<vmem>>, vector<1x2x16x16xf32>
    %183 = vector.shape_cast %182 : vector<1x2x16x16xf32> to vector<2x16x16xf32>
    %184 = vector.shape_cast %181 : vector<2x16x16xf32> to vector<1x2x16x16xf32>
    tpu.vector_store %arg13[%c0_160, %c8_161, %c0_162, %c0_163], %184 {strides = array<i32>} : memref<1x16x16x16xf32, #tpu.memory_space<vmem>>, vector<1x2x16x16xf32>,
    %c1_164 = arith.constant 1 : index
    %c0_165 = arith.constant 0 : index
    %c0_166 = arith.constant 0 : index
    %c0_167 = arith.constant 0 : index
    %185 = vector.load %arg14[%c1_164, %c0_165, %c0_166, %c0_167] : memref<4x2x16x16xf32, #tpu.memory_space<vmem>>, vector<1x2x16x16xf32>
    %186 = vector.shape_cast %185 : vector<1x2x16x16xf32> to vector<2x16x16xf32>
    %c1_168 = arith.constant 1 : index
    %c0_169 = arith.constant 0 : index
    %c0_170 = arith.constant 0 : index
    %c0_171 = arith.constant 0 : index
    %187 = vector.load %arg3[%c1_168, %c0_169, %c0_170, %c0_171] : memref<4x2x1x1xf32, #tpu.memory_space<vmem>>, vector<1x2x1x1xf32>
    %188 = vector.shape_cast %187 : vector<1x2x1x1xf32> to vector<2x1x1xf32>
    %c0_172 = arith.constant 0 : index
    %c0_173 = arith.constant 0 : index
    %189 = vector.load %arg7[%c0_172, %c0_173] : memref<16x4xf32, #tpu.memory_space<vmem>>, vector<16x4xf32>
    %c0_174 = arith.constant 0 : index
    %c0_175 = arith.constant 0 : index
    %190 = vector.load %arg8[%c0_174, %c0_175] : memref<4x16xf32, #tpu.memory_space<vmem>>, vector<4x16xf32>
    %191 = vector.shape_cast %186 : vector<2x16x16xf32> to vector<8x4x16xf32>
    %192 = vector.extract_strided_slice %191 {offsets = [0, 0, 0], sizes = [8, 1, 16], strides = [1, 1, 1]} : vector<8x4x16xf32> to vector<8x1x16xf32>
    %193 = vector.shape_cast %192 : vector<8x1x16xf32> to vector<8x16xf32>
    %194 = vector.extract_strided_slice %191 {offsets = [0, 1, 0], sizes = [8, 1, 16], strides = [1, 1, 1]} : vector<8x4x16xf32> to vector<8x1x16xf32>
    %195 = vector.shape_cast %194 : vector<8x1x16xf32> to vector<8x16xf32>
    %196 = arith.addf %193, %195 : vector<8x16xf32>
    %197 = vector.extract_strided_slice %191 {offsets = [0, 2, 0], sizes = [8, 1, 16], strides = [1, 1, 1]} : vector<8x4x16xf32> to vector<8x1x16xf32>
    %198 = vector.shape_cast %197 : vector<8x1x16xf32> to vector<8x16xf32>
    %199 = arith.addf %196, %198 : vector<8x16xf32>
    %200 = vector.extract_strided_slice %191 {offsets = [0, 3, 0], sizes = [8, 1, 16], strides = [1, 1, 1]} : vector<8x4x16xf32> to vector<8x1x16xf32>
    %201 = vector.shape_cast %200 : vector<8x1x16xf32> to vector<8x16xf32>
    %202 = arith.addf %199, %201 : vector<8x16xf32>
    %cst_176 = arith.constant 2.500000e-01 : f32
    %203 = vector.broadcast %cst_176 : f32 to vector<8x16xf32>
    %204 = arith.mulf %202, %203 : vector<8x16xf32>
    %cst_177 = arith.constant dense<0.000000e+00> : vector<8x4xf32>
    %205 = tpu.matmul %204, %189, %cst_177 {dimension_numbers = #tpu.dot_dimension_numbers<[1], [0], [0], [1], [0, 0, 1, 1], [], []>} : vector<8x16xf32>, vector<16x4xf32>, vector<8x4xf32> -> vector<8x4xf32>
    %206 = vector.shape_cast %205 : vector<8x4xf32> to vector<2x4x4xf32>
    %207 = vector.broadcast %188 : vector<2x1x1xf32> to vector<2x4x4xf32>
    %208 = arith.addf %206, %207 : vector<2x4x4xf32>
    %cst_178 = arith.constant 0.000000e+00 : f32
    %209 = vector.broadcast %cst_178 : f32 to vector<2x4x4xf32>
    %210 = arith.maximumf %208, %209 : vector<2x4x4xf32>
    %211 = math.absf %208 : vector<2x4x4xf32>
    %cst_179 = arith.constant 0.000000e+00 : f32
    %212 = vector.broadcast %cst_179 : f32 to vector<2x4x4xf32>
    %213 = arith.subf %212, %211 : vector<2x4x4xf32>
    %214 = math.exp %213 : vector<2x4x4xf32>
    %215 = math.log1p %214 : vector<2x4x4xf32>
    %216 = arith.addf %210, %215 : vector<2x4x4xf32>
    %217 = math.tanh %216 : vector<2x4x4xf32>
    %218 = arith.mulf %208, %217 : vector<2x4x4xf32>
    %219 = vector.extract_strided_slice %218 {offsets = [0, 0, 0], sizes = [2, 1, 4], strides = [1, 1, 1]} : vector<2x4x4xf32> to vector<2x1x4xf32>
    %c0_180 = arith.constant 0 : index
    %c0_181 = arith.constant 0 : index
    %c0_182 = arith.constant 0 : index
    %220 = vector.load %arg9[%c0_180, %c0_181, %c0_182] : memref<4x16x1xf32, #tpu.memory_space<vmem>>, vector<1x16x1xf32>
    %221 = vector.shape_cast %220 : vector<1x16x1xf32> to vector<16x1xf32>
    %222 = vector.shape_cast %221 : vector<16x1xf32> to vector<1x16x1xf32>
    %223 = vector.broadcast %219 : vector<2x1x4xf32> to vector<2x16x4xf32>
    %224 = vector.broadcast %222 : vector<1x16x1xf32> to vector<2x16x4xf32>
    %225 = arith.mulf %223, %224 : vector<2x16x4xf32>
    %226 = vector.extract_strided_slice %218 {offsets = [0, 1, 0], sizes = [2, 1, 4], strides = [1, 1, 1]} : vector<2x4x4xf32> to vector<2x1x4xf32>
    %c1_183 = arith.constant 1 : index
    %c0_184 = arith.constant 0 : index
    %c0_185 = arith.constant 0 : index
    %227 = vector.load %arg9[%c1_183, %c0_184, %c0_185] : memref<4x16x1xf32, #tpu.memory_space<vmem>>, vector<1x16x1xf32>
    %228 = vector.shape_cast %227 : vector<1x16x1xf32> to vector<16x1xf32>
    %229 = vector.shape_cast %228 : vector<16x1xf32> to vector<1x16x1xf32>
    %230 = vector.broadcast %226 : vector<2x1x4xf32> to vector<2x16x4xf32>
    %231 = vector.broadcast %229 : vector<1x16x1xf32> to vector<2x16x4xf32>
    %232 = arith.mulf %230, %231 : vector<2x16x4xf32>
    %233 = arith.addf %225, %232 : vector<2x16x4xf32>
    %234 = vector.extract_strided_slice %218 {offsets = [0, 2, 0], sizes = [2, 1, 4], strides = [1, 1, 1]} : vector<2x4x4xf32> to vector<2x1x4xf32>
    %c2_186 = arith.constant 2 : index
    %c0_187 = arith.constant 0 : index
    %c0_188 = arith.constant 0 : index
    %235 = vector.load %arg9[%c2_186, %c0_187, %c0_188] : memref<4x16x1xf32, #tpu.memory_space<vmem>>, vector<1x16x1xf32>
    %236 = vector.shape_cast %235 : vector<1x16x1xf32> to vector<16x1xf32>
    %237 = vector.shape_cast %236 : vector<16x1xf32> to vector<1x16x1xf32>
    %238 = vector.broadcast %234 : vector<2x1x4xf32> to vector<2x16x4xf32>
    %239 = vector.broadcast %237 : vector<1x16x1xf32> to vector<2x16x4xf32>
    %240 = arith.mulf %238, %239 : vector<2x16x4xf32>
    %241 = arith.addf %233, %240 : vector<2x16x4xf32>
    %242 = vector.extract_strided_slice %218 {offsets = [0, 3, 0], sizes = [2, 1, 4], strides = [1, 1, 1]} : vector<2x4x4xf32> to vector<2x1x4xf32>
    %c3_189 = arith.constant 3 : index
    %c0_190 = arith.constant 0 : index
    %c0_191 = arith.constant 0 : index
    %243 = vector.load %arg9[%c3_189, %c0_190, %c0_191] : memref<4x16x1xf32, #tpu.memory_space<vmem>>, vector<1x16x1xf32>
    %244 = vector.shape_cast %243 : vector<1x16x1xf32> to vector<16x1xf32>
    %245 = vector.shape_cast %244 : vector<16x1xf32> to vector<1x16x1xf32>
    %246 = vector.broadcast %242 : vector<2x1x4xf32> to vector<2x16x4xf32>
    %247 = vector.broadcast %245 : vector<1x16x1xf32> to vector<2x16x4xf32>
    %248 = arith.mulf %246, %247 : vector<2x16x4xf32>
    %249 = arith.addf %241, %248 : vector<2x16x4xf32>
    %250 = vector.shape_cast %249 : vector<2x16x4xf32> to vector<32x4xf32>
    %cst_192 = arith.constant dense<0.000000e+00> : vector<32x16xf32>
    %251 = tpu.matmul %250, %190, %cst_192 {dimension_numbers = #tpu.dot_dimension_numbers<[1], [0], [0], [1], [0, 0, 1, 1], [], []>} : vector<32x4xf32>, vector<4x16xf32>, vector<32x16xf32> -> vector<32x16xf32>
    %252 = vector.shape_cast %251 : vector<32x16xf32> to vector<2x16x16xf32>
    %c0_193 = arith.constant 0 : index
    %c10_194 = arith.constant 10 : index
    %c0_195 = arith.constant 0 : index
    %c0_196 = arith.constant 0 : index
    %253 = vector.load %arg13[%c0_193, %c10_194, %c0_195, %c0_196] : memref<1x16x16x16xf32, #tpu.memory_space<vmem>>, vector<1x2x16x16xf32>
    %254 = vector.shape_cast %253 : vector<1x2x16x16xf32> to vector<2x16x16xf32>
    %255 = vector.shape_cast %252 : vector<2x16x16xf32> to vector<1x2x16x16xf32>
    tpu.vector_store %arg13[%c0_193, %c10_194, %c0_195, %c0_196], %255 {strides = array<i32>} : memref<1x16x16x16xf32, #tpu.memory_space<vmem>>, vector<1x2x16x16xf32>,
    %c2_197 = arith.constant 2 : index
    %c0_198 = arith.constant 0 : index
    %c0_199 = arith.constant 0 : index
    %c0_200 = arith.constant 0 : index
    %256 = vector.load %arg14[%c2_197, %c0_198, %c0_199, %c0_200] : memref<4x2x16x16xf32, #tpu.memory_space<vmem>>, vector<1x2x16x16xf32>
    %257 = vector.shape_cast %256 : vector<1x2x16x16xf32> to vector<2x16x16xf32>
    %c2_201 = arith.constant 2 : index
    %c0_202 = arith.constant 0 : index
    %c0_203 = arith.constant 0 : index
    %c0_204 = arith.constant 0 : index
    %258 = vector.load %arg3[%c2_201, %c0_202, %c0_203, %c0_204] : memref<4x2x1x1xf32, #tpu.memory_space<vmem>>, vector<1x2x1x1xf32>
    %259 = vector.shape_cast %258 : vector<1x2x1x1xf32> to vector<2x1x1xf32>
    %c0_205 = arith.constant 0 : index
    %c0_206 = arith.constant 0 : index
    %260 = vector.load %arg10[%c0_205, %c0_206] : memref<16x8xf32, #tpu.memory_space<vmem>>, vector<16x8xf32>
    %c0_207 = arith.constant 0 : index
    %c0_208 = arith.constant 0 : index
    %261 = vector.load %arg11[%c0_207, %c0_208] : memref<8x16xf32, #tpu.memory_space<vmem>>, vector<8x16xf32>
    %262 = vector.shape_cast %257 : vector<2x16x16xf32> to vector<16x2x16xf32>
    %263 = vector.extract_strided_slice %262 {offsets = [0, 0, 0], sizes = [16, 1, 16], strides = [1, 1, 1]} : vector<16x2x16xf32> to vector<16x1x16xf32>
    %264 = vector.shape_cast %263 : vector<16x1x16xf32> to vector<16x16xf32>
    %265 = vector.extract_strided_slice %262 {offsets = [0, 1, 0], sizes = [16, 1, 16], strides = [1, 1, 1]} : vector<16x2x16xf32> to vector<16x1x16xf32>
    %266 = vector.shape_cast %265 : vector<16x1x16xf32> to vector<16x16xf32>
    %267 = arith.addf %264, %266 : vector<16x16xf32>
    %cst_209 = arith.constant 5.000000e-01 : f32
    %268 = vector.broadcast %cst_209 : f32 to vector<16x16xf32>
    %269 = arith.mulf %267, %268 : vector<16x16xf32>
    %cst_210 = arith.constant dense<0.000000e+00> : vector<16x8xf32>
    %270 = tpu.matmul %269, %260, %cst_210 {dimension_numbers = #tpu.dot_dimension_numbers<[1], [0], [0], [1], [0, 0, 1, 1], [], []>} : vector<16x16xf32>, vector<16x8xf32>, vector<16x8xf32> -> vector<16x8xf32>
    %271 = vector.shape_cast %270 : vector<16x8xf32> to vector<2x8x8xf32>
    %272 = vector.broadcast %259 : vector<2x1x1xf32> to vector<2x8x8xf32>
    %273 = arith.addf %271, %272 : vector<2x8x8xf32>
    %cst_211 = arith.constant 0.000000e+00 : f32
    %274 = vector.broadcast %cst_211 : f32 to vector<2x8x8xf32>
    %275 = arith.maximumf %273, %274 : vector<2x8x8xf32>
    %276 = math.absf %273 : vector<2x8x8xf32>
    %cst_212 = arith.constant 0.000000e+00 : f32
    %277 = vector.broadcast %cst_212 : f32 to vector<2x8x8xf32>
    %278 = arith.subf %277, %276 : vector<2x8x8xf32>
    %279 = math.exp %278 : vector<2x8x8xf32>
    %280 = math.log1p %279 : vector<2x8x8xf32>
    %281 = arith.addf %275, %280 : vector<2x8x8xf32>
    %282 = math.tanh %281 : vector<2x8x8xf32>
    %283 = arith.mulf %273, %282 : vector<2x8x8xf32>
    %284 = vector.extract_strided_slice %283 {offsets = [0, 0, 0], sizes = [2, 1, 8], strides = [1, 1, 1]} : vector<2x8x8xf32> to vector<2x1x8xf32>
    %c0_213 = arith.constant 0 : index
    %c0_214 = arith.constant 0 : index
    %c0_215 = arith.constant 0 : index
    %285 = vector.load %arg12[%c0_213, %c0_214, %c0_215] : memref<8x16x1xf32, #tpu.memory_space<vmem>>, vector<1x16x1xf32>
    %286 = vector.shape_cast %285 : vector<1x16x1xf32> to vector<16x1xf32>
    %287 = vector.shape_cast %286 : vector<16x1xf32> to vector<1x16x1xf32>
    %288 = vector.broadcast %284 : vector<2x1x8xf32> to vector<2x16x8xf32>
    %289 = vector.broadcast %287 : vector<1x16x1xf32> to vector<2x16x8xf32>
    %290 = arith.mulf %288, %289 : vector<2x16x8xf32>
    %291 = vector.extract_strided_slice %283 {offsets = [0, 1, 0], sizes = [2, 1, 8], strides = [1, 1, 1]} : vector<2x8x8xf32> to vector<2x1x8xf32>
    %c1_216 = arith.constant 1 : index
    %c0_217 = arith.constant 0 : index
    %c0_218 = arith.constant 0 : index
    %292 = vector.load %arg12[%c1_216, %c0_217, %c0_218] : memref<8x16x1xf32, #tpu.memory_space<vmem>>, vector<1x16x1xf32>
    %293 = vector.shape_cast %292 : vector<1x16x1xf32> to vector<16x1xf32>
    %294 = vector.shape_cast %293 : vector<16x1xf32> to vector<1x16x1xf32>
    %295 = vector.broadcast %291 : vector<2x1x8xf32> to vector<2x16x8xf32>
    %296 = vector.broadcast %294 : vector<1x16x1xf32> to vector<2x16x8xf32>
    %297 = arith.mulf %295, %296 : vector<2x16x8xf32>
    %298 = arith.addf %290, %297 : vector<2x16x8xf32>
    %299 = vector.extract_strided_slice %283 {offsets = [0, 2, 0], sizes = [2, 1, 8], strides = [1, 1, 1]} : vector<2x8x8xf32> to vector<2x1x8xf32>
    %c2_219 = arith.constant 2 : index
    %c0_220 = arith.constant 0 : index
    %c0_221 = arith.constant 0 : index
    %300 = vector.load %arg12[%c2_219, %c0_220, %c0_221] : memref<8x16x1xf32, #tpu.memory_space<vmem>>, vector<1x16x1xf32>
    %301 = vector.shape_cast %300 : vector<1x16x1xf32> to vector<16x1xf32>
    %302 = vector.shape_cast %301 : vector<16x1xf32> to vector<1x16x1xf32>
    %303 = vector.broadcast %299 : vector<2x1x8xf32> to vector<2x16x8xf32>
    %304 = vector.broadcast %302 : vector<1x16x1xf32> to vector<2x16x8xf32>
    %305 = arith.mulf %303, %304 : vector<2x16x8xf32>
    %306 = arith.addf %298, %305 : vector<2x16x8xf32>
    %307 = vector.extract_strided_slice %283 {offsets = [0, 3, 0], sizes = [2, 1, 8], strides = [1, 1, 1]} : vector<2x8x8xf32> to vector<2x1x8xf32>
    %c3_222 = arith.constant 3 : index
    %c0_223 = arith.constant 0 : index
    %c0_224 = arith.constant 0 : index
    %308 = vector.load %arg12[%c3_222, %c0_223, %c0_224] : memref<8x16x1xf32, #tpu.memory_space<vmem>>, vector<1x16x1xf32>
    %309 = vector.shape_cast %308 : vector<1x16x1xf32> to vector<16x1xf32>
    %310 = vector.shape_cast %309 : vector<16x1xf32> to vector<1x16x1xf32>
    %311 = vector.broadcast %307 : vector<2x1x8xf32> to vector<2x16x8xf32>
    %312 = vector.broadcast %310 : vector<1x16x1xf32> to vector<2x16x8xf32>
    %313 = arith.mulf %311, %312 : vector<2x16x8xf32>
    %314 = arith.addf %306, %313 : vector<2x16x8xf32>
    %315 = vector.extract_strided_slice %283 {offsets = [0, 4, 0], sizes = [2, 1, 8], strides = [1, 1, 1]} : vector<2x8x8xf32> to vector<2x1x8xf32>
    %c4_225 = arith.constant 4 : index
    %c0_226 = arith.constant 0 : index
    %c0_227 = arith.constant 0 : index
    %316 = vector.load %arg12[%c4_225, %c0_226, %c0_227] : memref<8x16x1xf32, #tpu.memory_space<vmem>>, vector<1x16x1xf32>
    %317 = vector.shape_cast %316 : vector<1x16x1xf32> to vector<16x1xf32>
    %318 = vector.shape_cast %317 : vector<16x1xf32> to vector<1x16x1xf32>
    %319 = vector.broadcast %315 : vector<2x1x8xf32> to vector<2x16x8xf32>
    %320 = vector.broadcast %318 : vector<1x16x1xf32> to vector<2x16x8xf32>
    %321 = arith.mulf %319, %320 : vector<2x16x8xf32>
    %322 = arith.addf %314, %321 : vector<2x16x8xf32>
    %323 = vector.extract_strided_slice %283 {offsets = [0, 5, 0], sizes = [2, 1, 8], strides = [1, 1, 1]} : vector<2x8x8xf32> to vector<2x1x8xf32>
    %c5_228 = arith.constant 5 : index
    %c0_229 = arith.constant 0 : index
    %c0_230 = arith.constant 0 : index
    %324 = vector.load %arg12[%c5_228, %c0_229, %c0_230] : memref<8x16x1xf32, #tpu.memory_space<vmem>>, vector<1x16x1xf32>
    %325 = vector.shape_cast %324 : vector<1x16x1xf32> to vector<16x1xf32>
    %326 = vector.shape_cast %325 : vector<16x1xf32> to vector<1x16x1xf32>
    %327 = vector.broadcast %323 : vector<2x1x8xf32> to vector<2x16x8xf32>
    %328 = vector.broadcast %326 : vector<1x16x1xf32> to vector<2x16x8xf32>
    %329 = arith.mulf %327, %328 : vector<2x16x8xf32>
    %330 = arith.addf %322, %329 : vector<2x16x8xf32>
    %331 = vector.extract_strided_slice %283 {offsets = [0, 6, 0], sizes = [2, 1, 8], strides = [1, 1, 1]} : vector<2x8x8xf32> to vector<2x1x8xf32>
    %c6_231 = arith.constant 6 : index
    %c0_232 = arith.constant 0 : index
    %c0_233 = arith.constant 0 : index
    %332 = vector.load %arg12[%c6_231, %c0_232, %c0_233] : memref<8x16x1xf32, #tpu.memory_space<vmem>>, vector<1x16x1xf32>
    %333 = vector.shape_cast %332 : vector<1x16x1xf32> to vector<16x1xf32>
    %334 = vector.shape_cast %333 : vector<16x1xf32> to vector<1x16x1xf32>
    %335 = vector.broadcast %331 : vector<2x1x8xf32> to vector<2x16x8xf32>
    %336 = vector.broadcast %334 : vector<1x16x1xf32> to vector<2x16x8xf32>
    %337 = arith.mulf %335, %336 : vector<2x16x8xf32>
    %338 = arith.addf %330, %337 : vector<2x16x8xf32>
    %339 = vector.extract_strided_slice %283 {offsets = [0, 7, 0], sizes = [2, 1, 8], strides = [1, 1, 1]} : vector<2x8x8xf32> to vector<2x1x8xf32>
    %c7_234 = arith.constant 7 : index
    %c0_235 = arith.constant 0 : index
    %c0_236 = arith.constant 0 : index
    %340 = vector.load %arg12[%c7_234, %c0_235, %c0_236] : memref<8x16x1xf32, #tpu.memory_space<vmem>>, vector<1x16x1xf32>
    %341 = vector.shape_cast %340 : vector<1x16x1xf32> to vector<16x1xf32>
    %342 = vector.shape_cast %341 : vector<16x1xf32> to vector<1x16x1xf32>
    %343 = vector.broadcast %339 : vector<2x1x8xf32> to vector<2x16x8xf32>
    %344 = vector.broadcast %342 : vector<1x16x1xf32> to vector<2x16x8xf32>
    %345 = arith.mulf %343, %344 : vector<2x16x8xf32>
    %346 = arith.addf %338, %345 : vector<2x16x8xf32>
    %347 = vector.shape_cast %346 : vector<2x16x8xf32> to vector<32x8xf32>
    %cst_237 = arith.constant dense<0.000000e+00> : vector<32x16xf32>
    %348 = tpu.matmul %347, %261, %cst_237 {dimension_numbers = #tpu.dot_dimension_numbers<[1], [0], [0], [1], [0, 0, 1, 1], [], []>} : vector<32x8xf32>, vector<8x16xf32>, vector<32x16xf32> -> vector<32x16xf32>
    %349 = vector.shape_cast %348 : vector<32x16xf32> to vector<2x16x16xf32>
    %c0_238 = arith.constant 0 : index
    %c12_239 = arith.constant 12 : index
    %c0_240 = arith.constant 0 : index
    %c0_241 = arith.constant 0 : index
    %350 = vector.load %arg13[%c0_238, %c12_239, %c0_240, %c0_241] : memref<1x16x16x16xf32, #tpu.memory_space<vmem>>, vector<1x2x16x16xf32>
    %351 = vector.shape_cast %350 : vector<1x2x16x16xf32> to vector<2x16x16xf32>
    %352 = vector.shape_cast %349 : vector<2x16x16xf32> to vector<1x2x16x16xf32>
    tpu.vector_store %arg13[%c0_238, %c12_239, %c0_240, %c0_241], %352 {strides = array<i32>} : memref<1x16x16x16xf32, #tpu.memory_space<vmem>>, vector<1x2x16x16xf32>,
    %c3_242 = arith.constant 3 : index
    %c0_243 = arith.constant 0 : index
    %c0_244 = arith.constant 0 : index
    %c0_245 = arith.constant 0 : index
    %353 = vector.load %arg14[%c3_242, %c0_243, %c0_244, %c0_245] : memref<4x2x16x16xf32, #tpu.memory_space<vmem>>, vector<1x2x16x16xf32>
    %354 = vector.shape_cast %353 : vector<1x2x16x16xf32> to vector<2x16x16xf32>
    %c3_246 = arith.constant 3 : index
    %c0_247 = arith.constant 0 : index
    %c0_248 = arith.constant 0 : index
    %c0_249 = arith.constant 0 : index
    %355 = vector.load %arg3[%c3_246, %c0_247, %c0_248, %c0_249] : memref<4x2x1x1xf32, #tpu.memory_space<vmem>>, vector<1x2x1x1xf32>
    %356 = vector.shape_cast %355 : vector<1x2x1x1xf32> to vector<2x1x1xf32>
    %357 = vector.broadcast %356 : vector<2x1x1xf32> to vector<2x16x16xf32>
    %358 = arith.addf %354, %357 : vector<2x16x16xf32>
    %cst_250 = arith.constant 0.000000e+00 : f32
    %359 = vector.broadcast %cst_250 : f32 to vector<2x16x16xf32>
    %360 = arith.maximumf %358, %359 : vector<2x16x16xf32>
    %361 = math.absf %358 : vector<2x16x16xf32>
    %cst_251 = arith.constant 0.000000e+00 : f32
    %362 = vector.broadcast %cst_251 : f32 to vector<2x16x16xf32>
    %363 = arith.subf %362, %361 : vector<2x16x16xf32>
    %364 = math.exp %363 : vector<2x16x16xf32>
    %365 = math.log1p %364 : vector<2x16x16xf32>
    %366 = arith.addf %360, %365 : vector<2x16x16xf32>
    %367 = math.tanh %366 : vector<2x16x16xf32>
    %368 = arith.mulf %358, %367 : vector<2x16x16xf32>
    %c0_252 = arith.constant 0 : index
    %c14_253 = arith.constant 14 : index
    %c0_254 = arith.constant 0 : index
    %c0_255 = arith.constant 0 : index
    %369 = vector.load %arg13[%c0_252, %c14_253, %c0_254, %c0_255] : memref<1x16x16x16xf32, #tpu.memory_space<vmem>>, vector<1x2x16x16xf32>
    %370 = vector.shape_cast %369 : vector<1x2x16x16xf32> to vector<2x16x16xf32>
    %371 = vector.shape_cast %368 : vector<2x16x16xf32> to vector<1x2x16x16xf32>
    tpu.vector_store %arg13[%c0_252, %c14_253, %c0_254, %c0_255], %371 {strides = array<i32>} : memref<1x16x16x16xf32, #tpu.memory_space<vmem>>, vector<1x2x16x16xf32>,
    return
  }
  func.func @transform_0(%arg0: i32) -> (i32, i32, i32, i32) {
    %c0_i32 = arith.constant 0 : i32
    %c0_i32_0 = arith.constant 0 : i32
    %c0_i32_1 = arith.constant 0 : i32
    %c0_i32_2 = arith.constant 0 : i32
    return %arg0, %c0_i32, %c0_i32_0, %c0_i32_1 : i32, i32, i32, i32
  }
  func.func @transform_1(%arg0: i32) -> (i32, i32) {
    %c0_i32 = arith.constant 0 : i32
    %c0_i32_0 = arith.constant 0 : i32
    %c0_i32_1 = arith.constant 0 : i32
    return %c0_i32, %c0_i32_0 : i32, i32
  }
  func.func @transform_2(%arg0: i32) -> (i32, i32, i32, i32) {
    %c0_i32 = arith.constant 0 : i32
    %c0_i32_0 = arith.constant 0 : i32
    %c0_i32_1 = arith.constant 0 : i32
    %c0_i32_2 = arith.constant 0 : i32
    %c0_i32_3 = arith.constant 0 : i32
    return %c0_i32, %c0_i32_0, %c0_i32_1, %c0_i32_2 : i32, i32, i32, i32
  }
  func.func @transform_3(%arg0: i32) -> (i32, i32) {
    %c0_i32 = arith.constant 0 : i32
    %c0_i32_0 = arith.constant 0 : i32
    %c0_i32_1 = arith.constant 0 : i32
    return %c0_i32, %c0_i32_0 : i32, i32
  }
  func.func @transform_4(%arg0: i32) -> (i32, i32) {
    %c0_i32 = arith.constant 0 : i32
    %c0_i32_0 = arith.constant 0 : i32
    %c0_i32_1 = arith.constant 0 : i32
    return %c0_i32, %c0_i32_0 : i32, i32
  }
  func.func @transform_5(%arg0: i32) -> (i32, i32, i32) {
    %c0_i32 = arith.constant 0 : i32
    %c0_i32_0 = arith.constant 0 : i32
    %c0_i32_1 = arith.constant 0 : i32
    %c0_i32_2 = arith.constant 0 : i32
    return %c0_i32, %c0_i32_0, %c0_i32_1 : i32, i32, i32
  }
  func.func @transform_6(%arg0: i32) -> (i32, i32) {
    %c0_i32 = arith.constant 0 : i32
    %c0_i32_0 = arith.constant 0 : i32
    %c0_i32_1 = arith.constant 0 : i32
    return %c0_i32, %c0_i32_0 : i32, i32
  }
  func.func @transform_7(%arg0: i32) -> (i32, i32) {
    %c0_i32 = arith.constant 0 : i32
    %c0_i32_0 = arith.constant 0 : i32
    %c0_i32_1 = arith.constant 0 : i32
    return %c0_i32, %c0_i32_0 : i32, i32
  }
  func.func @transform_8(%arg0: i32) -> (i32, i32, i32) {
    %c0_i32 = arith.constant 0 : i32
    %c0_i32_0 = arith.constant 0 : i32
    %c0_i32_1 = arith.constant 0 : i32
    %c0_i32_2 = arith.constant 0 : i32
    return %c0_i32, %c0_i32_0, %c0_i32_1 : i32, i32, i32
  }
  func.func @transform_9(%arg0: i32) -> (i32, i32) {
    %c0_i32 = arith.constant 0 : i32
    %c0_i32_0 = arith.constant 0 : i32
    %c0_i32_1 = arith.constant 0 : i32
    return %c0_i32, %c0_i32_0 : i32, i32
  }
  func.func @transform_10(%arg0: i32) -> (i32, i32) {
    %c0_i32 = arith.constant 0 : i32
    %c0_i32_0 = arith.constant 0 : i32
    %c0_i32_1 = arith.constant 0 : i32
    return %c0_i32, %c0_i32_0 : i32, i32
  }
  func.func @transform_11(%arg0: i32) -> (i32, i32, i32) {
    %c0_i32 = arith.constant 0 : i32
    %c0_i32_0 = arith.constant 0 : i32
    %c0_i32_1 = arith.constant 0 : i32
    %c0_i32_2 = arith.constant 0 : i32
    return %c0_i32, %c0_i32_0, %c0_i32_1 : i32, i32, i32
  }
  func.func @transform_12(%arg0: i32) -> (i32, i32, i32, i32) {
    %c0_i32 = arith.constant 0 : i32
    %c0_i32_0 = arith.constant 0 : i32
    %c0_i32_1 = arith.constant 0 : i32
    %c0_i32_2 = arith.constant 0 : i32
    return %arg0, %c0_i32, %c0_i32_0, %c0_i32_1 : i32, i32, i32, i32
  }
}

</mosaic_0001>

<bundles_post_ra>
// kernel: tpu_custom_call.1
= control target key start
LH: loop header
LB: loop body
LE: loop exit
PB: predicated region body
PF: predicated region fallthrough
CT: control target
= control target key end

     0   :  { %s6926_s0 = inlined_call_operand.vmem [shape: f32[2,8,16,16], index: 0, kind: input, shape index: {}]   ;;  %s6927_s1 = inlined_call_operand.vmem [shape: f32[8,8], index: 1, kind: input, shape index: {}]   ;;  %s6928_s2 = inlined_call_operand.vmem [shape: f32[4,2,1,1], index: 2, kind: input, shape index: {}]   ;;  %s6929_s3 = inlined_call_operand.vmem [shape: f32[16,2], index: 3, kind: input, shape index: {}]   ;;  %s6930_s4 = inlined_call_operand.vmem [shape: f32[2,16], index: 4, kind: input, shape index: {}]   ;;  %s6931_s5 = inlined_call_operand.vmem [shape: f32[2,16,1], index: 5, kind: input, shape index: {}]   ;;  %s6932_s6 = inlined_call_operand.vmem [shape: f32[16,4], index: 6, kind: input, shape index: {}]   ;;  %s6933_s7 = inlined_call_operand.vmem [shape: f32[4,16], index: 7, kind: input, shape index: {}]   ;;  %s6934_s8 = inlined_call_operand.vmem [shape: f32[4,16,1], index: 8, kind: input, shape index: {}]   ;;  %s6935_s9 = inlined_call_operand.vmem [shape: f32[16,8], index: 9, kind: input, shape index: {}]   ;;  %s6936_s10 = inlined_call_operand.vmem [shape: f32[8,16], index: 10, kind: input, shape index: {}]   ;;  %s6937_s11 = inlined_call_operand.vmem [shape: f32[8,16,1], index: 11, kind: input, shape index: {}]   ;;  %s6938_s12 = inlined_call_operand.hbm [shape: f32[2,16,16,16], index: 12, kind: output, shape index: {}]  }
   0x1   :  { %6958 = sst [smem:[#allocation25_spill]] %s6926_s0 }
   0x2   :  { %17 = vsyncpa [#allocation4], 0 }
   0x3   :  { %19 = vsyncpa [#allocation4 + $0x1], 0  ;;  %s5560_s21 = smov 0   ;;  %s5562_s22 = smov 0  }
   0x4   :  { %s5564_s23 = smov 0   ;;  %s5566_s24 = smov 0  }
   0x5 LB: > { %s5581_s25 = sadd.s32 4294967295, %s5484_s24   ;;  %s4973_s26 = sadd.s32 4294967294, %s5484_s24   ;;  %s5484_s24 = sphi %s5566_s24, %s7017_s24   ;;  %s5480_s23 = sphi %s5564_s23, %s7016_s23   ;;  %s5476_s22 = sphi %s5562_s22, %s7015_s22   ;;  %s5472_s21 = sphi %s5560_s21, %s7014_s21  }
   0x6   : > { %s5585_s27 = sadd.s32 1, %s5484_s24   ;;  %s289_s28 = sadd.s32 1, %s5480_s23 }
   0x7   : > { %s286_s29 = ssub.s32 %s5484_s24, %s5585_s27  ;;  %p299_p0 = scmp.ne.s32.totalorder %s5480_s23, %s5476_s22 }
   0x8   : > { %p287_p1 = scmp.eq.s32.totalorder %s286_s29, 0  ;;  %p300_p2 = scmp.eq.s32.totalorder %s5581_s25, 1 }
   0x9   : > { %p305_p3 = scmp.ne.s32.totalorder %s5476_s22, %s5472_s21  ;;  %p306_p4 = scmp.eq.s32.totalorder %s4973_s26, 1 }
   0xa   : > { %s5596_s30 = scalar_select %p287_p1, %s5480_s23, %s289_s28  }
   0xb   : > { %p5598_p5 = por %p300_p2, %p299_p0  ;;  %p5602_p6 = por %p306_p4, %p305_p3 }
   0xc   : > { %p4976_p7 = scmp.ge.s32.totalorder %s5484_s24, 1  ;;  %p365_p8 = scmp.lt.s32.totalorder %s5484_s24, 3 }
   0xe   : > { %p366_p9 = pnand %p4976_p7, %p365_p8 }
  0x10   : > { %369 = sbr.rel (%p366_p9) target bundleno = 1151 (0x47f), region = 68 }
  0x17   : > { %p407_p10 = scmp.lt.s32.totalorder %s5581_s25, 1  ;;  %v6939_v0 = vmov 0.0   ;;  %v4997_v1 = vld [vmem:[%s6928_s2] ss:$0 sm:$0xff]  ;;  %vm5487_vm0 = vmmov 0   ;;  %vm463_vm1 = vcmask 1041409  }
  0x18   : > { %5170 = vmatprep.subr.mxu0 %v6939_v0  ;;  %5175 = vmatprep.subr.mxu1 %v6939_v0  ;;  %v3378_v2 = vld [vmem:[%s6931_s5] sm:$0xff]  ;;  %vm466_vm2 = vcmask 1042434   ;;  %vm469_vm3 = vcmask 1043459   ;;  %vm472_vm4 = vcmask 1044484   ;;  %v5488_v3 = vmov 0   ;;  %s6961_s0 = sld [smem:[#allocation25_spill]] }
  0x19   : > { %s408_s15 = scalar_select %p407_p10, %s5581_s25, 1  ;;  %5172 = vmatprep.mubr.msk.f32.mxu0 %vm5487_vm0, %v6939_v0  ;;  %5177 = vmatprep.mubr.msk.f32.mxu1 %vm5487_vm0, %v6939_v0  ;;  %vm475_vm5 = vcmask 1045509   ;;  %vm478_vm6 = vcmask 1046534   ;;  %vm481_vm7 = vcmask 1047559   ;;  %v4998_v4 = vld [vmem:[%s6928_s2 + $0x1] ss:$0 sm:$0xff] }
  0x1a   : > { %5352 = vset.pattern.permute.xlu0 %v5488_v3  ;;  %5353 = vset.pattern.permute.xlu1 %v5488_v3  ;;  %v4999_v5 = vld [vmem:[%s6931_s5 + $0x10] sm:$0xff]  ;;  %vm484_vm8 = vcmask 64512   ;;  %v3379_v16 = vld [vmem:[%s6931_s5 + $0x8] sm:$0xff]  ;;  %v5000_v21 = vld [vmem:[%s6931_s5 + $0x18] sm:$0xff]  ;;  %vm616_vm9 = vcmask 122880   ;;  %vm428_vm12 = vcmask 130048  }
  0x1b   : > { %s5111_s20 = sshll.u32 %s408_s15, 7  ;;  %3335 = vperm.xlu0 %5352, %v4997_v1   ;;  %3390 = vperm.xlu1 %5353, %v3378_v2   ;;  %v5074_v36 = vld [vmem:[%s6928_s2 + $0x4] ss:$0 sm:$0xff]  ;;  %v5075_v49 = vld [vmem:[%s6928_s2 + $0x5] ss:$0 sm:$0xff]  ;;  %s6957_s26 = sand.u32 1, %s5476_s22  }
  0x1c   : > { %v5665_v41 = vld [vmem:[%s6927_s1] sm:$0xff]  ;;  %s4977_s28 = sshll.u32 %s6957_s26, 8  ;;  %vm3444_vm15 = vcmask 1041408   ;;  %s5112_s16 = sshll.u32 %s5581_s25, 12 }
  0x1d   : > { %v5037_v61 = vld [vmem:[%s6928_s2 + $0x2] ss:$0 sm:$0xff]  ;;  %s6508_s15 = scalar_lea.vmem [#allocation3], %s4977_s28  ;;  %s6875_s19 = scalar_lea.hbm %s6938_s12, %s5112_s16 }
  0x1e   : > { %s5625_s29 = scalar_lea.vmem %s6961_s0, %s5111_s20  ;;  %s4911_s17 = sshll.u32 %s6508_s15, 4  ;;  %s6877_s17 = int_to_ptr.vmem [resolvable:$true] %s4911_s17 }
  0x1f   : > { %v446_v6 = vld [vmem:[%s5625_s29] sm:$0x1]  ;;  %v447_v7 = vld [vmem:[%s5625_s29 + $0x10] sm:$0x1]  ;;  %v625_v20 = vld [vmem:[%s5625_s29 + $0x1] sm:$0x1]  ;;  %3339 = vperm.xlu0 %5352, %v4998_v4   ;;  %3415 = vperm.xlu1 %5353, %v4999_v5  }
  0x20   : > { %v448_v8 = vld [vmem:[%s5625_s29 + $0x20] sm:$0x1]  ;;  %v449_v9 = vld [vmem:[%s5625_s29 + $0x30] sm:$0x1]  ;;  %v462_v14 = vrot.slane %v447_v7, 7  ;;  %s7013_s20 = sand.u32 1, %s5476_s22  }
  0x21   : > { %v450_v10 = vld [vmem:[%s5625_s29 + $0x40] sm:$0x1]  ;;  %v451_v11 = vld [vmem:[%s5625_s29 + $0x50] sm:$0x1]  ;;  %v465_v15 = vrot.slane %v448_v8, 6  ;;  %v468_v17 = vrot.slane %v449_v9, 5 }
  0x22   : > { %v452_v12 = vld [vmem:[%s5625_s29 + $0x60] sm:$0x1]  ;;  %v453_v13 = vld [vmem:[%s5625_s29 + $0x70] sm:$0x1]  ;;  %v471_v18 = vrot.slane %v450_v10, 4  ;;  %v474_v19 = vrot.slane %v451_v11, 3  ;;  %v464_v22 = vsel %vm463_vm1, %v462_v14, %v446_v6 }
  0x23   : > { %v477_v23 = vrot.slane %v452_v12, 2  ;;  %v480_v24 = vrot.slane %v453_v13, 1  ;;  %v626_v25 = vld [vmem:[%s5625_s29 + $0x11] sm:$0x1]  ;;  %v627_v26 = vld [vmem:[%s5625_s29 + $0x21] sm:$0x1]  ;;  %v467_v27 = vsel %vm466_vm2, %v465_v15, %v464_v22  ;;  %3395 = vperm.xlu0 %5352, %v3379_v16   ;;  %3420 = vperm.xlu1 %5353, %v5000_v21  }
  0x24   : > { %v628_v28 = vld [vmem:[%s5625_s29 + $0x31] sm:$0x1]  ;;  %v629_v29 = vld [vmem:[%s5625_s29 + $0x41] sm:$0x1]  ;;  %v470_v31 = vsel %vm469_vm3, %v468_v17, %v467_v27  ;;  %v641_v34 = vrot.slane %v626_v25, 7  ;;  %v643_v35 = vrot.slane %v627_v26, 6 }
  0x25   : > { %v630_v30 = vld [vmem:[%s5625_s29 + $0x51] sm:$0x1]  ;;  %v631_v32 = vld [vmem:[%s5625_s29 + $0x61] sm:$0x1]  ;;  %v473_v37 = vsel %vm472_vm4, %v471_v18, %v470_v31  ;;  %v645_v38 = vrot.slane %v628_v28, 5  ;;  %v647_v39 = vrot.slane %v629_v29, 4 }
  0x26   : > { %v632_v33 = vld [vmem:[%s5625_s29 + $0x71] sm:$0x1]  ;;  %v649_v40 = vrot.slane %v630_v30, 3  ;;  %v792_v42 = vld [vmem:[%s5625_s29 + $0x2] sm:$0x1]  ;;  %v476_v43 = vsel %vm475_vm5, %v474_v19, %v473_v37  ;;  %v642_v44 = vsel %vm463_vm1, %v641_v34, %v625_v20  ;;  %v651_v45 = vrot.slane %v631_v32, 2 }
  0x27   : > { %v653_v46 = vrot.slane %v632_v33, 1  ;;  %v793_v47 = vld [vmem:[%s5625_s29 + $0x12] sm:$0x1]  ;;  %v794_v48 = vld [vmem:[%s5625_s29 + $0x22] sm:$0x1]  ;;  %v479_v50 = vsel %vm478_vm6, %v477_v23, %v476_v43  ;;  %v644_v51 = vsel %vm466_vm2, %v643_v35, %v642_v44  ;;  %4422 = vperm.xlu0 %5352, %v5074_v36   ;;  %4426 = vperm.xlu1 %5353, %v5075_v49   ;;  %s6885_s28 = scalar_lea.sflag [#allocation4], %s7013_s20 }
  0x28   : > { %v795_v52 = vld [vmem:[%s5625_s29 + $0x32] sm:$0x1]  ;;  %v796_v53 = vld [vmem:[%s5625_s29 + $0x42] sm:$0x1]  ;;  %v482_v55 = vsel %vm481_vm7, %v480_v24, %v479_v50  ;;  %v646_v56 = vsel %vm469_vm3, %v645_v38, %v644_v51  ;;  %v808_v59 = vrot.slane %v793_v47, 7  ;;  %v810_v60 = vrot.slane %v794_v48, 6 }
  0x29   : > { %v797_v54 = vld [vmem:[%s5625_s29 + $0x52] sm:$0x1]  ;;  %v798_v57 = vld [vmem:[%s5625_s29 + $0x62] sm:$0x1]  ;;  %5171 = vmatpush3.msra.mxu0 %v482_v55  ;;  %v648_v62 = vsel %vm472_vm4, %v647_v39, %v646_v56  ;;  %v812_v63 = vrot.slane %v795_v52, 5  ;;  %v814_v1 = vrot.slane %v796_v53, 4 }
  0x2a   : > { %v799_v58 = vld [vmem:[%s5625_s29 + $0x72] sm:$0x1]  ;;  %v816_v2 = vrot.slane %v797_v54, 3  ;;  %v959_v3 = vld [vmem:[%s5625_s29 + $0x3] sm:$0x1]  ;;  %v650_v4 = vsel %vm475_vm5, %v649_v40, %v648_v62  ;;  %5173 = vmatmul.mubr.msk.f32.vlgmr.msra.gmra.mrb[0].mxu0 %vm484_vm8, %v5665_v41  ;;  %5180 = vmatprep.subr.mxu0 %v6939_v0  ;;  %v809_v5 = vsel %vm463_vm1, %v808_v59, %v792_v42  ;;  %v818_v6 = vrot.slane %v798_v57, 2 }
  0x2b   : > { %v820_v7 = vrot.slane %v799_v58, 1  ;;  %v960_v8 = vld [vmem:[%s5625_s29 + $0x13] sm:$0x1]  ;;  %v961_v9 = vld [vmem:[%s5625_s29 + $0x23] sm:$0x1]  ;;  %v652_v11 = vsel %vm478_vm6, %v651_v45, %v650_v4  ;;  %v811_v12 = vsel %vm466_vm2, %v810_v60, %v809_v5  ;;  %5182 = vmatprep.mubr.msk.f32.mxu0 %vm5487_vm0, %v6939_v0  ;;  %3798 = vperm.xlu0 %5352, %v5037_v61   ;;  %v4466_v52 = vld [vmem:[%s6937_s11 + $0x8] sm:$0xff] }
  0x2c   : > { %v5038_v10 = vld [vmem:[%s6928_s2 + $0x3] ss:$0 sm:$0xff]  ;;  %v962_v13 = vld [vmem:[%s5625_s29 + $0x33] sm:$0x1]  ;;  %v654_v16 = vsel %vm481_vm7, %v653_v46, %v652_v11  ;;  %v813_v17 = vsel %vm469_vm3, %v812_v63, %v811_v12  ;;  %v975_v20 = vrot.slane %v960_v8, 7  ;;  %v977_v21 = vrot.slane %v961_v9, 6 }
  0x2d   : > { %v963_v14 = vld [vmem:[%s5625_s29 + $0x43] sm:$0x1]  ;;  %v964_v15 = vld [vmem:[%s5625_s29 + $0x53] sm:$0x1]  ;;  %5176 = vmatpush3.msra.mxu1 %v654_v16  ;;  %v815_v22 = vsel %vm472_vm4, %v814_v1, %v813_v17  ;;  %v979_v23 = vrot.slane %v962_v13, 5  ;;  %3802 = vperm.xlu1 %5353, %v5038_v10   ;;  %v5077_v59 = vld [vmem:[%s6937_s11 + $0x18] sm:$0xff] }
  0x2e   : > { %v965_v18 = vld [vmem:[%s5625_s29 + $0x63] sm:$0x1]  ;;  %v966_v19 = vld [vmem:[%s5625_s29 + $0x73] sm:$0x1]  ;;  %v981_v24 = vrot.slane %v963_v14, 4  ;;  %v983_v25 = vrot.slane %v964_v15, 3  ;;  %5178 = vmatmul.mubr.msk.f32.vlgmr.msra.gmra.mrb[0].mxu1 %vm484_vm8, %v5665_v41  ;;  %5185 = vmatprep.subr.mxu1 %v6939_v0  ;;  %v817_v28 = vsel %vm475_vm5, %v816_v2, %v815_v22  ;;  %v976_v29 = vsel %vm463_vm1, %v975_v20, %v959_v3 }
  0x2f   : > { %v1126_v26 = vld [vmem:[%s5625_s29 + $0x4] sm:$0x1]  ;;  %v985_v30 = vrot.slane %v965_v18, 2  ;;  %v987_v31 = vrot.slane %v966_v19, 1  ;;  %v1127_v32 = vld [vmem:[%s5625_s29 + $0x14] sm:$0x1]  ;;  %v819_v35 = vsel %vm478_vm6, %v818_v6, %v817_v28  ;;  %v978_v36 = vsel %vm466_vm2, %v977_v21, %v976_v29  ;;  %5187 = vmatprep.mubr.msk.f32.mxu1 %vm5487_vm0, %v6939_v0 }
  0x30   : > { %v4465_v27 = vld [vmem:[%s6937_s11] sm:$0xff]  ;;  %v5076_v34 = vld [vmem:[%s6937_s11 + $0x10] sm:$0xff]  ;;  %v821_v40 = vsel %vm481_vm7, %v820_v7, %v819_v35  ;;  %v980_v42 = vsel %vm469_vm3, %v979_v23, %v978_v36  ;;  %v1142_v45 = vrot.slane %v1127_v32, 7  ;;  %v5079_v20 = vld [vmem:[%s6937_s11 + $0x28] sm:$0xff]  ;;  %s5422_s25 = scalar_lea.vmem %s6877_s17, 4096  ;;  %s5492_s0 = smov [#allocation3]  }
  0x31   : > { %v1128_v33 = vld [vmem:[%s5625_s29 + $0x24] sm:$0x1]  ;;  %v1129_v37 = vld [vmem:[%s5625_s29 + $0x34] sm:$0x1]  ;;  %5181 = vmatpush3.msra.mxu0 %v821_v40  ;;  %v982_v47 = vsel %vm472_vm4, %v981_v24, %v980_v42  ;;  %v1293_v51 = vld [vmem:[%s5625_s29 + $0x5] sm:$0x1]  ;;  %4477 = vperm.xlu0 %5352, %v4465_v27   ;;  %p5423_p11 = scmp.ne.s32.totalorder %s6877_s17, %s5422_s25 }
  0x32   : > { %v1130_v38 = vld [vmem:[%s5625_s29 + $0x44] sm:$0x1]  ;;  %v1131_v39 = vld [vmem:[%s5625_s29 + $0x54] sm:$0x1]  ;;  %v1144_v46 = vrot.slane %v1128_v33, 6  ;;  %v1146_v48 = vrot.slane %v1129_v37, 5  ;;  %v984_v53 = vsel %vm475_vm5, %v983_v25, %v982_v47  ;;  %5183 = vmatmul.mubr.msk.f32.vlgmr.msra.gmra.mrb[2].mxu0 %vm484_vm8, %v5665_v41  ;;  %5190 = vmatprep.subr.mxu0 %v6939_v0  ;;  %v1143_v54 = vsel %vm463_vm1, %v1142_v45, %v1126_v26 }
  0x33   : > { %v1132_v43 = vld [vmem:[%s5625_s29 + $0x64] sm:$0x1]  ;;  %v1133_v44 = vld [vmem:[%s5625_s29 + $0x74] sm:$0x1]  ;;  %v1148_v49 = vrot.slane %v1130_v38, 4  ;;  %v1150_v50 = vrot.slane %v1131_v39, 3  ;;  %v986_v60 = vsel %vm478_vm6, %v985_v30, %v984_v53  ;;  %5192 = vmatprep.mubr.msk.f32.mxu0 %vm5487_vm0, %v6939_v0  ;;  %4502 = vperm.xlu1 %5353, %v5076_v34   ;;  %p5424_p12 = pnand %p5423_p11, %p5598_p5 }
  0x34   : > { %v1152_v55 = vrot.slane %v1132_v43, 2  ;;  %v1154_v56 = vrot.slane %v1133_v44, 1  ;;  %v1294_v57 = vld [vmem:[%s5625_s29 + $0x15] sm:$0x1]  ;;  %v1295_v58 = vld [vmem:[%s5625_s29 + $0x25] sm:$0x1]  ;;  %v1145_v61 = vsel %vm466_vm2, %v1144_v46, %v1143_v54  ;;  %v988_v2 = vsel %vm481_vm7, %v987_v31, %v986_v60 }
  0x35   : > { %v1296_v62 = vld [vmem:[%s5625_s29 + $0x35] sm:$0x1]  ;;  %v1297_v63 = vld [vmem:[%s5625_s29 + $0x45] sm:$0x1]  ;;  %v1147_v3 = vsel %vm469_vm3, %v1146_v48, %v1145_v61  ;;  %v1309_v6 = vrot.slane %v1294_v57, 7  ;;  %v1311_v7 = vrot.slane %v1295_v58, 6  ;;  %5186 = vmatpush3.msra.mxu1 %v988_v2  ;;  %4482 = vperm.xlu0 %5352, %v4466_v52   ;;  %p5425_p13 = pneg %p5424_p12 }
  0x36   : > { %v1298_v1 = vld [vmem:[%s5625_s29 + $0x55] sm:$0x1]  ;;  %v1299_v4 = vld [vmem:[%s5625_s29 + $0x65] sm:$0x1]  ;;  %v1149_v8 = vsel %vm472_vm4, %v1148_v49, %v1147_v3  ;;  %v1313_v9 = vrot.slane %v1296_v62, 5  ;;  %v1315_v10 = vrot.slane %v1297_v63, 4  ;;  %5188 = vmatmul.mubr.msk.f32.vlgmr.msra.gmra.mrb[2].mxu1 %vm484_vm8, %v5665_v41  ;;  %5195 = vmatprep.subr.mxu1 %v6939_v0 }
  0x37   : > { %v1300_v5 = vld [vmem:[%s5625_s29 + $0x75] sm:$0x1]  ;;  %v1317_v11 = vrot.slane %v1298_v1, 3  ;;  %v1460_v12 = vld [vmem:[%s5625_s29 + $0x6] sm:$0x1]  ;;  %v1151_v14 = vsel %vm475_vm5, %v1150_v50, %v1149_v8  ;;  %v1310_v15 = vsel %vm463_vm1, %v1309_v6, %v1293_v51  ;;  %v1319_v16 = vrot.slane %v1299_v4, 2  ;;  %5197 = vmatprep.mubr.msk.f32.mxu1 %vm5487_vm0, %v6939_v0  ;;  %4507 = vperm.xlu1 %5353, %v5077_v59  }
  0x38   : > { %v5078_v13 = vld [vmem:[%s6937_s11 + $0x20] sm:$0xff]  ;;  %v1321_v17 = vrot.slane %v1300_v5, 1  ;;  %v1461_v18 = vld [vmem:[%s5625_s29 + $0x16] sm:$0x1]  ;;  %v1153_v21 = vsel %vm478_vm6, %v1152_v55, %v1151_v14  ;;  %v1312_v22 = vsel %vm466_vm2, %v1311_v7, %v1310_v15  ;;  %v1628_v43 = vld [vmem:[%s5625_s29 + $0x17] sm:$0x1] }
  0x39   : > { %v1462_v19 = vld [vmem:[%s5625_s29 + $0x26] sm:$0x1]  ;;  %v1463_v23 = vld [vmem:[%s5625_s29 + $0x36] sm:$0x1]  ;;  %v1155_v26 = vsel %vm481_vm7, %v1154_v56, %v1153_v21  ;;  %v1314_v27 = vsel %vm469_vm3, %v1313_v9, %v1312_v22  ;;  %v1476_v30 = vrot.slane %v1461_v18, 7  ;;  %4531 = vperm.xlu0 %5352, %v5078_v13   ;;  %v5081_v45 = vld [vmem:[%s6937_s11 + $0x38] sm:$0xff] }
  0x3a   : > { %v1464_v24 = vld [vmem:[%s5625_s29 + $0x46] sm:$0x1]  ;;  %v1465_v25 = vld [vmem:[%s5625_s29 + $0x56] sm:$0x1]  ;;  %v1478_v31 = vrot.slane %v1462_v19, 6  ;;  %5191 = vmatpush3.msra.mxu0 %v1155_v26  ;;  %v1316_v32 = vsel %vm472_vm4, %v1315_v10, %v1314_v27  ;;  %v1480_v33 = vrot.slane %v1463_v23, 5 }
  0x3b   : > { %v1466_v28 = vld [vmem:[%s5625_s29 + $0x66] sm:$0x1]  ;;  %v1467_v29 = vld [vmem:[%s5625_s29 + $0x76] sm:$0x1]  ;;  %v1482_v34 = vrot.slane %v1464_v24, 4  ;;  %v1484_v35 = vrot.slane %v1465_v25, 3  ;;  %v1318_v38 = vsel %vm475_vm5, %v1317_v11, %v1316_v32  ;;  %5193 = vmatmul.mubr.msk.f32.vlgmr.msra.gmra.mrb[4].mxu0 %vm484_vm8, %v5665_v41  ;;  %5200 = vmatprep.subr.mxu0 %v6939_v0  ;;  %v1477_v39 = vsel %vm463_vm1, %v1476_v30, %v1460_v12 }
  0x3c   : > { %v1627_v36 = vld [vmem:[%s5625_s29 + $0x7] sm:$0x1]  ;;  %v5080_v37 = vld [vmem:[%s6937_s11 + $0x30] sm:$0xff]  ;;  %v1486_v40 = vrot.slane %v1466_v28, 2  ;;  %v1488_v42 = vrot.slane %v1467_v29, 1  ;;  %v1320_v46 = vsel %vm478_vm6, %v1319_v16, %v1318_v38  ;;  %v1479_v47 = vsel %vm466_vm2, %v1478_v31, %v1477_v39  ;;  %5202 = vmatprep.mubr.msk.f32.mxu0 %vm5487_vm0, %v6939_v0  ;;  %4536 = vperm.xlu1 %5353, %v5079_v20   ;;  %v5083_v6 = vld [vmem:[%s6937_s11 + $0x48] sm:$0xff] }
  0x3d   : > { %v1629_v44 = vld [vmem:[%s5625_s29 + $0x27] sm:$0x1]  ;;  %v1630_v48 = vld [vmem:[%s5625_s29 + $0x37] sm:$0x1]  ;;  %v1322_v51 = vsel %vm481_vm7, %v1321_v17, %v1320_v46  ;;  %v1481_v52 = vsel %vm469_vm3, %v1480_v33, %v1479_v47  ;;  %v1643_v55 = vrot.slane %v1628_v43, 7  ;;  %4560 = vperm.xlu0 %5352, %v5080_v37   ;;  %s5426_s26 = sshll.u32 %s5492_s0, 4  ;;  %s5427_s26 = int_to_ptr.vmem [resolvable:$false] %s5426_s26 }
  0x3e   : > { %v1631_v49 = vld [vmem:[%s5625_s29 + $0x47] sm:$0x1]  ;;  %v1632_v50 = vld [vmem:[%s5625_s29 + $0x57] sm:$0x1]  ;;  %v1645_v56 = vrot.slane %v1629_v44, 6  ;;  %5196 = vmatpush3.msra.mxu1 %v1322_v51  ;;  %v1483_v57 = vsel %vm472_vm4, %v1482_v34, %v1481_v52  ;;  %v1647_v58 = vrot.slane %v1630_v48, 5  ;;  %p5429_p0 = scmp.lt.s32.totalorder %s6877_s17, %s5427_s26 }
  0x3f   : > { %v1633_v53 = vld [vmem:[%s5625_s29 + $0x67] sm:$0x1]  ;;  %v1634_v54 = vld [vmem:[%s5625_s29 + $0x77] sm:$0x1]  ;;  %v1649_v59 = vrot.slane %v1631_v49, 4  ;;  %v1651_v60 = vrot.slane %v1632_v50, 3  ;;  %5198 = vmatmul.mubr.msk.f32.vlgmr.msra.gmra.mrb[4].mxu1 %vm484_vm8, %v5665_v41  ;;  %5205 = vmatprep.subr.mxu1 %v6939_v0  ;;  %v1485_v63 = vsel %vm475_vm5, %v1484_v35, %v1483_v57  ;;  %v1644_v1 = vsel %vm463_vm1, %v1643_v55, %v1627_v36 }
  0x40   : > { %v1794_v61 = vld [vmem:[%s5625_s29 + $0x8] sm:$0x1]  ;;  %v5082_v62 = vld [vmem:[%s6937_s11 + $0x40] sm:$0xff]  ;;  %v1653_v2 = vrot.slane %v1633_v53, 2  ;;  %v1655_v3 = vrot.slane %v1634_v54, 1  ;;  %v1487_v7 = vsel %vm478_vm6, %v1486_v40, %v1485_v63  ;;  %v1646_v8 = vsel %vm466_vm2, %v1645_v56, %v1644_v1  ;;  %5207 = vmatprep.mubr.msk.f32.mxu1 %vm5487_vm0, %v6939_v0  ;;  %4565 = vperm.xlu1 %5353, %v5081_v45   ;;  %v5039_v47 = vld [vmem:[%s6934_s8 + $0x10] sm:$0xff] }
  0x41   : > { %v1795_v4 = vld [vmem:[%s5625_s29 + $0x18] sm:$0x1]  ;;  %v1796_v5 = vld [vmem:[%s5625_s29 + $0x28] sm:$0x1]  ;;  %v1489_v12 = vsel %vm481_vm7, %v1488_v42, %v1487_v7  ;;  %v1648_v13 = vsel %vm469_vm3, %v1647_v58, %v1646_v8  ;;  %v1961_v22 = vld [vmem:[%s5625_s29 + $0x9] sm:$0x1]  ;;  %4589 = vperm.xlu0 %5352, %v5082_v62  }
  0x42   : > { %v1797_v9 = vld [vmem:[%s5625_s29 + $0x38] sm:$0x1]  ;;  %v1798_v10 = vld [vmem:[%s5625_s29 + $0x48] sm:$0x1]  ;;  %v1810_v16 = vrot.slane %v1795_v4, 7  ;;  %v1812_v17 = vrot.slane %v1796_v5, 6  ;;  %5201 = vmatpush3.msra.mxu0 %v1489_v12  ;;  %v1650_v18 = vsel %vm472_vm4, %v1649_v59, %v1648_v13 }
  0x43   : > { %v1799_v11 = vld [vmem:[%s5625_s29 + $0x58] sm:$0x1]  ;;  %v1800_v14 = vld [vmem:[%s5625_s29 + $0x68] sm:$0x1]  ;;  %v1814_v19 = vrot.slane %v1797_v9, 5  ;;  %v1816_v20 = vrot.slane %v1798_v10, 4  ;;  %v1652_v24 = vsel %vm475_vm5, %v1651_v60, %v1650_v18  ;;  %5203 = vmatmul.mubr.msk.f32.vlgmr.msra.gmra.mrb[6].mxu0 %vm484_vm8, %v5665_v41  ;;  %5210 = vmatprep.subr.mxu0 %v6939_v0 }
  0x44   : > { %v1801_v15 = vld [vmem:[%s5625_s29 + $0x78] sm:$0x1]  ;;  %v1818_v21 = vrot.slane %v1799_v11, 3  ;;  %v3841_v23 = vld [vmem:[%s6934_s8] sm:$0xff]  ;;  %v1811_v25 = vsel %vm463_vm1, %v1810_v16, %v1794_v61  ;;  %v1820_v26 = vrot.slane %v1800_v14, 2  ;;  %v1654_v30 = vsel %vm478_vm6, %v1653_v2, %v1652_v24  ;;  %5212 = vmatprep.mubr.msk.f32.mxu0 %vm5487_vm0, %v6939_v0  ;;  %4594 = vperm.xlu1 %5353, %v5083_v6   ;;  %v5084_v7 = vld [vmem:[%s6937_s11 + $0x50] sm:$0xff] }
  0x45   : > { %v1822_v27 = vrot.slane %v1801_v15, 1  ;;  %v1962_v28 = vld [vmem:[%s5625_s29 + $0x19] sm:$0x1]  ;;  %v1963_v29 = vld [vmem:[%s5625_s29 + $0x29] sm:$0x1]  ;;  %v1813_v31 = vsel %vm466_vm2, %v1812_v17, %v1811_v25  ;;  %v1656_v35 = vsel %vm481_vm7, %v1655_v3, %v1654_v30  ;;  %3853 = vperm.xlu0 %5352, %v3841_v23   ;;  %s5428_s16 = scalar_lea.vmem %s5427_s26, 8192 }
  0x46   : > { %v1964_v32 = vld [vmem:[%s5625_s29 + $0x39] sm:$0x1]  ;;  %v1965_v33 = vld [vmem:[%s5625_s29 + $0x49] sm:$0x1]  ;;  %v1815_v36 = vsel %vm469_vm3, %v1814_v19, %v1813_v31  ;;  %v1977_v39 = vrot.slane %v1962_v28, 7  ;;  %v1979_v40 = vrot.slane %v1963_v29, 6  ;;  %5206 = vmatpush3.msra.mxu1 %v1656_v35  ;;  %p5430_p1 = scmp.lt.s32.totalorder %s5428_s16, %s5422_s25 }
  0x47   : > { %v1966_v34 = vld [vmem:[%s5625_s29 + $0x59] sm:$0x1]  ;;  %v1967_v37 = vld [vmem:[%s5625_s29 + $0x69] sm:$0x1]  ;;  %v1817_v42 = vsel %vm472_vm4, %v1816_v20, %v1815_v36  ;;  %v1981_v43 = vrot.slane %v1964_v32, 5  ;;  %v1983_v44 = vrot.slane %v1965_v33, 4  ;;  %5208 = vmatmul.mubr.msk.f32.vlgmr.msra.gmra.mrb[6].mxu1 %vm484_vm8, %v5665_v41  ;;  %5215 = vmatprep.subr.mxu1 %v6939_v0 }
  0x48   : > { %v1968_v38 = vld [vmem:[%s5625_s29 + $0x79] sm:$0x1]  ;;  %v1985_v45 = vrot.slane %v1966_v34, 3  ;;  %v2128_v46 = vld [vmem:[%s5625_s29 + $0xa] sm:$0x1]  ;;  %v1819_v48 = vsel %vm475_vm5, %v1818_v21, %v1817_v42  ;;  %v1978_v49 = vsel %vm463_vm1, %v1977_v39, %v1961_v22  ;;  %v1987_v50 = vrot.slane %v1967_v37, 2  ;;  %5217 = vmatprep.mubr.msk.f32.mxu1 %vm5487_vm0, %v6939_v0  ;;  %3878 = vperm.xlu1 %5353, %v5039_v47   ;;  %p5431_p2 = por %p5430_p1, %p5429_p0 }
  0x49   : > { %v1989_v51 = vrot.slane %v1968_v38, 1  ;;  %v2129_v52 = vld [vmem:[%s5625_s29 + $0x1a] sm:$0x1]  ;;  %v2130_v53 = vld [vmem:[%s5625_s29 + $0x2a] sm:$0x1]  ;;  %v1821_v54 = vsel %vm478_vm6, %v1820_v26, %v1819_v48  ;;  %v1980_v55 = vsel %vm466_vm2, %v1979_v40, %v1978_v49  ;;  %4618 = vperm.xlu0 %5352, %v5084_v7  }
  0x4a   : > { %v2131_v56 = vld [vmem:[%s5625_s29 + $0x3a] sm:$0x1]  ;;  %v2132_v57 = vld [vmem:[%s5625_s29 + $0x4a] sm:$0x1]  ;;  %v1823_v59 = vsel %vm481_vm7, %v1822_v27, %v1821_v54  ;;  %v1982_v60 = vsel %vm469_vm3, %v1981_v43, %v1980_v55  ;;  %v2144_v63 = vrot.slane %v2129_v52, 7  ;;  %v2146_v1 = vrot.slane %v2130_v53, 6  ;;  %p5432_p3 = pnand %p5431_p2, %p5425_p13 }
  0x4b   : > { %v2133_v58 = vld [vmem:[%s5625_s29 + $0x5a] sm:$0x1]  ;;  %v2134_v61 = vld [vmem:[%s5625_s29 + $0x6a] sm:$0x1]  ;;  %5211 = vmatpush3.msra.mxu0 %v1823_v59  ;;  %v1984_v2 = vsel %vm472_vm4, %v1983_v44, %v1982_v60  ;;  %v2148_v3 = vrot.slane %v2131_v56, 5  ;;  %v2150_v4 = vrot.slane %v2132_v57, 4 }
  0x4c   : > { %v2135_v62 = vld [vmem:[%s5625_s29 + $0x7a] sm:$0x1]  ;;  %v2152_v5 = vrot.slane %v2133_v58, 3  ;;  %v2295_v6 = vld [vmem:[%s5625_s29 + $0xb] sm:$0x1]  ;;  %v1986_v8 = vsel %vm475_vm5, %v1985_v45, %v1984_v2  ;;  %5213 = vmatmul.mubr.msk.f32.vlgmr.msra.gmra.mrb[8].mxu0 %vm484_vm8, %v5665_v41  ;;  %5220 = vmatprep.subr.mxu0 %v6939_v0  ;;  %v2145_v9 = vsel %vm463_vm1, %v2144_v63, %v2128_v46  ;;  %v2154_v10 = vrot.slane %v2134_v61, 2 }
  0x4d   : > { %v2156_v11 = vrot.slane %v2135_v62, 1  ;;  %v2296_v12 = vld [vmem:[%s5625_s29 + $0x1b] sm:$0x1]  ;;  %v2297_v13 = vld [vmem:[%s5625_s29 + $0x2b] sm:$0x1]  ;;  %v1988_v14 = vsel %vm478_vm6, %v1987_v50, %v1986_v8  ;;  %v2147_v15 = vsel %vm466_vm2, %v2146_v1, %v2145_v9  ;;  %5222 = vmatprep.mubr.msk.f32.mxu0 %vm5487_vm0, %v6939_v0 }
  0x4e   : > { %v2298_v16 = vld [vmem:[%s5625_s29 + $0x3b] sm:$0x1]  ;;  %v2299_v17 = vld [vmem:[%s5625_s29 + $0x4b] sm:$0x1]  ;;  %v1990_v19 = vsel %vm481_vm7, %v1989_v51, %v1988_v14  ;;  %v2149_v20 = vsel %vm469_vm3, %v2148_v3, %v2147_v15  ;;  %v2311_v23 = vrot.slane %v2296_v12, 7  ;;  %v2313_v24 = vrot.slane %v2297_v13, 6 }
  0x4f   : > { %v2300_v18 = vld [vmem:[%s5625_s29 + $0x5b] sm:$0x1]  ;;  %v2301_v21 = vld [vmem:[%s5625_s29 + $0x6b] sm:$0x1]  ;;  %5216 = vmatpush3.msra.mxu1 %v1990_v19  ;;  %v2151_v25 = vsel %vm472_vm4, %v2150_v4, %v2149_v20  ;;  %v2315_v26 = vrot.slane %v2298_v16, 5  ;;  %v2317_v27 = vrot.slane %v2299_v17, 4 }
  0x50   : > { %v2302_v22 = vld [vmem:[%s5625_s29 + $0x7b] sm:$0x1]  ;;  %v2319_v28 = vrot.slane %v2300_v18, 3  ;;  %v2462_v29 = vld [vmem:[%s5625_s29 + $0xc] sm:$0x1]  ;;  %5218 = vmatmul.mubr.msk.f32.vlgmr.msra.gmra.mrb[8].mxu1 %vm484_vm8, %v5665_v41  ;;  %5225 = vmatprep.subr.mxu1 %v6939_v0  ;;  %v2153_v31 = vsel %vm475_vm5, %v2152_v5, %v2151_v25  ;;  %v2312_v32 = vsel %vm463_vm1, %v2311_v23, %v2295_v6  ;;  %v2321_v33 = vrot.slane %v2301_v21, 2 }
  0x51   : > { %v3842_v30 = vld [vmem:[%s6934_s8 + $0x8] sm:$0xff]  ;;  %v2323_v34 = vrot.slane %v2302_v22, 1  ;;  %v2463_v35 = vld [vmem:[%s5625_s29 + $0x1c] sm:$0x1]  ;;  %v2155_v37 = vsel %vm478_vm6, %v2154_v10, %v2153_v31  ;;  %v2314_v38 = vsel %vm466_vm2, %v2313_v24, %v2312_v32  ;;  %5227 = vmatprep.mubr.msk.f32.mxu1 %vm5487_vm0, %v6939_v0  ;;  %v2630_v59 = vld [vmem:[%s5625_s29 + $0x1d] sm:$0x1] }
  0x52   : > { %v2464_v36 = vld [vmem:[%s5625_s29 + $0x2c] sm:$0x1]  ;;  %v2465_v39 = vld [vmem:[%s5625_s29 + $0x3c] sm:$0x1]  ;;  %3858 = vperm.xlu1 %5353, %v3842_v30   ;;  %v2157_v43 = vsel %vm481_vm7, %v2156_v11, %v2155_v37  ;;  %v2316_v44 = vsel %vm469_vm3, %v2315_v26, %v2314_v38  ;;  %v2478_v47 = vrot.slane %v2463_v35, 7  ;;  %v2645_v7 = vrot.slane %v2630_v59, 7 }
  0x53   : > { %v2466_v40 = vld [vmem:[%s5625_s29 + $0x4c] sm:$0x1]  ;;  %v2467_v42 = vld [vmem:[%s5625_s29 + $0x5c] sm:$0x1]  ;;  %v2480_v48 = vrot.slane %v2464_v36, 6  ;;  %5221 = vmatpush3.msra.mxu0 %v2157_v43  ;;  %v2318_v49 = vsel %vm472_vm4, %v2317_v27, %v2316_v44  ;;  %v2482_v50 = vrot.slane %v2465_v39, 5 }
  0x54   : > { %v2468_v45 = vld [vmem:[%s5625_s29 + $0x6c] sm:$0x1]  ;;  %v2469_v46 = vld [vmem:[%s5625_s29 + $0x7c] sm:$0x1]  ;;  %v2484_v51 = vrot.slane %v2466_v40, 4  ;;  %v2486_v52 = vrot.slane %v2467_v42, 3  ;;  %v2320_v55 = vsel %vm475_vm5, %v2319_v28, %v2318_v49  ;;  %5223 = vmatmul.mubr.msk.f32.vlgmr.msra.gmra.mrb[10].mxu0 %vm484_vm8, %v5665_v41  ;;  %5230 = vmatprep.subr.mxu0 %v6939_v0  ;;  %v2479_v56 = vsel %vm463_vm1, %v2478_v47, %v2462_v29 }
  0x55   : > { %v2629_v53 = vld [vmem:[%s5625_s29 + $0xd] sm:$0x1]  ;;  %v5040_v54 = vld [vmem:[%s6934_s8 + $0x18] sm:$0xff]  ;;  %v2488_v57 = vrot.slane %v2468_v45, 2  ;;  %v2490_v58 = vrot.slane %v2469_v46, 1  ;;  %v2322_v61 = vsel %vm478_vm6, %v2321_v33, %v2320_v55  ;;  %v2481_v62 = vsel %vm466_vm2, %v2480_v48, %v2479_v56  ;;  %5232 = vmatprep.mubr.msk.f32.mxu0 %vm5487_vm0, %v6939_v0  ;;  %v5041_v37 = vld [vmem:[%s6934_s8 + $0x20] sm:$0xff] }
  0x56   : > { %v2631_v60 = vld [vmem:[%s5625_s29 + $0x2d] sm:$0x1]  ;;  %v2632_v63 = vld [vmem:[%s5625_s29 + $0x3d] sm:$0x1]  ;;  %3883 = vperm.xlu0 %5352, %v5040_v54   ;;  %v2324_v3 = vsel %vm481_vm7, %v2323_v34, %v2322_v61  ;;  %v2483_v4 = vsel %vm469_vm3, %v2482_v50, %v2481_v62  ;;  %v2796_v13 = vld [vmem:[%s5625_s29 + $0xe] sm:$0x1]  ;;  %v2646_v16 = vsel %vm463_vm1, %v2645_v7, %v2629_v53 }
  0x57   : > { %v2633_v1 = vld [vmem:[%s5625_s29 + $0x4d] sm:$0x1]  ;;  %v2634_v2 = vld [vmem:[%s5625_s29 + $0x5d] sm:$0x1]  ;;  %v2647_v8 = vrot.slane %v2631_v60, 6  ;;  %5226 = vmatpush3.msra.mxu1 %v2324_v3  ;;  %v2485_v9 = vsel %vm472_vm4, %v2484_v51, %v2483_v4  ;;  %v2649_v10 = vrot.slane %v2632_v63, 5 }
  0x58   : > { %v2635_v5 = vld [vmem:[%s5625_s29 + $0x6d] sm:$0x1]  ;;  %v2636_v6 = vld [vmem:[%s5625_s29 + $0x7d] sm:$0x1]  ;;  %v2651_v11 = vrot.slane %v2633_v1, 4  ;;  %v2653_v12 = vrot.slane %v2634_v2, 3  ;;  %5228 = vmatmul.mubr.msk.f32.vlgmr.msra.gmra.mrb[10].mxu1 %vm484_vm8, %v5665_v41  ;;  %5235 = vmatprep.subr.mxu1 %v6939_v0  ;;  %v2487_v15 = vsel %vm475_vm5, %v2486_v52, %v2485_v9 }
  0x59   : > { %v5085_v14 = vld [vmem:[%s6937_s11 + $0x58] sm:$0xff]  ;;  %v2655_v17 = vrot.slane %v2635_v5, 2  ;;  %v2657_v18 = vrot.slane %v2636_v6, 1  ;;  %v2798_v20 = vld [vmem:[%s5625_s29 + $0x2e] sm:$0x1]  ;;  %v2489_v21 = vsel %vm478_vm6, %v2488_v57, %v2487_v15  ;;  %v2648_v22 = vsel %vm466_vm2, %v2647_v8, %v2646_v16  ;;  %5237 = vmatprep.mubr.msk.f32.mxu1 %vm5487_vm0, %v6939_v0  ;;  %v5086_v59 = vld [vmem:[%s6937_s11 + $0x60] sm:$0xff] }
  0x5a   : > { %v2797_v19 = vld [vmem:[%s5625_s29 + $0x1e] sm:$0x1]  ;;  %v2800_v24 = vld [vmem:[%s5625_s29 + $0x4e] sm:$0x1]  ;;  %4623 = vperm.xlu1 %5353, %v5085_v14   ;;  %v2491_v26 = vsel %vm481_vm7, %v2490_v58, %v2489_v21  ;;  %v2650_v27 = vsel %vm469_vm3, %v2649_v10, %v2648_v22  ;;  %v2814_v31 = vrot.slane %v2798_v20, 6  ;;  %3907 = vperm.xlu0 %5352, %v5041_v37   ;;  %v5043_v9 = vld [vmem:[%s6934_s8 + $0x30] sm:$0xff] }
  0x5b   : > { %v2799_v23 = vld [vmem:[%s5625_s29 + $0x3e] sm:$0x1]  ;;  %v2802_v28 = vld [vmem:[%s5625_s29 + $0x6e] sm:$0x1]  ;;  %v2812_v30 = vrot.slane %v2797_v19, 7  ;;  %5231 = vmatpush3.msra.mxu0 %v2491_v26  ;;  %v2652_v32 = vsel %vm472_vm4, %v2651_v11, %v2650_v27  ;;  %v2818_v34 = vrot.slane %v2800_v24, 4 }
  0x5c   : > { %v2801_v25 = vld [vmem:[%s5625_s29 + $0x5e] sm:$0x1]  ;;  %v2816_v33 = vrot.slane %v2799_v23, 5  ;;  %v2963_v36 = vld [vmem:[%s5625_s29 + $0xf] sm:$0x1]  ;;  %v2654_v38 = vsel %vm475_vm5, %v2653_v12, %v2652_v32  ;;  %5233 = vmatmul.mubr.msk.f32.vlgmr.msra.gmra.mrb[12].mxu0 %vm484_vm8, %v5665_v41  ;;  %5240 = vmatprep.subr.mxu0 %v6939_v0  ;;  %v2822_v40 = vrot.slane %v2802_v28, 2 }
  0x5d   : > { %v2803_v29 = vld [vmem:[%s5625_s29 + $0x7e] sm:$0x1]  ;;  %v2820_v35 = vrot.slane %v2801_v25, 3  ;;  %v2813_v39 = vsel %vm463_vm1, %v2812_v30, %v2796_v13  ;;  %v2964_v43 = vld [vmem:[%s5625_s29 + $0x1f] sm:$0x1]  ;;  %v2656_v45 = vsel %vm478_vm6, %v2655_v17, %v2654_v38  ;;  %5242 = vmatprep.mubr.msk.f32.mxu0 %vm5487_vm0, %v6939_v0  ;;  %v5042_v60 = vld [vmem:[%s6934_s8 + $0x28] sm:$0xff] }
  0x5e   : > { %v2824_v42 = vrot.slane %v2803_v29, 1  ;;  %v2965_v44 = vld [vmem:[%s5625_s29 + $0x2f] sm:$0x1]  ;;  %v2815_v46 = vsel %vm466_vm2, %v2814_v31, %v2813_v39  ;;  %v2966_v47 = vld [vmem:[%s5625_s29 + $0x3f] sm:$0x1]  ;;  %v2658_v50 = vsel %vm481_vm7, %v2657_v18, %v2656_v45  ;;  %v2979_v53 = vrot.slane %v2964_v43, 7  ;;  %4647 = vperm.xlu1 %5353, %v5086_v59   ;;  %3912 = vperm.xlu0 %5352, %v5042_v60  }
  0x5f   : > { %v2967_v48 = vld [vmem:[%s5625_s29 + $0x4f] sm:$0x1]  ;;  %v2968_v49 = vld [vmem:[%s5625_s29 + $0x5f] sm:$0x1]  ;;  %v2817_v51 = vsel %vm469_vm3, %v2816_v33, %v2815_v46  ;;  %v2981_v54 = vrot.slane %v2965_v44, 6  ;;  %5236 = vmatpush3.msra.mxu1 %v2658_v50  ;;  %v2983_v57 = vrot.slane %v2966_v47, 5 }
  0x60   : > { %v2969_v52 = vld [vmem:[%s5625_s29 + $0x6f] sm:$0x1]  ;;  %v2819_v55 = vsel %vm472_vm4, %v2818_v34, %v2817_v51  ;;  %v2970_v56 = vld [vmem:[%s5625_s29 + $0x7f] sm:$0x1]  ;;  %v2985_v58 = vrot.slane %v2967_v48, 4  ;;  %5238 = vmatmul.mubr.msk.f32.vlgmr.msra.gmra.mrb[12].mxu1 %vm484_vm8, %v5665_v41  ;;  %5245 = vmatprep.subr.mxu1 %v6939_v0  ;;  %v2980_v62 = vsel %vm463_vm1, %v2979_v53, %v2963_v36  ;;  %v2987_v63 = vrot.slane %v2968_v49, 3 }
  0x61   : > { %v2821_v61 = vsel %vm475_vm5, %v2820_v35, %v2819_v55  ;;  %v2982_v2 = vsel %vm466_vm2, %v2981_v54, %v2980_v62  ;;  %v2989_v3 = vrot.slane %v2969_v52, 2  ;;  %5247 = vmatprep.mubr.msk.f32.mxu1 %vm5487_vm0, %v6939_v0  ;;  %v2991_v6 = vrot.slane %v2970_v56, 1  ;;  %v5087_v7 = vld [vmem:[%s6937_s11 + $0x68] sm:$0xff]  ;;  %v5088_v13 = vld [vmem:[%s6937_s11 + $0x70] sm:$0xff]  ;;  %v5044_v14 = vld [vmem:[%s6934_s8 + $0x38] sm:$0xff] }
  0x62   : > { %v2823_v1 = vsel %vm478_vm6, %v2822_v40, %v2821_v61  ;;  %v2984_v5 = vsel %vm469_vm3, %v2983_v57, %v2982_v2  ;;  %4652 = vperm.xlu1 %5353, %v5087_v7   ;;  %3936 = vperm.xlu0 %5352, %v5043_v9   ;;  %v5089_v15 = vld [vmem:[%s6937_s11 + $0x78] sm:$0xff]  ;;  %v5100_v16 = vld [vmem:[%s6928_s2 + $0x6] ss:$0 sm:$0xff]  ;;  %v5101_v17 = vld [vmem:[%s6928_s2 + $0x7] ss:$0 sm:$0xff]  ;;  %v5489_v29 = vmov 0.0|0.0   ;;  %v563_v40 = vlaneseq }
  0x63   : > { %v2825_v4 = vsel %vm481_vm7, %v2824_v42, %v2823_v1  ;;  %v2986_v8 = vsel %vm472_vm4, %v2985_v58, %v2984_v5  ;;  %v3136_v25 = vld [vmem:[%s6929_s3] sm:$0xff]  ;;  %v3137_v26 = vld [vmem:[%s6929_s3 + $0x8] sm:$0xff]  ;;  %v5490_v38 = vmov 1966171168  }
  0x64   : > { %5241 = vmatpush3.msra.mxu0 %v2825_v4  ;;  %v2988_v10 = vsel %vm475_vm5, %v2987_v63, %v2986_v8  ;;  %v5296_v28 = vpack.c.bf16 %v3137_v26, %v3136_v25  ;;  %v561_v39 = vunpack.c.l.s4 %v5490_v38  ;;  %v6090_v43 = vshrl.u32 %v563_v40, 7 }
  0x65   : > { %5243 = vmatmul.mubr.msk.f32.vlgmr.msra.gmra.mrb[14].mxu0 %vm484_vm8, %v5665_v41  ;;  %v2990_v11 = vsel %vm478_vm6, %v2989_v3, %v2988_v10  ;;  %5295 = vmatprep.subr.bf16.mxu0 %v5489_v29 }
  0x66   : > { %5254 = vmatprep.mubr.msk.f32.mxu0 %vm5487_vm0, %v6939_v0  ;;  %v2992_v12 = vsel %vm481_vm7, %v2991_v6, %v2990_v11  ;;  %4676 = vperm.xlu1 %5353, %v5088_v13   ;;  %v562_v42 = vunpack.c.0.s8 %v561_v39 }
  0x67   : > { %5246 = vmatpush3.msra.mxu1 %v2992_v12  ;;  %3941 = vperm.xlu0 %5352, %v5044_v14  }
  0x68   : > { %5248 = vmatmul.mubr.msk.f32.vlgmr.msra.gmra.mrb[14].mxu1 %vm484_vm8, %v5665_v41  ;;  %5297 = vmatpush3.bf16.msra.mxu0 %v5296_v28  ;;  %v6097_v46 = vsub.s32 %v562_v42, %v6090_v43 }
  0x69   : > { %5298 = vmatprep.subr.bf16.mxu0 %v5489_v29 }
  0x6a   : > { %4681 = vperm.xlu1 %5353, %v5089_v15  }
  0x6b   : > { %4813 = vperm.xlu0 %5352, %v5100_v16  }
  0x6e   : > { %4817 = vperm.xlu1 %5353, %v5101_v17  }
  0x9a   : > { %v6050_v18 = vpop.permute.xlu0 %3335  ;;  %v6052_v41 = vpop.permute.xlu1 %3390 }
  0x9e   : > { %v6054_v19 = vpop.permute.xlu0 %3339  ;;  %v6056_v20 = vpop.permute.xlu1 %3415 }
  0xa2   : > { %v6058_v21 = vpop.permute.xlu0 %3395  ;;  %v6060_v22 = vpop.permute.xlu1 %3420 }
  0xa6   : > { %v6062_v23 = vpop.permute.xlu0 %4422  ;;  %v6064_v24 = vpop.permute.xlu1 %4426 }
  0xa7   : > { %6962 = vst [vmem:[#allocation6_spill] sm:$0xff] %v6062_v23  ;;  %6963 = vst [vmem:[#allocation7_spill] sm:$0xff] %v6064_v24 }
  0xaa   : > { %v6072_v27 = vpop.permute.xlu0 %3798 }
  0xac   : > { %v6074_v30 = vpop.permute.xlu1 %3802 }
  0xb0   : > { %v6076_v31 = vpop.permute.xlu0 %4477 }
  0xb1   : > { %6964 = vst [vmem:[#allocation8_spill] sm:$0xff] %v6076_v31 }
  0xb2   : > { %v6078_v32 = vpop.permute.xlu1 %4502 }
  0xb3   : > { %6965 = vst [vmem:[#allocation9_spill] sm:$0xff] %v6078_v32 }
  0xb4   : > { %v6080_v33 = vpop.permute.xlu0 %4482 }
  0xb5   : > { %6966 = vst [vmem:[#allocation10_spill] sm:$0xff] %v6080_v33 }
  0xb6   : > { %v6082_v34 = vpop.permute.xlu1 %4507 }
  0xb7   : > { %6967 = vst [vmem:[#allocation11_spill] sm:$0xff] %v6082_v34 }
  0xb8   : > { %v6084_v35 = vpop.permute.xlu0 %4531 }
  0xb9   : > { %6968 = vst [vmem:[#allocation12_spill] sm:$0xff] %v6084_v35 }
  0xbb   : > { %v6086_v36 = vpop.permute.xlu1 %4536 }
  0xbc   : > { %6969 = vst [vmem:[#allocation13_spill] sm:$0xff] %v6086_v36  ;;  %v6088_v37 = vpop.permute.xlu0 %4560 }
  0xbd   : > { %6970 = vst [vmem:[#allocation14_spill] sm:$0xff] %v6088_v37 }
  0xbf   : > { %v6092_v44 = vpop.permute.xlu1 %4565 }
  0xc0   : > { %6971 = vst [vmem:[#allocation15_spill] sm:$0xff] %v6092_v44  ;;  %v6094_v45 = vpop.permute.xlu0 %4589 }
  0xc1   : > { %6972 = vst [vmem:[#allocation16_spill] sm:$0xff] %v6094_v45 }
  0xc3   : > { %v6099_v47 = vpop.permute.xlu1 %4594 }
  0xc4   : > { %6973 = vst [vmem:[#allocation17_spill] sm:$0xff] %v6099_v47  ;;  %v6101_v49 = vpop.permute.xlu0 %3853 }
  0xc7   : > { %v6110_v1 = vpop.permute.xlu1 %3878 }
  0xc8   : > { %v6116_v5 = vpop.permute.xlu0 %4618 }
  0xc9   : > { %6974 = vst [vmem:[#allocation18_spill] sm:$0xff] %v6116_v5 }
  0xd1   : > { %v6134_v42 = vpop.permute.xlu1 %3858 }
  0xfd   : > { %v554_v48 = vpop.f32.mrb[0].mxu0 }
  0xfe   : > { %v559_v50 = vcombine.high %v554_v48, %v554_v48  ;;  %v566_v51 = vrot.slane %v554_v48, %v6097_v46  ;;  %v5174_v52 = vpop.f32.mrb[1].mxu0 }
 0x100   : > { %v573_v53 = vrot.slane %v559_v50, %v6097_v46  ;;  %v574_v54 = vcombine.high %v566_v51, %v566_v51  ;;  %v582_v55 = vrot.slane %v566_v51, %v6097_v46 }
 0x101   : > { %v722_v56 = vpop.f32.mrb[0].mxu1 }
 0x102   : > { %v575_v57 = vcombine.high %v573_v53, %v573_v53  ;;  %v589_v58 = vrot.slane %v573_v53, %v6097_v46  ;;  %v596_v59 = vrot.slane %v574_v54, %v6097_v46  ;;  %v604_v60 = vcombine.high %v582_v55, %v582_v55  ;;  %617 = vst.msk [vmem:[#allocation2] sm:$0x1] %vm616_vm9, %v582_v55  ;;  %v5179_v61 = vpop.f32.mrb[1].mxu1  ;;  %v6139_v54 = vpop.permute.xlu0 %3883 }
 0x103   : > { %v727_v62 = vcombine.high %v722_v56, %v722_v56  ;;  %v734_v63 = vrot.slane %v722_v56, %v6097_v46 }
 0x104   : > { %v603_v2 = vrot.slane %v575_v57, %v6097_v46  ;;  %v605_v3 = vcombine.high %v589_v58, %v589_v58  ;;  %v606_v4 = vcombine.high %v596_v59, %v596_v59  ;;  %618 = vst.msk [vmem:[#allocation2 + $0x10] sm:$0x1] %vm616_vm9, %v596_v59  ;;  %619 = vst.msk [vmem:[#allocation2 + $0x20] sm:$0x1] %vm616_vm9, %v604_v60 }
 0x105   : > { %621 = vst.msk [vmem:[#allocation2 + $0x40] sm:$0x1] %vm616_vm9, %v589_v58  ;;  %v741_v6 = vrot.slane %v727_v62, %v6097_v46  ;;  %v742_v7 = vcombine.high %v734_v63, %v734_v63  ;;  %v750_v8 = vrot.slane %v734_v63, %v6097_v46  ;;  %v889_v9 = vpop.f32.mrb[2].mxu0 }
 0x106   : > { %v607_v10 = vcombine.high %v603_v2, %v603_v2  ;;  %620 = vst.msk [vmem:[#allocation2 + $0x30] sm:$0x1] %vm616_vm9, %v606_v4  ;;  %622 = vst.msk [vmem:[#allocation2 + $0x50] sm:$0x1] %vm616_vm9, %v603_v2  ;;  %v894_v11 = vcombine.high %v889_v9, %v889_v9  ;;  %v901_v12 = vrot.slane %v889_v9, %v6097_v46  ;;  %v5184_v13 = vpop.f32.mrb[3].mxu0 }
 0x107   : > { %623 = vst.msk [vmem:[#allocation2 + $0x60] sm:$0x1] %vm616_vm9, %v605_v3  ;;  %v743_v14 = vcombine.high %v741_v6, %v741_v6  ;;  %v757_v15 = vrot.slane %v741_v6, %v6097_v46  ;;  %v764_v16 = vrot.slane %v742_v7, %v6097_v46  ;;  %v772_v17 = vcombine.high %v750_v8, %v750_v8 }
 0x108   : > { %784 = vst.msk [vmem:[#allocation2 + $0x1] sm:$0x1] %vm616_vm9, %v750_v8  ;;  %624 = vst.msk [vmem:[#allocation2 + $0x70] sm:$0x1] %vm616_vm9, %v607_v10  ;;  %v908_v25 = vrot.slane %v894_v11, %v6097_v46  ;;  %v909_v26 = vcombine.high %v901_v12, %v901_v12  ;;  %v917_v28 = vrot.slane %v901_v12, %v6097_v46  ;;  %v6159_v12 = vpop.permute.xlu1 %4623 }
 0x109   : > { %v771_v29 = vrot.slane %v743_v14, %v6097_v46  ;;  %v773_v38 = vcombine.high %v757_v15, %v757_v15  ;;  %v774_v39 = vcombine.high %v764_v16, %v764_v16  ;;  %785 = vst.msk [vmem:[#allocation2 + $0x11] sm:$0x1] %vm616_vm9, %v764_v16  ;;  %786 = vst.msk [vmem:[#allocation2 + $0x21] sm:$0x1] %vm616_vm9, %v772_v17  ;;  %v1056_v40 = vpop.f32.mrb[2].mxu1  ;;  %v6164_v16 = vpop.permute.xlu0 %3907 }
 0x10a   : > { %788 = vst.msk [vmem:[#allocation2 + $0x41] sm:$0x1] %vm616_vm9, %v757_v15  ;;  %v910_v48 = vcombine.high %v908_v25, %v908_v25  ;;  %v924_v50 = vrot.slane %v908_v25, %v6097_v46  ;;  %v931_v51 = vrot.slane %v909_v26, %v6097_v46  ;;  %v939_v52 = vcombine.high %v917_v28, %v917_v28  ;;  %v5189_v53 = vpop.f32.mrb[3].mxu1 }
 0x10b   : > { %951 = vst.msk [vmem:[#allocation2 + $0x2] sm:$0x1] %vm616_vm9, %v917_v28  ;;  %v775_v55 = vcombine.high %v771_v29, %v771_v29  ;;  %787 = vst.msk [vmem:[#allocation2 + $0x31] sm:$0x1] %vm616_vm9, %v774_v39  ;;  %v1061_v56 = vcombine.high %v1056_v40, %v1056_v40  ;;  %v1068_v57 = vrot.slane %v1056_v40, %v6097_v46 }
 0x10c   : > { %789 = vst.msk [vmem:[#allocation2 + $0x51] sm:$0x1] %vm616_vm9, %v771_v29  ;;  %790 = vst.msk [vmem:[#allocation2 + $0x61] sm:$0x1] %vm616_vm9, %v773_v38  ;;  %v938_v58 = vrot.slane %v910_v48, %v6097_v46  ;;  %v940_v59 = vcombine.high %v924_v50, %v924_v50  ;;  %v941_v60 = vcombine.high %v931_v51, %v931_v51 }
 0x10d   : > { %952 = vst.msk [vmem:[#allocation2 + $0x12] sm:$0x1] %vm616_vm9, %v931_v51  ;;  %953 = vst.msk [vmem:[#allocation2 + $0x22] sm:$0x1] %vm616_vm9, %v939_v52  ;;  %v1075_v61 = vrot.slane %v1061_v56, %v6097_v46  ;;  %v1076_v62 = vcombine.high %v1068_v57, %v1068_v57  ;;  %v1084_v63 = vrot.slane %v1068_v57, %v6097_v46 }
 0x10e   : > { %955 = vst.msk [vmem:[#allocation2 + $0x42] sm:$0x1] %vm616_vm9, %v924_v50  ;;  %791 = vst.msk [vmem:[#allocation2 + $0x71] sm:$0x1] %vm616_vm9, %v775_v55  ;;  %v1223_v2 = vpop.f32.mrb[4].mxu0  ;;  %v942_v3 = vcombine.high %v938_v58, %v938_v58 }
 0x10f   : > { %954 = vst.msk [vmem:[#allocation2 + $0x32] sm:$0x1] %vm616_vm9, %v941_v60  ;;  %956 = vst.msk [vmem:[#allocation2 + $0x52] sm:$0x1] %vm616_vm9, %v938_v58  ;;  %v1228_v4 = vcombine.high %v1223_v2, %v1223_v2  ;;  %v1235_v6 = vrot.slane %v1223_v2, %v6097_v46  ;;  %v5194_v7 = vpop.f32.mrb[5].mxu0  ;;  %v1077_v8 = vcombine.high %v1075_v61, %v1075_v61 }
 0x110   : > { %957 = vst.msk [vmem:[#allocation2 + $0x62] sm:$0x1] %vm616_vm9, %v940_v59  ;;  %v1091_v9 = vrot.slane %v1075_v61, %v6097_v46  ;;  %v1098_v10 = vrot.slane %v1076_v62, %v6097_v46  ;;  %v1106_v11 = vcombine.high %v1084_v63, %v1084_v63  ;;  %1118 = vst.msk [vmem:[#allocation2 + $0x3] sm:$0x1] %vm616_vm9, %v1084_v63  ;;  %v6184_v61 = vpop.permute.xlu1 %4647 }
 0x111   : > { %6975 = vst [vmem:[#allocation19_spill] sm:$0xff] %v6159_v12  ;;  %958 = vst.msk [vmem:[#allocation2 + $0x72] sm:$0x1] %vm616_vm9, %v942_v3  ;;  %v1242_v13 = vrot.slane %v1228_v4, %v6097_v46  ;;  %v1243_v14 = vcombine.high %v1235_v6, %v1235_v6  ;;  %v1251_v15 = vrot.slane %v1235_v6, %v6097_v46  ;;  %v6190_v4 = vpop.permute.xlu0 %3912 }
 0x112   : > { %v1105_v17 = vrot.slane %v1077_v8, %v6097_v46  ;;  %v1107_v25 = vcombine.high %v1091_v9, %v1091_v9  ;;  %v1108_v26 = vcombine.high %v1098_v10, %v1098_v10  ;;  %1119 = vst.msk [vmem:[#allocation2 + $0x13] sm:$0x1] %vm616_vm9, %v1098_v10  ;;  %1120 = vst.msk [vmem:[#allocation2 + $0x23] sm:$0x1] %vm616_vm9, %v1106_v11  ;;  %v1390_v28 = vpop.f32.mrb[4].mxu1 }
 0x113   : > { %1122 = vst.msk [vmem:[#allocation2 + $0x43] sm:$0x1] %vm616_vm9, %v1091_v9  ;;  %v1244_v29 = vcombine.high %v1242_v13, %v1242_v13  ;;  %v1258_v38 = vrot.slane %v1242_v13, %v6097_v46  ;;  %v1265_v39 = vrot.slane %v1243_v14, %v6097_v46  ;;  %v1273_v40 = vcombine.high %v1251_v15, %v1251_v15  ;;  %v5199_v48 = vpop.f32.mrb[5].mxu1 }
 0x114   : > { %1285 = vst.msk [vmem:[#allocation2 + $0x4] sm:$0x1] %vm616_vm9, %v1251_v15  ;;  %v1109_v50 = vcombine.high %v1105_v17, %v1105_v17  ;;  %1121 = vst.msk [vmem:[#allocation2 + $0x33] sm:$0x1] %vm616_vm9, %v1108_v26  ;;  %v1395_v51 = vcombine.high %v1390_v28, %v1390_v28  ;;  %v1402_v52 = vrot.slane %v1390_v28, %v6097_v46 }
 0x115   : > { %1123 = vst.msk [vmem:[#allocation2 + $0x53] sm:$0x1] %vm616_vm9, %v1105_v17  ;;  %1124 = vst.msk [vmem:[#allocation2 + $0x63] sm:$0x1] %vm616_vm9, %v1107_v25  ;;  %v1272_v53 = vrot.slane %v1244_v29, %v6097_v46  ;;  %v1274_v55 = vcombine.high %v1258_v38, %v1258_v38  ;;  %v1275_v56 = vcombine.high %v1265_v39, %v1265_v39 }
 0x116   : > { %1286 = vst.msk [vmem:[#allocation2 + $0x14] sm:$0x1] %vm616_vm9, %v1265_v39  ;;  %1287 = vst.msk [vmem:[#allocation2 + $0x24] sm:$0x1] %vm616_vm9, %v1273_v40  ;;  %v1409_v57 = vrot.slane %v1395_v51, %v6097_v46  ;;  %v1410_v58 = vcombine.high %v1402_v52, %v1402_v52  ;;  %v1418_v59 = vrot.slane %v1402_v52, %v6097_v46  ;;  %v1557_v60 = vpop.f32.mrb[6].mxu0  ;;  %v6209_v51 = vpop.permute.xlu1 %4652 }
 0x117   : > { %1289 = vst.msk [vmem:[#allocation2 + $0x44] sm:$0x1] %vm616_vm9, %v1258_v38  ;;  %1125 = vst.msk [vmem:[#allocation2 + $0x73] sm:$0x1] %vm616_vm9, %v1109_v50  ;;  %v1276_v62 = vcombine.high %v1272_v53, %v1272_v53  ;;  %v1562_v63 = vcombine.high %v1557_v60, %v1557_v60  ;;  %v1569_v2 = vrot.slane %v1557_v60, %v6097_v46  ;;  %v5204_v3 = vpop.f32.mrb[7].mxu0 }
 0x118   : > { %6976 = vst [vmem:[#allocation20_spill] sm:$0xff] %v6184_v61  ;;  %1288 = vst.msk [vmem:[#allocation2 + $0x34] sm:$0x1] %vm616_vm9, %v1275_v56  ;;  %v1411_v6 = vcombine.high %v1409_v57, %v1409_v57  ;;  %v1425_v7 = vrot.slane %v1409_v57, %v6097_v46  ;;  %v1432_v8 = vrot.slane %v1410_v58, %v6097_v46  ;;  %v6215_v56 = vpop.permute.xlu0 %3936 }
 0x119   : > { %1290 = vst.msk [vmem:[#allocation2 + $0x54] sm:$0x1] %vm616_vm9, %v1272_v53  ;;  %1291 = vst.msk [vmem:[#allocation2 + $0x64] sm:$0x1] %vm616_vm9, %v1274_v55  ;;  %v1440_v9 = vcombine.high %v1418_v59, %v1418_v59  ;;  %v1576_v10 = vrot.slane %v1562_v63, %v6097_v46  ;;  %v1577_v11 = vcombine.high %v1569_v2, %v1569_v2 }
 0x11a   : > { %1452 = vst.msk [vmem:[#allocation2 + $0x5] sm:$0x1] %vm616_vm9, %v1418_v59  ;;  %1292 = vst.msk [vmem:[#allocation2 + $0x74] sm:$0x1] %vm616_vm9, %v1276_v62  ;;  %v1585_v13 = vrot.slane %v1569_v2, %v6097_v46  ;;  %v1439_v14 = vrot.slane %v1411_v6, %v6097_v46  ;;  %v1441_v15 = vcombine.high %v1425_v7, %v1425_v7  ;;  %v1724_v25 = vpop.f32.mrb[6].mxu1 }
 0x11b   : > { %v1442_v17 = vcombine.high %v1432_v8, %v1432_v8  ;;  %1453 = vst.msk [vmem:[#allocation2 + $0x15] sm:$0x1] %vm616_vm9, %v1432_v8  ;;  %1454 = vst.msk [vmem:[#allocation2 + $0x25] sm:$0x1] %vm616_vm9, %v1440_v9  ;;  %v1578_v26 = vcombine.high %v1576_v10, %v1576_v10  ;;  %v1592_v28 = vrot.slane %v1576_v10, %v6097_v46  ;;  %v5209_v39 = vpop.f32.mrb[7].mxu1 }
 0x11c   : > { %1456 = vst.msk [vmem:[#allocation2 + $0x45] sm:$0x1] %vm616_vm9, %v1425_v7  ;;  %v1599_v29 = vrot.slane %v1577_v11, %v6097_v46  ;;  %v1607_v38 = vcombine.high %v1585_v13, %v1585_v13  ;;  %1619 = vst.msk [vmem:[#allocation2 + $0x6] sm:$0x1] %vm616_vm9, %v1585_v13  ;;  %v1443_v40 = vcombine.high %v1439_v14, %v1439_v14 }
 0x11d   : > { %1455 = vst.msk [vmem:[#allocation2 + $0x35] sm:$0x1] %vm616_vm9, %v1442_v17  ;;  %1457 = vst.msk [vmem:[#allocation2 + $0x55] sm:$0x1] %vm616_vm9, %v1439_v14  ;;  %v1729_v48 = vcombine.high %v1724_v25, %v1724_v25  ;;  %v1736_v50 = vrot.slane %v1724_v25, %v6097_v46  ;;  %v1606_v52 = vrot.slane %v1578_v26, %v6097_v46  ;;  %v6234_v26 = vpop.permute.xlu1 %4676 }
 0x11e   : > { %1458 = vst.msk [vmem:[#allocation2 + $0x65] sm:$0x1] %vm616_vm9, %v1441_v15  ;;  %6977 = vst [vmem:[#allocation21_spill] sm:$0xff] %v6209_v51  ;;  %v1608_v53 = vcombine.high %v1592_v28, %v1592_v28  ;;  %v1609_v55 = vcombine.high %v1599_v29, %v1599_v29 }
 0x11f   : > { %1620 = vst.msk [vmem:[#allocation2 + $0x16] sm:$0x1] %vm616_vm9, %v1599_v29  ;;  %1621 = vst.msk [vmem:[#allocation2 + $0x26] sm:$0x1] %vm616_vm9, %v1607_v38  ;;  %v1743_v57 = vrot.slane %v1729_v48, %v6097_v46  ;;  %v1744_v58 = vcombine.high %v1736_v50, %v1736_v50  ;;  %v1752_v59 = vrot.slane %v1736_v50, %v6097_v46  ;;  %v1891_v60 = vpop.f32.mrb[8].mxu0  ;;  %v6239_v48 = vpop.permute.xlu0 %3941 }
 0x120   : > { %1623 = vst.msk [vmem:[#allocation2 + $0x46] sm:$0x1] %vm616_vm9, %v1592_v28  ;;  %1459 = vst.msk [vmem:[#allocation2 + $0x75] sm:$0x1] %vm616_vm9, %v1443_v40  ;;  %v1610_v62 = vcombine.high %v1606_v52, %v1606_v52  ;;  %v1896_v63 = vcombine.high %v1891_v60, %v1891_v60  ;;  %v1903_v2 = vrot.slane %v1891_v60, %v6097_v46  ;;  %v5214_v3 = vpop.f32.mrb[9].mxu0 }
 0x121   : > { %1622 = vst.msk [vmem:[#allocation2 + $0x36] sm:$0x1] %vm616_vm9, %v1609_v55  ;;  %1624 = vst.msk [vmem:[#allocation2 + $0x56] sm:$0x1] %vm616_vm9, %v1606_v52  ;;  %v1745_v6 = vcombine.high %v1743_v57, %v1743_v57  ;;  %v1759_v7 = vrot.slane %v1743_v57, %v6097_v46  ;;  %v1766_v8 = vrot.slane %v1744_v58, %v6097_v46 }
 0x122   : > { %1625 = vst.msk [vmem:[#allocation2 + $0x66] sm:$0x1] %vm616_vm9, %v1608_v53  ;;  %v1774_v9 = vcombine.high %v1752_v59, %v1752_v59  ;;  %1786 = vst.msk [vmem:[#allocation2 + $0x7] sm:$0x1] %vm616_vm9, %v1752_v59  ;;  %v1910_v10 = vrot.slane %v1896_v63, %v6097_v46  ;;  %v1911_v11 = vcombine.high %v1903_v2, %v1903_v2 }
 0x123   : > { %1626 = vst.msk [vmem:[#allocation2 + $0x76] sm:$0x1] %vm616_vm9, %v1610_v62  ;;  %v1919_v13 = vrot.slane %v1903_v2, %v6097_v46  ;;  %v1773_v14 = vrot.slane %v1745_v6, %v6097_v46  ;;  %v1775_v15 = vcombine.high %v1759_v7, %v1759_v7  ;;  %v1776_v17 = vcombine.high %v1766_v8, %v1766_v8  ;;  %v2058_v25 = vpop.f32.mrb[8].mxu1 }
 0x124   : > { %1787 = vst.msk [vmem:[#allocation2 + $0x17] sm:$0x1] %vm616_vm9, %v1766_v8  ;;  %1788 = vst.msk [vmem:[#allocation2 + $0x27] sm:$0x1] %vm616_vm9, %v1774_v9  ;;  %v1912_v28 = vcombine.high %v1910_v10, %v1910_v10  ;;  %v1926_v29 = vrot.slane %v1910_v10, %v6097_v46  ;;  %v1933_v38 = vrot.slane %v1911_v11, %v6097_v46  ;;  %v5219_v40 = vpop.f32.mrb[9].mxu1 }
 0x125   : > { %1790 = vst.msk [vmem:[#allocation2 + $0x47] sm:$0x1] %vm616_vm9, %v1759_v7  ;;  %6978 = vst [vmem:[#allocation22_spill] sm:$0xff] %v6234_v26  ;;  %v1941_v39 = vcombine.high %v1919_v13, %v1919_v13  ;;  %v1777_v50 = vcombine.high %v1773_v14, %v1773_v14  ;;  %v2063_v52 = vcombine.high %v2058_v25, %v2058_v25 }
 0x126   : > { %1953 = vst.msk [vmem:[#allocation2 + $0x8] sm:$0x1] %vm616_vm9, %v1919_v13  ;;  %6979 = vst [vmem:[#allocation23_spill] sm:$0xff] %v6239_v48  ;;  %v2070_v53 = vrot.slane %v2058_v25, %v6097_v46  ;;  %v1940_v55 = vrot.slane %v1912_v28, %v6097_v46  ;;  %v1942_v57 = vcombine.high %v1926_v29, %v1926_v29  ;;  %v6264_v25 = vpop.permute.xlu0 %4813 }
 0x127   : > { %1789 = vst.msk [vmem:[#allocation2 + $0x37] sm:$0x1] %vm616_vm9, %v1776_v17  ;;  %1791 = vst.msk [vmem:[#allocation2 + $0x57] sm:$0x1] %vm616_vm9, %v1773_v14  ;;  %v1943_v58 = vcombine.high %v1933_v38, %v1933_v38  ;;  %v2077_v59 = vrot.slane %v2063_v52, %v6097_v46  ;;  %v2225_v63 = vpop.f32.mrb[10].mxu0  ;;  %v6262_v17 = vpop.permute.xlu1 %4681 }
 0x128   : > { %1792 = vst.msk [vmem:[#allocation2 + $0x67] sm:$0x1] %vm616_vm9, %v1775_v15  ;;  %1954 = vst.msk [vmem:[#allocation2 + $0x18] sm:$0x1] %vm616_vm9, %v1933_v38  ;;  %v2078_v60 = vcombine.high %v2070_v53, %v2070_v53  ;;  %v2086_v62 = vrot.slane %v2070_v53, %v6097_v46  ;;  %v1944_v2 = vcombine.high %v1940_v55, %v1940_v55  ;;  %v5224_v7 = vpop.f32.mrb[11].mxu0 }
 0x129   : > { %1955 = vst.msk [vmem:[#allocation2 + $0x28] sm:$0x1] %vm616_vm9, %v1941_v39  ;;  %1957 = vst.msk [vmem:[#allocation2 + $0x48] sm:$0x1] %vm616_vm9, %v1926_v29  ;;  %v2230_v3 = vcombine.high %v2225_v63, %v2225_v63  ;;  %v2237_v6 = vrot.slane %v2225_v63, %v6097_v46  ;;  %v2079_v8 = vcombine.high %v2077_v59, %v2077_v59  ;;  %v6270_v40 = vld [vmem:[#allocation2] sm:$0xff] }
 0x12a   : > { %1793 = vst.msk [vmem:[#allocation2 + $0x77] sm:$0x1] %vm616_vm9, %v1777_v50  ;;  %1956 = vst.msk [vmem:[#allocation2 + $0x38] sm:$0x1] %vm616_vm9, %v1943_v58  ;;  %v2093_v9 = vrot.slane %v2077_v59, %v6097_v46  ;;  %v2100_v10 = vrot.slane %v2078_v60, %v6097_v46  ;;  %v2108_v11 = vcombine.high %v2086_v62, %v2086_v62 }
 0x12b   : > { %1958 = vst.msk [vmem:[#allocation2 + $0x58] sm:$0x1] %vm616_vm9, %v1940_v55  ;;  %1959 = vst.msk [vmem:[#allocation2 + $0x68] sm:$0x1] %vm616_vm9, %v1942_v57  ;;  %v2244_v13 = vrot.slane %v2230_v3, %v6097_v46  ;;  %v2245_v14 = vcombine.high %v2237_v6, %v2237_v6  ;;  %v2253_v15 = vrot.slane %v2237_v6, %v6097_v46  ;;  %v2392_v39 = vpop.f32.mrb[10].mxu1  ;;  %v6275_v59 = vld [vmem:[#allocation2 + $0x10] sm:$0xff] }
 0x12c   : > { %2120 = vst.msk [vmem:[#allocation2 + $0x9] sm:$0x1] %vm616_vm9, %v2086_v62  ;;  %1960 = vst.msk [vmem:[#allocation2 + $0x78] sm:$0x1] %vm616_vm9, %v1944_v2  ;;  %v2107_v28 = vrot.slane %v2079_v8, %v6097_v46  ;;  %v2109_v29 = vcombine.high %v2093_v9, %v2093_v9  ;;  %v2110_v38 = vcombine.high %v2100_v10, %v2100_v10  ;;  %v5229_v57 = vpop.f32.mrb[11].mxu1  ;;  %v3143_v8 = vrot.slane %v6270_v40, 1 }
 0x12d   : > { %6980 = vst [vmem:[#allocation24_spill] sm:$0xff] %v6262_v17  ;;  %2121 = vst.msk [vmem:[#allocation2 + $0x19] sm:$0x1] %vm616_vm9, %v2100_v10  ;;  %v2246_v50 = vcombine.high %v2244_v13, %v2244_v13  ;;  %v2260_v52 = vrot.slane %v2244_v13, %v6097_v46  ;;  %v2267_v53 = vrot.slane %v2245_v14, %v6097_v46  ;;  %v3145_v14 = vrot.slane %v6275_v59, 1 }
 0x12e   : > { %2122 = vst.msk [vmem:[#allocation2 + $0x29] sm:$0x1] %vm616_vm9, %v2108_v11  ;;  %2124 = vst.msk [vmem:[#allocation2 + $0x49] sm:$0x1] %vm616_vm9, %v2093_v9  ;;  %v2275_v55 = vcombine.high %v2253_v15, %v2253_v15  ;;  %v2111_v60 = vcombine.high %v2107_v28, %v2107_v28  ;;  %v2397_v62 = vcombine.high %v2392_v39, %v2392_v39 }
 0x12f   : > { %2287 = vst.msk [vmem:[#allocation2 + $0xa] sm:$0x1] %vm616_vm9, %v2253_v15  ;;  %v4795_v58 = vld [vmem:[#allocation2 + $0x60] sm:$0xff]  ;;  %2123 = vst.msk [vmem:[#allocation2 + $0x39] sm:$0x1] %vm616_vm9, %v2110_v38  ;;  %v2404_v63 = vrot.slane %v2392_v39, %v6097_v46  ;;  %v2274_v3 = vrot.slane %v2246_v50, %v6097_v46  ;;  %v2276_v6 = vcombine.high %v2260_v52, %v2260_v52  ;;  %v2559_v13 = vpop.f32.mrb[12].mxu0  ;;  %v6298_v50 = vpop.permute.xlu1 %4817 }
 0x130   : > { %2125 = vst.msk [vmem:[#allocation2 + $0x59] sm:$0x1] %vm616_vm9, %v2107_v28  ;;  %2126 = vst.msk [vmem:[#allocation2 + $0x69] sm:$0x1] %vm616_vm9, %v2109_v29  ;;  %v6282_v2 = vadd.f32 %v6264_v25, %v4795_v58  ;;  %v2277_v7 = vcombine.high %v2267_v53, %v2267_v53  ;;  %v2411_v9 = vrot.slane %v2397_v62, %v6097_v46  ;;  %v5234_v38 = vpop.f32.mrb[13].mxu0 }
 0x131   : > { %2288 = vst.msk [vmem:[#allocation2 + $0x1a] sm:$0x1] %vm616_vm9, %v2267_v53  ;;  %2289 = vst.msk [vmem:[#allocation2 + $0x2a] sm:$0x1] %vm616_vm9, %v2275_v55  ;;  %v2412_v10 = vcombine.high %v2404_v63, %v2404_v63  ;;  %v2420_v11 = vrot.slane %v2404_v63, %v6097_v46  ;;  %v2278_v15 = vcombine.high %v2274_v3, %v2274_v3 }
 0x132   : > { %2291 = vst.msk [vmem:[#allocation2 + $0x4a] sm:$0x1] %vm616_vm9, %v2260_v52  ;;  %2127 = vst.msk [vmem:[#allocation2 + $0x79] sm:$0x1] %vm616_vm9, %v2111_v60  ;;  %v2564_v28 = vcombine.high %v2559_v13, %v2559_v13  ;;  %v2571_v29 = vrot.slane %v2559_v13, %v6097_v46  ;;  %v4828_v39 = vand.u32 2147483647, %v6282_v2  ;;  %v2413_v53 = vcombine.high %v2411_v9, %v2411_v9 }
 0x133   : > { %2290 = vst.msk [vmem:[#allocation2 + $0x3a] sm:$0x1] %vm616_vm9, %v2277_v7  ;;  %2292 = vst.msk [vmem:[#allocation2 + $0x5a] sm:$0x1] %vm616_vm9, %v2274_v3  ;;  %v4797_v52 = vld [vmem:[#allocation2 + $0x70] sm:$0xff]  ;;  %v2427_v55 = vrot.slane %v2411_v9, %v6097_v46  ;;  %v2434_v57 = vrot.slane %v2412_v10, %v6097_v46  ;;  %v2442_v58 = vcombine.high %v2420_v11, %v2420_v11  ;;  %v2726_v9 = vpop.f32.mrb[12].mxu1 }
 0x134   : > { %2293 = vst.msk [vmem:[#allocation2 + $0x6a] sm:$0x1] %vm616_vm9, %v2276_v6  ;;  %2454 = vst.msk [vmem:[#allocation2 + $0xb] sm:$0x1] %vm616_vm9, %v2420_v11  ;;  %v2578_v60 = vrot.slane %v2564_v28, %v6097_v46  ;;  %v2579_v62 = vcombine.high %v2571_v29, %v2571_v29  ;;  %v2587_v63 = vrot.slane %v2571_v29, %v6097_v46  ;;  %v4832_v3 = vsub.f32 0.0, %v4828_v39  ;;  %v5239_v38 = vpop.f32.mrb[13].mxu1 }
 0x135   : > { %2294 = vst.msk [vmem:[#allocation2 + $0x7a] sm:$0x1] %vm616_vm9, %v2278_v15  ;;  %v2441_v6 = vrot.slane %v2413_v53, %v6097_v46  ;;  %v2443_v7 = vcombine.high %v2427_v55, %v2427_v55  ;;  %v2444_v13 = vcombine.high %v2434_v57, %v2434_v57  ;;  %2455 = vst.msk [vmem:[#allocation2 + $0x1b] sm:$0x1] %vm616_vm9, %v2434_v57 }
 0x136   : > { %2456 = vst.msk [vmem:[#allocation2 + $0x2b] sm:$0x1] %vm616_vm9, %v2442_v58  ;;  %2458 = vst.msk [vmem:[#allocation2 + $0x4b] sm:$0x1] %vm616_vm9, %v2427_v55  ;;  %v6311_v10 = vadd.f32 %v6298_v50, %v4797_v52  ;;  %v2580_v11 = vcombine.high %v2578_v60, %v2578_v60  ;;  %v2594_v15 = vrot.slane %v2578_v60, %v6097_v46  ;;  %v4836_v55 = vmul.f32 1.442695, %v4832_v3 }
 0x137   : > { %v2601_v28 = vrot.slane %v2579_v62, %v6097_v46  ;;  %v2609_v29 = vcombine.high %v2587_v63, %v2587_v63  ;;  %2621 = vst.msk [vmem:[#allocation2 + $0xc] sm:$0x1] %vm616_vm9, %v2587_v63  ;;  %v2445_v39 = vcombine.high %v2441_v6, %v2441_v6  ;;  %2457 = vst.msk [vmem:[#allocation2 + $0x3b] sm:$0x1] %vm616_vm9, %v2444_v13 }
 0x138   : > { %2459 = vst.msk [vmem:[#allocation2 + $0x5b] sm:$0x1] %vm616_vm9, %v2441_v6  ;;  %2460 = vst.msk [vmem:[#allocation2 + $0x6b] sm:$0x1] %vm616_vm9, %v2443_v7  ;;  %v2731_v53 = vcombine.high %v2726_v9, %v2726_v9  ;;  %v2738_v52 = vrot.slane %v2726_v9, %v6097_v46  ;;  %v2608_v57 = vrot.slane %v2580_v11, %v6097_v46  ;;  %5362 = vpow2.f32 %v4836_v55  ;;  %v2893_v7 = vpop.f32.mrb[14].mxu0 }
 0x139   : > { %v2610_v58 = vcombine.high %v2594_v15, %v2594_v15  ;;  %v2611_v60 = vcombine.high %v2601_v28, %v2601_v28  ;;  %2622 = vst.msk [vmem:[#allocation2 + $0x1c] sm:$0x1] %vm616_vm9, %v2601_v28  ;;  %2623 = vst.msk [vmem:[#allocation2 + $0x2c] sm:$0x1] %vm616_vm9, %v2609_v29  ;;  %v6325_v62 = vadd.f32 %v3143_v8, %v6270_v40  ;;  %v5244_v11 = vpop.f32.mrb[15].mxu0 }
 0x13a   : > { %2625 = vst.msk [vmem:[#allocation2 + $0x4c] sm:$0x1] %vm616_vm9, %v2594_v15  ;;  %2461 = vst.msk [vmem:[#allocation2 + $0x7b] sm:$0x1] %vm616_vm9, %v2445_v39  ;;  %v2745_v63 = vrot.slane %v2731_v53, %v6097_v46  ;;  %v2746_v6 = vcombine.high %v2738_v52, %v2738_v52  ;;  %v2754_v3 = vrot.slane %v2738_v52, %v6097_v46  ;;  %v4830_v15 = vand.u32 2147483647, %v6311_v10 }
 0x13b   : > { %v2612_v13 = vcombine.high %v2608_v57, %v2608_v57  ;;  %2624 = vst.msk [vmem:[#allocation2 + $0x3c] sm:$0x1] %vm616_vm9, %v2611_v60  ;;  %2626 = vst.msk [vmem:[#allocation2 + $0x5c] sm:$0x1] %vm616_vm9, %v2608_v57  ;;  %v2898_v9 = vcombine.high %v2893_v7, %v2893_v7  ;;  %v2905_v8 = vrot.slane %v2893_v7, %v6097_v46 }
 0x13c   : > { %2627 = vst.msk [vmem:[#allocation2 + $0x6c] sm:$0x1] %vm616_vm9, %v2610_v58  ;;  %v2747_v28 = vcombine.high %v2745_v63, %v2745_v63  ;;  %v2761_v29 = vrot.slane %v2745_v63, %v6097_v46  ;;  %v2768_v38 = vrot.slane %v2746_v6, %v6097_v46  ;;  %v2776_v39 = vcombine.high %v2754_v3, %v2754_v3  ;;  %v3060_v63 = vpop.f32.mrb[14].mxu1 }
 0x13d   : > { %2788 = vst.msk [vmem:[#allocation2 + $0xd] sm:$0x1] %vm616_vm9, %v2754_v3  ;;  %2628 = vst.msk [vmem:[#allocation2 + $0x7c] sm:$0x1] %vm616_vm9, %v2612_v13  ;;  %v2912_v53 = vrot.slane %v2898_v9, %v6097_v46  ;;  %v2913_v52 = vcombine.high %v2905_v8, %v2905_v8  ;;  %v2921_v55 = vrot.slane %v2905_v8, %v6097_v46  ;;  %v4834_v57 = vsub.f32 0.0, %v4830_v15  ;;  %v5249_v11 = vpop.f32.mrb[15].mxu1 }
 0x13e   : > { %v2775_v58 = vrot.slane %v2747_v28, %v6097_v46  ;;  %v2777_v60 = vcombine.high %v2761_v29, %v2761_v29  ;;  %v2778_v7 = vcombine.high %v2768_v38, %v2768_v38  ;;  %2789 = vst.msk [vmem:[#allocation2 + $0x1d] sm:$0x1] %vm616_vm9, %v2768_v38  ;;  %2790 = vst.msk [vmem:[#allocation2 + $0x2d] sm:$0x1] %vm616_vm9, %v2776_v39 }
 0x13f   : > { %2792 = vst.msk [vmem:[#allocation2 + $0x4d] sm:$0x1] %vm616_vm9, %v2761_v29  ;;  %v3153_v6 = vadd.f32 %v3145_v14, %v6275_v59  ;;  %v2914_v3 = vcombine.high %v2912_v53, %v2912_v53  ;;  %v2928_v13 = vrot.slane %v2912_v53, %v6097_v46  ;;  %v2935_v9 = vrot.slane %v2913_v52, %v6097_v46 }
 0x140   : > { %v2943_v8 = vcombine.high %v2921_v55, %v2921_v55  ;;  %2955 = vst.msk [vmem:[#allocation2 + $0xe] sm:$0x1] %vm616_vm9, %v2921_v55  ;;  %v2779_v15 = vcombine.high %v2775_v58, %v2775_v58  ;;  %2791 = vst.msk [vmem:[#allocation2 + $0x3d] sm:$0x1] %vm616_vm9, %v2778_v7  ;;  %v3065_v28 = vcombine.high %v3060_v63, %v3060_v63  ;;  %v4840_v14 = vmul.f32 1.442695, %v4834_v57 }
 0x141   : > { %2793 = vst.msk [vmem:[#allocation2 + $0x5d] sm:$0x1] %vm616_vm9, %v2775_v58  ;;  %2794 = vst.msk [vmem:[#allocation2 + $0x6d] sm:$0x1] %vm616_vm9, %v2777_v60  ;;  %v3072_v29 = vrot.slane %v3060_v63, %v6097_v46  ;;  %v2942_v38 = vrot.slane %v2914_v3, %v6097_v46  ;;  %v2944_v39 = vcombine.high %v2928_v13, %v2928_v13  ;;  %v3155_v52 = vrot.slane %v6270_v40, 2 }
 0x142   : > { %v2945_v53 = vcombine.high %v2935_v9, %v2935_v9  ;;  %2956 = vst.msk [vmem:[#allocation2 + $0x1e] sm:$0x1] %vm616_vm9, %v2935_v9  ;;  %2957 = vst.msk [vmem:[#allocation2 + $0x2e] sm:$0x1] %vm616_vm9, %v2943_v8  ;;  %v3079_v55 = vrot.slane %v3065_v28, %v6097_v46  ;;  %5364 = vpow2.f32 %v4840_v14  ;;  %v3157_v7 = vrot.slane %v6275_v59, 2  ;;  %v5363_v3 = vpop.eup %5362 }
 0x143   : > { %2959 = vst.msk [vmem:[#allocation2 + $0x4e] sm:$0x1] %vm616_vm9, %v2928_v13  ;;  %2795 = vst.msk [vmem:[#allocation2 + $0x7d] sm:$0x1] %vm616_vm9, %v2779_v15  ;;  %v3080_v58 = vcombine.high %v3072_v29, %v3072_v29  ;;  %v3088_v60 = vrot.slane %v3072_v29, %v6097_v46  ;;  %v2946_v57 = vcombine.high %v2942_v38, %v2942_v38  ;;  %v4844_v15 = vadd.f32 1.0, %v5363_v3 }
 0x144   : > { %2958 = vst.msk [vmem:[#allocation2 + $0x3e] sm:$0x1] %vm616_vm9, %v2945_v53  ;;  %2960 = vst.msk [vmem:[#allocation2 + $0x5e] sm:$0x1] %vm616_vm9, %v2942_v38  ;;  %v3163_v63 = vadd.f32 %v3155_v52, %v6325_v62  ;;  %v3081_v13 = vcombine.high %v3079_v55, %v3079_v55  ;;  %v3095_v9 = vrot.slane %v3079_v55, %v6097_v46  ;;  %v4847_v28 = vmul.f32 -0.5, %v5363_v3  ;;  %v6381_v52 = vld [vmem:[%s6932_s6] sm:$0xff] }
 0x145   : > { %2961 = vst.msk [vmem:[#allocation2 + $0x6e] sm:$0x1] %vm616_vm9, %v2944_v39  ;;  %v3102_v8 = vrot.slane %v3080_v58, %v6097_v46  ;;  %v3110_v11 = vcombine.high %v3088_v60, %v3088_v60  ;;  %3122 = vst.msk [vmem:[#allocation2 + $0xf] sm:$0x1] %vm616_vm9, %v3088_v60  ;;  %v3165_v29 = vadd.f32 %v3157_v7, %v3153_v6  ;;  %v3167_v14 = vrot.slane %v6270_v40, 3  ;;  %v6386_v6 = vld [vmem:[%s6932_s6 + $0x8] sm:$0xff] }
 0x146   : > { %2962 = vst.msk [vmem:[#allocation2 + $0x7e] sm:$0x1] %vm616_vm9, %v2946_v57  ;;  %v3109_v38 = vrot.slane %v3081_v13, %v6097_v46  ;;  %v3111_v39 = vcombine.high %v3095_v9, %v3095_v9  ;;  %3126 = vst.msk [vmem:[#allocation2 + $0x4f] sm:$0x1] %vm616_vm9, %v3095_v9  ;;  %v3169_v53 = vrot.slane %v6275_v59, 3  ;;  %5366 = vlog2.f32 %v4844_v15 }
 0x147   : > { %v3112_v62 = vcombine.high %v3102_v8, %v3102_v8  ;;  %3123 = vst.msk [vmem:[#allocation2 + $0x1f] sm:$0x1] %vm616_vm9, %v3102_v8  ;;  %3124 = vst.msk [vmem:[#allocation2 + $0x2f] sm:$0x1] %vm616_vm9, %v3110_v11  ;;  %v4848_v46 = vadd.f32 1.0, %v4847_v28  ;;  %v3175_v58 = vadd.f32 %v3167_v14, %v3163_v63  ;;  %v3179_v7 = vrot.slane %v6270_v40, 4 }
 0x148   : > { %v4850_v55 = vand.u32 2147483647, %v5363_v3  ;;  %v3113_v60 = vcombine.high %v3109_v38, %v3109_v38  ;;  %3127 = vst.msk [vmem:[#allocation2 + $0x5f] sm:$0x1] %vm616_vm9, %v3109_v38  ;;  %3128 = vst.msk [vmem:[#allocation2 + $0x6f] sm:$0x1] %vm616_vm9, %v3111_v39  ;;  %v3177_v57 = vadd.f32 %v3169_v53, %v3165_v29 }
 0x149   : > { %3125 = vst.msk [vmem:[#allocation2 + $0x3f] sm:$0x1] %vm616_vm9, %v3112_v62  ;;  %v3181_v13 = vrot.slane %v6275_v59, 4  ;;  %v6396_v8 = vsub.s32 0, %v6090_v43  ;;  %v4824_v63 = vmax.f32 %v6282_v2, 0.0  ;;  %v4849_v11 = vmul.f32 %v5363_v3, %v4848_v46  ;;  %v6402_v29 = vld [vmem:[#allocation2 + $0x20] sm:$0xff] }
 0x14a   : > { %3129 = vst.msk [vmem:[#allocation2 + $0x7f] sm:$0x1] %vm616_vm9, %v3113_v60  ;;  %v3191_v28 = vrot.slane %v6270_v40, 5  ;;  %v6404_v14 = vld [vmem:[#allocation2 + $0x30] sm:$0xff]  ;;  %vm6406_vm10 = vcmp.lt.f32.partialorder %v4850_v55, 0.0004427343  ;;  %v3187_v62 = vadd.f32 %v3179_v7, %v3175_v58  ;;  %v6422_v58 = vcombine.high %v6402_v29, %v6402_v29 }
 0x14b   : > { %v3189_v53 = vadd.f32 %v3181_v13, %v3177_v57  ;;  %v3193_v3 = vrot.slane %v6275_v59, 5  ;;  %v3203_v46 = vrot.slane %v6270_v40, 6  ;;  %v3205_v9 = vrot.slane %v6275_v59, 6 }
 0x14c   : > { %v6410_v39 = vld [vmem:[#allocation2 + $0x8] sm:$0xff]  ;;  %v5365_v60 = vpop.eup %5364  ;;  %v3217_v55 = vrot.slane %v6275_v59, 7  ;;  %v6426_v57 = vcombine.high %v6404_v14, %v6404_v14 }
 0x14d   : > { %v3144_v0 = vrot.slane %v6410_v39, 1  ;;  %v4862_v17 = vadd.f32 1.0, %v5365_v60  ;;  %v4865_v26 = vmul.f32 -0.5, %v5365_v60  ;;  %v3156_v15 = vrot.slane %v6410_v39, 2 }
 0x14e   : > { %v6418_v51 = vld [vmem:[#allocation2 + $0x18] sm:$0xff]  ;;  %v4868_v12 = vand.u32 2147483647, %v5365_v60  ;;  %v3168_v5 = vrot.slane %v6410_v39, 3  ;;  %v3180_v47 = vrot.slane %v6410_v39, 4  ;;  %v3201_v32 = vadd.f32 %v3193_v3, %v3189_v53 }
 0x14f   : > { %v3146_v7 = vrot.slane %v6418_v51, 1  ;;  %v3152_v13 = vadd.f32 %v3144_v0, %v6410_v39  ;;  %v4796_v61 = vld [vmem:[#allocation2 + $0x68] sm:$0xff]  ;;  %5368 = vlog2.f32 %v4862_v17  ;;  %v4866_v44 = vadd.f32 1.0, %v4865_v26 }
 0x150   : > { %v6435_v45 = vadd.f32 %v6264_v25, %v4796_v61  ;;  %v5367_v35 = vpop.eup %5366  ;;  %v3158_v34 = vrot.slane %v6418_v51, 2  ;;  %v3170_v59 = vrot.slane %v6418_v51, 3  ;;  %v3192_v17 = vrot.slane %v6410_v39, 5 }
 0x151   : > { %v3154_v37 = vadd.f32 %v3146_v7, %v6418_v51  ;;  %v3164_v36 = vadd.f32 %v3156_v15, %v3152_v13  ;;  %v4798_v0 = vld [vmem:[#allocation2 + $0x78] sm:$0xff]  ;;  %v4846_v33 = vmul.f32 0.6931472, %v5367_v35  ;;  %v3199_v61 = vadd.f32 %v3191_v28, %v3187_v62  ;;  %v6454_v62 = vld [vmem:[#allocation2 + $0x28] sm:$0xff] }
 0x152   : > { %v4829_v31 = vand.u32 2147483647, %v6435_v45  ;;  %v6443_v23 = vadd.f32 %v6298_v50, %v4798_v0  ;;  %vm6445_vm11 = vcmp.lt.f32.partialorder %v4868_v12, 0.0004427343  ;;  %v3182_v7 = vrot.slane %v6418_v51, 4 }
 0x153   : > { %v3166_v25 = vadd.f32 %v3158_v34, %v3154_v37  ;;  %v3176_v15 = vadd.f32 %v3168_v5, %v3164_v36  ;;  %v3194_v13 = vrot.slane %v6418_v51, 5  ;;  %v4852_v53 = vsel %vm6406_vm10, %v4849_v11, %v4846_v33 }
 0x154   : > { %v4833_v35 = vsub.f32 0.0, %v4829_v31  ;;  %v4831_v3 = vand.u32 2147483647, %v6443_v23  ;;  %v4867_v24 = vmul.f32 %v5365_v60, %v4866_v44  ;;  %v4880_v50 = vadd.f32 %v4852_v53, %v4824_v63  ;;  %v6458_v63 = vld [vmem:[#allocation2 + $0x38] sm:$0xff] }
 0x155   : > { %v3178_v0 = vadd.f32 %v3170_v59, %v3166_v25  ;;  %v3188_v28 = vadd.f32 %v3180_v47, %v3176_v15  ;;  %v3213_v12 = vadd.f32 %v3205_v9, %v3201_v32  ;;  %v3204_v36 = vrot.slane %v6410_v39, 6 }
 0x156   : > { %v4838_v48 = vmul.f32 1.442695, %v4833_v35  ;;  %v4835_v34 = vsub.f32 0.0, %v4831_v3  ;;  %v3211_v37 = vadd.f32 %v3203_v46, %v3199_v61  ;;  %5370 = vtanh.f32 %v4880_v50 }
 0x157   : > { %v3190_v38 = vadd.f32 %v3182_v7, %v3178_v0  ;;  %v3200_v33 = vadd.f32 %v3192_v17, %v3188_v28  ;;  %v3225_v44 = vadd.f32 %v3217_v55, %v3213_v12  ;;  %v6462_v32 = vcombine.high %v6454_v62, %v6454_v62 }
 0x158   : > { %5372 = vpow2.f32 %v4838_v48  ;;  %v4842_v31 = vmul.f32 1.442695, %v4835_v34  ;;  %v3206_v11 = vrot.slane %v6418_v51, 6  ;;  %v3216_v60 = vrot.slane %v6410_v39, 7 }
 0x159   : > { %v5369_v47 = vpop.eup %5368  ;;  %v3202_v9 = vadd.f32 %v3194_v13, %v3190_v38  ;;  %v3212_v46 = vadd.f32 %v3204_v36, %v3200_v33  ;;  %v3218_v48 = vrot.slane %v6418_v51, 7  ;;  %v6985_v55 = vrot.slane %v6270_v40, 7 }
 0x15a   : > { %5374 = vpow2.f32 %v4842_v31  ;;  %v4864_v59 = vmul.f32 0.6931472, %v5369_v47  ;;  %v3229_v15 = vmul.f32 0.125, %v3225_v44  ;;  %v6472_v7 = vcombine.high %v6458_v63, %v6458_v63 }
 0x15b   : > { %v3223_v17 = vadd.f32 %v6985_v55, %v3211_v37  ;;  %v3214_v61 = vadd.f32 %v3206_v11, %v3202_v9  ;;  %v3224_v25 = vadd.f32 %v3216_v60, %v3212_v46  ;;  %v5013_v39 = vrot.slane %v6422_v58, 9 }
 0x15c   : > { %v4870_v13 = vsel %vm6445_vm11, %v4867_v24, %v4864_v59  ;;  %v5014_v53 = vrot.slane %v6454_v62, 9  ;;  %v5015_v51 = vrot.slane %v6462_v32, 9  ;;  %v6986_v40 = vmax.f32 %v6311_v10, 0.0 }
 0x15d   : > { %v3226_v3 = vadd.f32 %v3218_v48, %v3214_v61  ;;  %v3228_v50 = vmul.f32 0.125, %v3224_v25  ;;  %v5016_v0 = vrot.slane %v6404_v14, 9  ;;  %v3227_v12 = vmul.f32 0.125, %v3223_v17 }
 0x15e   : > { %v4882_v35 = vadd.f32 %v4870_v13, %v6986_v40  ;;  %v5017_v24 = vrot.slane %v6426_v57, 9  ;;  %v5018_v26 = vrot.slane %v6458_v63, 9  ;;  %v5019_v37 = vrot.slane %v6472_v7, 9 }
 0x15f   : > { %v3230_v34 = vmul.f32 0.125, %v3226_v3  ;;  %v3235_v36 = vrot.slane %v3228_v50, 7  ;;  %v3237_v38 = vrot.slane %v3229_v15, 6  ;;  %v6987_v33 = vrot.slane %v6402_v29, 9 }
 0x160   : > { %5376 = vtanh.f32 %v4882_v35  ;;  %v3586_v44 = vadd.f32 %v5013_v39, %v6422_v58  ;;  %v3587_v47 = vadd.f32 %v5014_v53, %v6454_v62  ;;  %v5371_v9 = vpop.eup %5370  ;;  %v3588_v60 = vadd.f32 %v5015_v51, %v6462_v32 }
 0x161   : > { %v3585_v31 = vadd.f32 %v6987_v33, %v6402_v29  ;;  %v3236_v11 = vsel %vm463_vm1, %v3235_v36, %v3227_v12  ;;  %v3239_v46 = vrot.slane %v3230_v34, 5  ;;  %v3589_v59 = vadd.f32 %v5016_v0, %v6404_v14 }
 0x162   : > { %v6496_v48 = vpop.eup %5372  ;;  %v4888_v55 = vmul.f32 %v5371_v9, %v6282_v2  ;;  %v3238_v17 = vsel %vm466_vm2, %v3237_v38, %v3236_v11  ;;  %v3590_v61 = vadd.f32 %v5017_v24, %v6426_v57  ;;  %v3591_v25 = vadd.f32 %v5018_v26, %v6458_v63 }
 0x163   : > { %v4853_v15 = vadd.f32 1.0, %v6496_v48  ;;  %v4856_v13 = vmul.f32 -0.5, %v6496_v48  ;;  %v3240_v39 = vsel %vm469_vm3, %v3239_v46, %v3238_v17  ;;  %v3592_v53 = vadd.f32 %v5019_v37, %v6472_v7 }
 0x164   : > { %v6506_v51 = vpop.eup %5374  ;;  %5102 = vst.msk [vmem:[%s6508_s15 + $0xe0] sm:$0xff] %vm428_vm12, %v4888_v55  ;;  %5255 = vmatmul.mubr.msk.f32.vlgmr.msra.gmra.mrb[16].mxu0 %vm428_vm12, %v3240_v39  ;;  %v5020_v2 = vrot.slane %v6402_v29, 10  ;;  %v5021_v40 = vrot.slane %v6422_v58, 10  ;;  %v5022_v35 = vrot.slane %v6454_v62, 10  ;;  %v5023_v3 = vrot.slane %v6462_v32, 10 }
 0x165   : > { %5378 = vlog2.f32 %v4853_v15  ;;  %v4859_v50 = vand.u32 2147483647, %v6496_v48  ;;  %v4871_v0 = vadd.f32 1.0, %v6506_v51  ;;  %v6988_v12 = vpack.c.bf16 %v6386_v6, %v6381_v52 }
 0x166   : > { %v6989_v24 = vmov 0.0   ;;  %v5024_v26 = vrot.slane %v6404_v14, 10  ;;  %v4874_v34 = vmul.f32 -0.5, %v6506_v51  ;;  %v5025_v36 = vrot.slane %v6426_v57, 10 }
 0x167   : > { %5300 = vmatpush3.bf16.msra.mxu0 %v6988_v12  ;;  %5269 = vmatprep.mubr.msk.f32.mxu0 %vm5487_vm0, %v6989_v24  ;;  %v5026_v37 = vrot.slane %v6458_v63, 10  ;;  %v5027_v38 = vrot.slane %v6472_v7, 10  ;;  %v4857_v33 = vadd.f32 1.0, %v4856_v13  ;;  %5380 = vlog2.f32 %v4871_v0 }
 0x168   : > { %v3617_v9 = vadd.f32 %v5020_v2, %v3585_v31  ;;  %v3618_v11 = vadd.f32 %v5021_v40, %v3586_v44  ;;  %v4875_v46 = vadd.f32 1.0, %v4874_v34  ;;  %v3619_v52 = vadd.f32 %v5022_v35, %v3587_v47 }
 0x169   : > { %v3620_v6 = vadd.f32 %v5023_v3, %v3588_v60  ;;  %v3621_v55 = vadd.f32 %v5024_v26, %v3589_v59  ;;  %v3622_v15 = vadd.f32 %v5025_v36, %v3590_v61  ;;  %v3623_v39 = vadd.f32 %v5026_v37, %v3591_v25 }
 0x16a   : > { %v5377_v17 = vpop.eup %5376  ;;  %v3624_v12 = vadd.f32 %v5027_v38, %v3592_v53  ;;  %v5028_v24 = vrot.slane %v6402_v29, 11  ;;  %v5029_v5 = vrot.slane %v6422_v58, 11  ;;  %v5030_v13 = vrot.slane %v6454_v62, 11 }
 0x16b   : > { %v4890_v28 = vmul.f32 %v5377_v17, %v6311_v10  ;;  %v5031_v31 = vrot.slane %v6462_v32, 11  ;;  %v5032_v44 = vrot.slane %v6404_v14, 11  ;;  %v5033_v47 = vrot.slane %v6426_v57, 11 }
 0x16c   : > { %v5034_v60 = vrot.slane %v6458_v63, 11  ;;  %v5035_v59 = vrot.slane %v6472_v7, 11  ;;  %v3649_v61 = vadd.f32 %v5028_v24, %v3617_v9  ;;  %v3650_v29 = vadd.f32 %v5029_v5, %v3618_v11 }
 0x16d   : > { %5104 = vst.msk [vmem:[%s6508_s15 + $0xf0] sm:$0xff] %vm428_vm12, %v4890_v28  ;;  %v3651_v25 = vadd.f32 %v5030_v13, %v3619_v52  ;;  %v3652_v10 = vadd.f32 %v5031_v31, %v3620_v6  ;;  %v3653_v53 = vadd.f32 %v5032_v44, %v3621_v55  ;;  %v3654_v58 = vadd.f32 %v5033_v47, %v3622_v15 }
 0x16e   : > { %v3655_v2 = vadd.f32 %v5034_v60, %v3623_v39  ;;  %v3656_v62 = vadd.f32 %v5035_v59, %v3624_v12  ;;  %v3657_v40 = vmul.f32 0.25, %v3649_v61  ;;  %v3658_v32 = vmul.f32 0.25, %v3650_v29 }
 0x16f   : > { %v3659_v35 = vmul.f32 0.25, %v3651_v25  ;;  %v3660_v14 = vmul.f32 0.25, %v3652_v10  ;;  %v5379_v3 = vpop.eup %5378  ;;  %v4858_v57 = vmul.f32 %v6496_v48, %v4857_v33  ;;  %v4877_v63 = vand.u32 2147483647, %v6506_v51  ;;  %v3138_v10 = vld [vmem:[%s6930_s4] sm:$0x3] }
 0x170   : > { %v3661_v7 = vmul.f32 0.25, %v3653_v53  ;;  %v3662_v0 = vmul.f32 0.25, %v3654_v58  ;;  %v4855_v28 = vmul.f32 0.6931472, %v5379_v3  ;;  %v3676_v5 = vrot.slane %v3657_v40, %v6396_v8  ;;  %v4067_v53 = vld [vmem:[%s6935_s9] sm:$0xff]  ;;  %5257 = vmatprep.subr.msk.mxu1 %vm3444_vm15, %v3138_v10 }
 0x171   : > { %v3680_v26 = vrot.slane %v3658_v32, %v6396_v8  ;;  %v3684_v34 = vrot.slane %v3659_v35, %v6396_v8  ;;  %v5381_v36 = vpop.eup %5380  ;;  %vm4860_vm13 = vcmp.lt.f32.partialorder %v4859_v50, 0.0004427343  ;;  %v4876_v37 = vmul.f32 %v6506_v51, %v4875_v46  ;;  %5258 = vmatpush3.msk.msra.mxu1 %vm3444_vm15, %v3138_v10 }
 0x172   : > { %v3663_v38 = vmul.f32 0.25, %v3655_v2  ;;  %v3688_v9 = vrot.slane %v3660_v14, %v6396_v8  ;;  %v4861_v11 = vsel %vm4860_vm13, %v4858_v57, %v4855_v28  ;;  %v4873_v48 = vmul.f32 0.6931472, %v5381_v36  ;;  %v4060_v28 = vld [vmem:[#allocation2 + $0x40] sm:$0xff] }
 0x173   : > { %v3664_v33 = vmul.f32 0.25, %v3656_v62  ;;  %v3705_v52 = vsel %vm463_vm1, %v3680_v26, %v3676_v5  ;;  %v6990_v6 = vmax.f32 %v6435_v45, 0.0  ;;  %vm4878_vm14 = vcmp.lt.f32.partialorder %v4877_v63, 0.0004427343 }
 0x174   : > { %v3692_v17 = vrot.slane %v3661_v7, %v6396_v8  ;;  %v3706_v15 = vsel %vm466_vm2, %v3684_v34, %v3705_v52  ;;  %v4879_v39 = vsel %vm4878_vm14, %v4876_v37, %v4873_v48  ;;  %v3696_v51 = vrot.slane %v3662_v0, %v6396_v8 }
 0x175   : > { %v4881_v55 = vadd.f32 %v4861_v11, %v6990_v6  ;;  %v3707_v50 = vsel %vm469_vm3, %v3688_v9, %v3706_v15  ;;  %v6991_v46 = vmax.f32 %v6443_v23, 0.0  ;;  %v3700_v24 = vrot.slane %v3663_v38, %v6396_v8  ;;  %v4061_v11 = vld [vmem:[#allocation2 + $0x48] sm:$0xff] }
 0x176   : > { %v3708_v13 = vsel %vm472_vm4, %v3692_v17, %v3707_v50  ;;  %v3704_v31 = vrot.slane %v3664_v33, %v6396_v8  ;;  %vm3965_vm0 = vcmask 1043456   ;;  %v5491_v2 = vmov 1983009808  }
 0x177   : > { %5382 = vtanh.f32 %v4881_v55  ;;  %v4883_v12 = vadd.f32 %v4879_v39, %v6991_v46  ;;  %v3709_v44 = vsel %vm475_vm5, %v3696_v51, %v3708_v13  ;;  %v3315_v62 = vunpack.c.l.s4 %v5491_v2  ;;  %v4062_v55 = vld [vmem:[#allocation2 + $0x50] sm:$0xff] }
 0x178   : > { %v3710_v47 = vsel %vm478_vm6, %v3700_v24, %v3709_v44  ;;  %v4074_v37 = vcombine.high %v4060_v28, %v4060_v28  ;;  %v4108_v10 = vcombine.high %v4062_v55, %v4062_v55 }
 0x179   : > { %5384 = vtanh.f32 %v4883_v12  ;;  %v3711_v60 = vsel %vm481_vm7, %v3704_v31, %v3710_v47  ;;  %v3316_v40 = vunpack.c.0.s8 %v3315_v62 }
 0x17a   : > { %5270 = vmatmul.mubr.msk.f32.vlgmr.msra.gmra.mrb[18].mxu0 %vm428_vm12, %v3711_v60 }
 0x17b   : > { %v6585_v32 = vsub.s32 %v3316_v40, %v6090_v43 }
 0x17d   : > { %v4081_v38 = vrot.slane %v4060_v28, %v6585_v32  ;;  %v4098_v33 = vrot.slane %v4061_v11, %v6585_v32  ;;  %v4115_v24 = vrot.slane %v4062_v55, %v6585_v32 }
 0x17f   : > { %v4089_v48 = vcombine.high %v4081_v38, %v4081_v38  ;;  %v4106_v15 = vcombine.high %v4098_v33, %v4098_v33  ;;  %v5056_v39 = vrot.slane %v4081_v38, 9  ;;  %v5060_v47 = vrot.slane %v4098_v33, 9 }
 0x181   : > { %v5383_v59 = vpop.eup %5382  ;;  %v5057_v6 = vrot.slane %v4089_v48, 9 }
 0x182   : > { %v4889_v61 = vmul.f32 %v5383_v59, %v6435_v45  ;;  %v4068_v45 = vld [vmem:[%s6935_s9 + $0x8] sm:$0xff] }
 0x183   : > { %v5385_v29 = vpop.eup %5384  ;;  %v6578_v58 = vpack.c.bf16 %v4068_v45, %v4067_v53  ;;  %v4207_v60 = vadd.f32 %v5057_v6, %v4089_v48  ;;  %v4206_v45 = vadd.f32 %v5056_v39, %v4081_v38 }
 0x184   : > { %5103 = vst.msk [vmem:[%s6508_s15 + $0xe8] sm:$0xff] %vm428_vm12, %v4889_v61  ;;  %v4891_v25 = vmul.f32 %v5385_v29, %v6443_v23  ;;  %v3548_v23 = vld [vmem:[%s6933_s7] sm:$0xf] }
 0x185   : > { %5272 = vmatprep.subr.msk.mxu0 %vm3965_vm0, %v3548_v23  ;;  %5302 = vmatprep.subr.bf16.mxu1 %v6578_v58 }
 0x186   : > { %5105 = vst.msk [vmem:[%s6508_s15 + $0xf8] sm:$0xff] %vm428_vm12, %v4891_v25  ;;  %5273 = vmatpush3.msk.msra.mxu0 %vm3965_vm0, %v3548_v23  ;;  %v5061_v25 = vrot.slane %v4106_v15, 9 }
 0x237   : > { %v3309_v35 = vpop.f32.mrb[16].mxu0 }
 0x238   : > { %v3320_v14 = vrot.slane %v3309_v35, %v6585_v32  ;;  %v5256_v3 = vpop.f32.mrb[17].mxu0  ;;  %v4123_v35 = vcombine.high %v4115_v24, %v4115_v24 }
 0x239   : > { %v4223_v3 = vmul.f32 0.5, %v4207_v60 }
 0x23a   : > { %v3321_v57 = vcombine.high %v3320_v14, %v3320_v14  ;;  %v6589_v63 = vadd.f32 %v6050_v18, %v3320_v14  ;;  %v4088_v18 = vrot.slane %v4074_v37, %v6585_v32  ;;  %v4210_v14 = vadd.f32 %v5060_v47, %v4098_v33 }
 0x23b   : > { %v4261_v33 = vrot.slane %v4223_v3, %v6396_v8 }
 0x23c   : > { %v6592_v7 = vadd.f32 %v6054_v19, %v3321_v57  ;;  %v3346_v0 = vand.u32 2147483647, %v6589_v63  ;;  %v4091_v19 = vcombine.high %v4061_v11, %v4061_v11  ;;  %v4090_v52 = vcombine.high %v4088_v18, %v4088_v18 }
 0x23d   : > { %v5058_v51 = vrot.slane %v4088_v18, 9  ;;  %v3344_v3 = vmax.f32 %v6589_v63, 0.0 }
 0x23e   : > { %v3347_v5 = vand.u32 2147483647, %v6592_v7  ;;  %v3348_v26 = vsub.f32 0.0, %v3346_v0  ;;  %v6600_v17 = vrot.slane %v4091_v19, %v6585_v32  ;;  %v5059_v12 = vrot.slane %v4090_v52, 9 }
 0x23f   : > { %v4208_v23 = vadd.f32 %v5058_v51, %v4088_v18  ;;  %v5065_v18 = vrot.slane %v4123_v35, 9  ;;  %v6628_v19 = vmul.f32 0.5, %v4210_v14  ;;  %v5064_v51 = vrot.slane %v4115_v24, 9 }
 0x240   : > { %v3349_v34 = vsub.f32 0.0, %v3347_v5  ;;  %v3350_v36 = vmul.f32 1.442695, %v3348_v26  ;;  %v6613_v29 = vcombine.high %v6600_v17, %v6600_v17  ;;  %v5062_v62 = vrot.slane %v6600_v17, 9  ;;  %v4063_v5 = vld [vmem:[#allocation2 + $0x58] sm:$0xff] }
 0x241   : > { %v4209_v40 = vadd.f32 %v5059_v12, %v4090_v52  ;;  %v4122_v26 = vrot.slane %v4108_v10, %v6585_v32  ;;  %v4224_v37 = vmul.f32 0.5, %v4208_v23  ;;  %v4132_v52 = vrot.slane %v4063_v5, %v6585_v32 }
 0x242   : > { %5386 = vpow2.f32 %v3350_v36  ;;  %v3352_v9 = vmul.f32 1.442695, %v3349_v34  ;;  %v5063_v28 = vrot.slane %v6613_v29, 9  ;;  %v4211_v34 = vadd.f32 %v5061_v25, %v4106_v15 }
 0x243   : > { %v4222_v36 = vmul.f32 0.5, %v4206_v45  ;;  %v6626_v11 = vmul.f32 0.5, %v4209_v40  ;;  %v4124_v39 = vcombine.high %v4122_v26, %v4122_v26  ;;  %v5066_v12 = vrot.slane %v4122_v26, 9 }
 0x244   : > { %5388 = vpow2.f32 %v3352_v9  ;;  %v4125_v10 = vcombine.high %v4063_v5, %v4063_v5 }
 0x245   : > { %v5067_v40 = vrot.slane %v4124_v39, 9 }
 0x24c   : > { %v6602_v50 = vpop.eup %5386 }
 0x24d   : > { %v3780_v46 = vpop.f32.mrb[18].mxu0  ;;  %v3354_v13 = vadd.f32 1.0, %v6602_v50  ;;  %v3357_v57 = vmul.f32 -0.5, %v6602_v50  ;;  %v3360_v15 = vand.u32 2147483647, %v6602_v50 }
 0x24e   : > { %v3785_v31 = vcombine.high %v3780_v46, %v3780_v46  ;;  %v5271_v44 = vpop.f32.mrb[19].mxu0  ;;  %v6606_v59 = vpop.eup %5388  ;;  %v6609_v61 = vadd.f32 %v6072_v27, %v3780_v46  ;;  %v4257_v46 = vrot.slane %v4222_v36, %v6396_v8 }
 0x24f   : > { %5390 = vlog2.f32 %v3354_v13  ;;  %v3363_v53 = vadd.f32 1.0, %v6606_v59  ;;  %v3366_v38 = vmul.f32 -0.5, %v6606_v59  ;;  %v3358_v6 = vadd.f32 1.0, %v3357_v57 }
 0x250   : > { %v6617_v2 = vadd.f32 %v6074_v30, %v3785_v31  ;;  %v3809_v27 = vand.u32 2147483647, %v6609_v61  ;;  %v4265_v31 = vrot.slane %v4224_v37, %v6396_v8  ;;  %v4215_v44 = vadd.f32 %v5065_v18, %v4123_v35 }
 0x251   : > { %5392 = vlog2.f32 %v3363_v53  ;;  %v3367_v13 = vadd.f32 1.0, %v3366_v38  ;;  %v3369_v60 = vand.u32 2147483647, %v6606_v59  ;;  %v4318_v25 = vsel %vm463_vm1, %v4261_v33, %v4257_v46 }
 0x252   : > { %v3810_v0 = vand.u32 2147483647, %v6617_v2  ;;  %v3811_v30 = vsub.f32 0.0, %v3809_v27  ;;  %v4140_v53 = vcombine.high %v4132_v52, %v4132_v52  ;;  %v3359_v23 = vmul.f32 %v6602_v50, %v3358_v6 }
 0x253   : > { %v4214_v27 = vadd.f32 %v5064_v51, %v4115_v24  ;;  %vm3361_vm9 = vcmp.lt.f32.partialorder %v3360_v15, 0.0004427343  ;;  %v5068_v57 = vrot.slane %v4132_v52, 9  ;;  %v3368_v36 = vmul.f32 %v6606_v59, %v3367_v13 }
 0x254   : > { %v3812_v9 = vsub.f32 0.0, %v3810_v0  ;;  %v3813_v48 = vmul.f32 1.442695, %v3811_v30  ;;  %v4216_v0 = vadd.f32 %v5066_v12, %v4122_v26  ;;  %v4231_v37 = vmul.f32 0.5, %v4215_v44 }
 0x255   : > { %v3345_v38 = vmax.f32 %v6592_v7, 0.0  ;;  %vm3370_vm10 = vcmp.lt.f32.partialorder %v3369_v60, 0.0004427343  ;;  %v5069_v18 = vrot.slane %v4140_v53, 9  ;;  %v4217_v24 = vadd.f32 %v5067_v40, %v4124_v39 }
 0x256   : > { %v3815_v55 = vmul.f32 1.442695, %v3812_v9  ;;  %5394 = vpow2.f32 %v3813_v48  ;;  %v4139_v9 = vrot.slane %v4125_v10, %v6585_v32  ;;  %v4230_v48 = vmul.f32 0.5, %v4214_v27 }
 0x257   : > { %v4218_v6 = vadd.f32 %v5068_v57, %v4132_v52  ;;  %v4212_v26 = vadd.f32 %v5062_v62, %v6600_v17  ;;  %v4227_v59 = vmul.f32 0.5, %v4211_v34  ;;  %v4269_v51 = vrot.slane %v6626_v11, %v6396_v8 }
 0x258   : > { %5396 = vpow2.f32 %v3815_v55  ;;  %v4232_v55 = vmul.f32 0.5, %v4216_v0  ;;  %v4293_v15 = vrot.slane %v4231_v37, %v6396_v8  ;;  %v4273_v32 = vrot.slane %v6628_v19, %v6396_v8 }
 0x259   : > { %v5391_v47 = vpop.eup %5390  ;;  %v4319_v39 = vsel %vm466_vm2, %v4265_v31, %v4318_v25  ;;  %v4141_v12 = vcombine.high %v4139_v9, %v4139_v9  ;;  %v5070_v44 = vrot.slane %v4139_v9, 9  ;;  %v4289_v17 = vrot.slane %v4230_v48, %v6396_v8 }
 0x25a   : > { %v3356_v45 = vmul.f32 0.6931472, %v5391_v47  ;;  %v4233_v47 = vmul.f32 0.5, %v4217_v24  ;;  %v4219_v34 = vadd.f32 %v5069_v18, %v4140_v53  ;;  %v4234_v11 = vmul.f32 0.5, %v4218_v6 }
 0x25b   : > { %v5393_v14 = vpop.eup %5392  ;;  %v4297_v60 = vrot.slane %v4232_v55, %v6396_v8  ;;  %v4213_v19 = vadd.f32 %v5063_v28, %v6613_v29  ;;  %v6659_v31 = vmul.f32 0.5, %v4212_v26  ;;  %v4325_v25 = vsel %vm463_vm1, %v4293_v15, %v4289_v17 }
 0x25c   : > { %v3362_v30 = vsel %vm3361_vm9, %v3359_v23, %v3356_v45  ;;  %v3365_v35 = vmul.f32 0.6931472, %v5393_v14  ;;  %v4277_v45 = vrot.slane %v4227_v59, %v6396_v8  ;;  %v4320_v23 = vsel %vm469_vm3, %v4269_v51, %v4319_v39 }
 0x25d   : > { %v3372_v5 = vadd.f32 %v3362_v30, %v3344_v3  ;;  %v4321_v53 = vsel %vm472_vm4, %v4273_v32, %v4320_v23  ;;  %v5071_v40 = vrot.slane %v4141_v12, 9  ;;  %v4220_v27 = vadd.f32 %v5070_v44, %v4139_v9 }
 0x25e   : > { %v3371_v50 = vsel %vm3370_vm10, %v3368_v36, %v3365_v35  ;;  %v4301_v14 = vrot.slane %v4233_v47, %v6396_v8  ;;  %v4235_v57 = vmul.f32 0.5, %v4219_v34  ;;  %v4305_v29 = vrot.slane %v4234_v11, %v6396_v8 }
 0x25f   : > { %v3373_v33 = vadd.f32 %v3371_v50, %v3345_v38  ;;  %5398 = vtanh.f32 %v3372_v5  ;;  %v4326_v28 = vsel %vm466_vm2, %v4297_v60, %v4325_v25  ;;  %v6670_v0 = vsub.s32 1, %v6090_v43 }
 0x260   : > { %v5395_v46 = vpop.eup %5394  ;;  %v4229_v30 = vmul.f32 0.5, %v4213_v19  ;;  %v4281_v38 = vrot.slane %v6659_v31, %v6396_v8  ;;  %v4322_v5 = vsel %vm475_vm5, %v4277_v45, %v4321_v53  ;;  %v4221_v50 = vadd.f32 %v5071_v40, %v4141_v12 }
 0x261   : > { %5400 = vtanh.f32 %v3373_v33  ;;  %v3817_v13 = vadd.f32 1.0, %v5395_v46  ;;  %v3820_v10 = vmul.f32 -0.5, %v5395_v46  ;;  %v3823_v37 = vand.u32 2147483647, %v5395_v46 }
 0x262   : > { %v6651_v52 = vpop.eup %5396  ;;  %v4236_v18 = vmul.f32 0.5, %v4220_v27  ;;  %v4327_v24 = vsel %vm469_vm3, %v4301_v14, %v4326_v28  ;;  %vm3431_vm1 = vcmask 15360   ;;  %v4309_v6 = vrot.slane %v4235_v57, %v6396_v8 }
 0x263   : > { %v3826_v62 = vadd.f32 1.0, %v6651_v52  ;;  %5402 = vlog2.f32 %v3817_v13  ;;  %v3829_v3 = vmul.f32 -0.5, %v6651_v52  ;;  %v3821_v36 = vadd.f32 1.0, %v3820_v10 }
 0x264   : > { %v4328_v55 = vsel %vm472_vm4, %v4305_v29, %v4327_v24  ;;  %v3807_v15 = vmax.f32 %v6609_v61, 0.0  ;;  %vm6684_vm2 = vcmp.lt.f32.partialorder %v3823_v37, 0.0004427343  ;;  %v3832_v12 = vand.u32 2147483647, %v6651_v52 }
 0x265   : > { %5404 = vlog2.f32 %v3826_v62  ;;  %v3830_v33 = vadd.f32 1.0, %v3829_v3  ;;  %v3822_v32 = vmul.f32 %v5395_v46, %v3821_v36  ;;  %v4237_v57 = vmul.f32 0.5, %v4221_v50 }
 0x266   : > { %vm3833_vm3 = vcmp.lt.f32.partialorder %v3832_v12, 0.0004427343  ;;  %vm3952_vm4 = vcmask 31744  }
 0x267   : > { %v3831_v11 = vmul.f32 %v6651_v52, %v3830_v33  ;;  %v4317_v28 = vrot.slane %v4237_v57, %v6396_v8 }
 0x269   : > { %v5399_v35 = vpop.eup %5398 }
 0x26a   : > { %v3376_v9 = vmul.f32 %v5399_v35, %v6589_v63  ;;  %v3808_v63 = vmax.f32 %v6617_v2, 0.0 }
 0x26b   : > { %v5401_v48 = vpop.eup %5400 }
 0x26c   : > { %v3377_v26 = vmul.f32 %v5401_v48, %v6592_v7  ;;  %v3383_v59 = vrot.slane %v3376_v9, %v6396_v8  ;;  %v3408_v51 = vrot.slane %v3376_v9, %v6670_v0 }
 0x26d   : > { %v5403_v13 = vpop.eup %5402 }
 0x26e   : > { %v3387_v44 = vrot.slane %v3377_v26, %v6396_v8  ;;  %v3399_v7 = vmul.f32 %v6058_v21, %v3383_v59  ;;  %v3412_v47 = vrot.slane %v3377_v26, %v6670_v0  ;;  %v3424_v17 = vmul.f32 %v6060_v22, %v3408_v51 }
 0x26f   : > { %v5405_v62 = vpop.eup %5404  ;;  %v3819_v34 = vmul.f32 0.6931472, %v5403_v13  ;;  %v3398_v46 = vmul.f32 %v6052_v41, %v3383_v59  ;;  %v3423_v60 = vmul.f32 %v6056_v20, %v3408_v51 }
 0x270   : > { %v3828_v19 = vmul.f32 0.6931472, %v5405_v62  ;;  %v3428_v31 = vadd.f32 %v3424_v17, %v3399_v7  ;;  %v3400_v25 = vmul.f32 %v6052_v41, %v3387_v44  ;;  %v3425_v10 = vmul.f32 %v6056_v20, %v3412_v47 }
 0x271   : > { %v3825_v45 = vsel %vm6684_vm2, %v3822_v32, %v3819_v34  ;;  %v3427_v23 = vadd.f32 %v3423_v60, %v3398_v46  ;;  %v3401_v53 = vmul.f32 %v6058_v21, %v3387_v44  ;;  %v3426_v14 = vmul.f32 %v6060_v22, %v3412_v47  ;;  %v6994_v47 = vld [vmem:[#allocation23_spill] sm:$0xff] }
 0x272   : > { %v3834_v40 = vsel %vm3833_vm3, %v3831_v11, %v3828_v19  ;;  %v3835_v27 = vadd.f32 %v3825_v45, %v3807_v15  ;;  %v3429_v52 = vadd.f32 %v3425_v10, %v3400_v25  ;;  %v4285_v41 = vrot.slane %v4229_v30, %v6396_v8 }
 0x273   : > { %v3836_v3 = vadd.f32 %v3834_v40, %v3808_v63  ;;  %5259 = vmatprep.mubr.msk.f32.mxu1 %vm3431_vm1, %v3427_v23  ;;  %v4313_v20 = vrot.slane %v4236_v18, %v6396_v8  ;;  %v4323_v21 = vsel %vm478_vm6, %v4281_v38, %v4322_v5  ;;  %v4329_v22 = vsel %vm475_vm5, %v4309_v6, %v4328_v55 }
 0x274   : > { %5406 = vtanh.f32 %v3835_v27  ;;  %5260 = vmatmul.mubr.msk.f32.vlgmr.msra.gmra.mrb[16].mxu1 %vm3431_vm1, %v3428_v31  ;;  %v3430_v29 = vadd.f32 %v3426_v14, %v3401_v53  ;;  %v4324_v35 = vsel %vm481_vm7, %v4285_v41, %v4323_v21  ;;  %v6721_v38 = vsub.s32 3, %v6090_v43  ;;  %v6995_v14 = vld [vmem:[#allocation7_spill] sm:$0xff]  ;;  %v6996_v41 = vld [vmem:[#allocation6_spill] sm:$0xff] }
 0x275   : > { %5408 = vtanh.f32 %v3836_v3  ;;  %5262 = vmatprep.mubr.msk.f32.mxu1 %vm3431_vm1, %v3429_v52  ;;  %5304 = vmatpush3.bf16.msra.mxu1 %v6578_v58  ;;  %v4330_v30 = vsel %vm478_vm6, %v4313_v20, %v4329_v22  ;;  %v6718_v58 = vsub.s32 2, %v6090_v43 }
 0x276   : > { %v4331_v36 = vsel %vm481_vm7, %v4317_v28, %v4330_v30 }
 0x278   : > { %5263 = vmatmul.mubr.msk.f32.gmra.mrb[18].mxu1 %vm3431_vm1, %v3430_v29 }
 0x279   : > { %5284 = vmatprep.mubr.msk.f32.mxu1 %vm428_vm12, %v4324_v35 }
 0x27c   : > { %5285 = vmatmul.mubr.msk.f32.vlgmr.msra.gmra.mrb[20].mxu1 %vm428_vm12, %v4331_v36 }
 0x27e   : > { %v5407_v37 = vpop.eup %5406 }
 0x27f   : > { %v5409_v5 = vpop.eup %5408  ;;  %v3839_v9 = vmul.f32 %v5407_v37, %v6609_v61 }
 0x280   : > { %v3840_v50 = vmul.f32 %v5409_v5, %v6617_v2 }
 0x281   : > { %v3846_v18 = vrot.slane %v3839_v9, %v6396_v8  ;;  %v3871_v24 = vrot.slane %v3839_v9, %v6670_v0  ;;  %v3900_v48 = vrot.slane %v3839_v9, %v6718_v58  ;;  %v3929_v33 = vrot.slane %v3839_v9, %v6721_v38 }
 0x282   : > { %v3850_v6 = vrot.slane %v3840_v50, %v6396_v8  ;;  %v3875_v55 = vrot.slane %v3840_v50, %v6670_v0  ;;  %v3904_v26 = vrot.slane %v3840_v50, %v6718_v58  ;;  %v3933_v32 = vrot.slane %v3840_v50, %v6721_v38 }
 0x283   : > { %v3862_v59 = vmul.f32 %v6134_v42, %v3846_v18  ;;  %v3887_v61 = vmul.f32 %v6139_v54, %v3871_v24  ;;  %v3861_v2 = vmul.f32 %v6101_v49, %v3846_v18  ;;  %v3886_v51 = vmul.f32 %v6110_v1, %v3871_v24 }
 0x284   : > { %v3915_v15 = vmul.f32 %v6164_v16, %v3900_v48  ;;  %v3916_v63 = vmul.f32 %v6190_v4, %v3900_v48  ;;  %v3863_v13 = vmul.f32 %v6101_v49, %v3850_v6  ;;  %v3888_v44 = vmul.f32 %v6110_v1, %v3875_v55 }
 0x285   : > { %v3890_v39 = vadd.f32 %v3886_v51, %v3861_v2  ;;  %v3891_v12 = vadd.f32 %v3887_v61, %v3862_v59  ;;  %v3944_v7 = vmul.f32 %v6215_v56, %v3929_v33  ;;  %v3945_v17 = vmul.f32 %v6994_v47, %v3929_v33 }
 0x286   : > { %v3864_v62 = vmul.f32 %v6134_v42, %v3850_v6  ;;  %v3889_v34 = vmul.f32 %v6139_v54, %v3875_v55  ;;  %v3892_v60 = vadd.f32 %v3888_v44, %v3863_v13  ;;  %v3917_v19 = vmul.f32 %v6164_v16, %v3904_v26 }
 0x287   : > { %v3919_v11 = vadd.f32 %v3915_v15, %v3890_v39  ;;  %v3920_v46 = vadd.f32 %v3916_v63, %v3891_v12  ;;  %v3918_v25 = vmul.f32 %v6190_v4, %v3904_v26  ;;  %v3946_v45 = vmul.f32 %v6215_v56, %v3933_v32  ;;  %v4069_v4 = vld [vmem:[%s6936_s10] sm:$0xff] }
 0x288   : > { %v3893_v31 = vadd.f32 %v3889_v34, %v3864_v62  ;;  %v3921_v10 = vadd.f32 %v3917_v19, %v3892_v60  ;;  %v3947_v54 = vmul.f32 %v6994_v47, %v3933_v32  ;;  %5287 = vmatprep.subr.mxu1 %v4069_v4  ;;  %v4581_v60 = vsub.s32 4, %v6090_v43 }
 0x289   : > { %v3948_v49 = vadd.f32 %v3944_v7, %v3919_v11  ;;  %v3949_v1 = vadd.f32 %v3945_v17, %v3920_v46  ;;  %5288 = vmatpush3.msra.mxu1 %v4069_v4  ;;  %v6999_v4 = vld [vmem:[#allocation9_spill] sm:$0xff] }
 0x28a   : > { %v3922_v23 = vadd.f32 %v3918_v25, %v3893_v31  ;;  %v3950_v42 = vadd.f32 %v3946_v45, %v3921_v10  ;;  %v4639_v10 = vsub.s32 6, %v6090_v43 }
 0x28b   : > { %5274 = vmatprep.mubr.msk.f32.mxu0 %vm3952_vm4, %v3948_v49  ;;  %v4610_v49 = vsub.s32 5, %v6090_v43 }
 0x28c   : > { %5275 = vmatmul.mubr.msk.f32.vlgmr.msra.gmra.mrb[20].mxu0 %vm3952_vm4, %v3949_v1  ;;  %v3951_v16 = vadd.f32 %v3947_v54, %v3922_v23  ;;  %v6997_v23 = vld [vmem:[#allocation8_spill] sm:$0xff]  ;;  %v6998_v54 = vld [vmem:[#allocation10_spill] sm:$0xff] }
 0x28d   : > { %5277 = vmatprep.mubr.msk.f32.mxu0 %vm3952_vm4, %v3950_v42 }
 0x290   : > { %5278 = vmatmul.mubr.msk.f32.gmra.mrb[22].mxu0 %vm3952_vm4, %v3951_v16 }
 0x347   : > { %v5261_v53 = vpop.f32.mrb[16].mxu1 }
 0x348   : > { %5007 = vst.msk [vmem:[%s6508_s15 + $0x88] sm:$0xff] %vm428_vm12, %v5261_v53  ;;  %v3514_v56 = vpop.f32.mrb[17].mxu1 }
 0x349   : > { %5006 = vst.msk [vmem:[%s6508_s15 + $0x80] sm:$0xff] %vm428_vm12, %v3514_v56  ;;  %v7000_v56 = vld [vmem:[#allocation11_spill] sm:$0xff] }
 0x34b   : > { %v5264_v40 = vpop.f32.mrb[18].mxu1 }
 0x34c   : > { %5009 = vst.msk [vmem:[%s6508_s15 + $0x98] sm:$0xff] %vm428_vm12, %v5264_v40  ;;  %v3524_v27 = vpop.f32.mrb[19].mxu1 }
 0x34d   : > { %5008 = vst.msk [vmem:[%s6508_s15 + $0x90] sm:$0xff] %vm428_vm12, %v3524_v27 }
 0x34f   : > { %v5286_v52 = vpop.f32.mrb[20].mxu1 }
 0x350   : > { %v4430_v3 = vadd.f32 %v5286_v52, %v6995_v14  ;;  %v4402_v57 = vpop.f32.mrb[21].mxu1  ;;  %v4668_v52 = vsub.s32 7, %v6090_v43  ;;  %v7004_v43 = vld [vmem:[#allocation15_spill] sm:$0xff] }
 0x351   : > { %v4429_v20 = vadd.f32 %v6996_v41, %v4402_v57  ;;  %v7001_v57 = vld [vmem:[#allocation12_spill] sm:$0xff] }
 0x352   : > { %v4434_v21 = vand.u32 2147483647, %v4430_v3  ;;  %v4432_v32 = vmax.f32 %v4430_v3, 0.0 }
 0x353   : > { %v4433_v22 = vand.u32 2147483647, %v4429_v20  ;;  %v4431_v44 = vmax.f32 %v4429_v20, 0.0 }
 0x354   : > { %v4436_v29 = vsub.f32 0.0, %v4434_v21  ;;  %v7002_v21 = vld [vmem:[#allocation13_spill] sm:$0xff] }
 0x355   : > { %v4435_v28 = vsub.f32 0.0, %v4433_v22 }
 0x356   : > { %v4439_v35 = vmul.f32 1.442695, %v4436_v29 }
 0x357   : > { %v4437_v30 = vmul.f32 1.442695, %v4435_v28 }
 0x358   : > { %5410 = vpow2.f32 %v4439_v35 }
 0x359   : > { %5412 = vpow2.f32 %v4437_v30  ;;  %v7003_v30 = vld [vmem:[#allocation14_spill] sm:$0xff] }
 0x35f   : > { %v5276_v36 = vpop.f32.mrb[20].mxu0 }
 0x360   : > { %5051 = vst.msk [vmem:[%s6508_s15 + $0xa8] sm:$0xff] %vm428_vm12, %v5276_v36  ;;  %v4035_v37 = vpop.f32.mrb[21].mxu0 }
 0x361   : > { %5050 = vst.msk [vmem:[%s6508_s15 + $0xa0] sm:$0xff] %vm428_vm12, %v4035_v37 }
 0x362   : > { %v5411_v5 = vpop.eup %5410 }
 0x363   : > { %v5413_v9 = vpop.eup %5412  ;;  %v4450_v50 = vadd.f32 1.0, %v5411_v5  ;;  %v5279_v18 = vpop.f32.mrb[22].mxu0  ;;  %v4453_v33 = vmul.f32 -0.5, %v5411_v5  ;;  %v4456_v26 = vand.u32 2147483647, %v5411_v5 }
 0x364   : > { %v4441_v24 = vadd.f32 1.0, %v5413_v9  ;;  %5053 = vst.msk [vmem:[%s6508_s15 + $0xb8] sm:$0xff] %vm428_vm12, %v5279_v18  ;;  %v4045_v48 = vpop.f32.mrb[23].mxu0  ;;  %v4444_v6 = vmul.f32 -0.5, %v5413_v9  ;;  %v4447_v61 = vand.u32 2147483647, %v5413_v9 }
 0x365   : > { %5414 = vlog2.f32 %v4450_v50  ;;  %5052 = vst.msk [vmem:[%s6508_s15 + $0xb0] sm:$0xff] %vm428_vm12, %v4045_v48  ;;  %v4454_v55 = vadd.f32 1.0, %v4453_v33  ;;  %vm4457_vm5 = vcmp.lt.f32.partialorder %v4456_v26, 0.0004427343  ;;  %v7006_v33 = vld [vmem:[#allocation17_spill] sm:$0xff] }
 0x366   : > { %5416 = vlog2.f32 %v4441_v24  ;;  %v4445_v59 = vadd.f32 1.0, %v4444_v6  ;;  %vm4448_vm6 = vcmp.lt.f32.partialorder %v4447_v61, 0.0004427343 }
 0x367   : > { %v4455_v63 = vmul.f32 %v5411_v5, %v4454_v55  ;;  %v7007_v55 = vld [vmem:[#allocation18_spill] sm:$0xff] }
 0x368   : > { %v4446_v12 = vmul.f32 %v5413_v9, %v4445_v59 }
 0x36f   : > { %v5415_v2 = vpop.eup %5414 }
 0x370   : > { %v5417_v51 = vpop.eup %5416  ;;  %v4452_v15 = vmul.f32 0.6931472, %v5415_v2 }
 0x371   : > { %v4443_v39 = vmul.f32 0.6931472, %v5417_v51 }
 0x372   : > { %v4458_v13 = vsel %vm4457_vm5, %v4455_v63, %v4452_v15  ;;  %v7008_v15 = vld [vmem:[#allocation19_spill] sm:$0xff] }
 0x373   : > { %v4460_v7 = vadd.f32 %v4458_v13, %v4432_v32  ;;  %v4449_v47 = vsel %vm4448_vm6, %v4446_v12, %v4443_v39  ;;  %v7009_v32 = vld [vmem:[#allocation20_spill] sm:$0xff] }
 0x374   : > { %v4459_v17 = vadd.f32 %v4449_v47, %v4431_v44 }
 0x375   : > { %5418 = vtanh.f32 %v4460_v7 }
 0x376   : > { %5420 = vtanh.f32 %v4459_v17 }
 0x37f   : > { %v5419_v62 = vpop.eup %5418 }
 0x380   : > { %v5421_v34 = vpop.eup %5420  ;;  %v4464_v11 = vmul.f32 %v5419_v62, %v4430_v3  ;;  %v7010_v62 = vld [vmem:[#allocation21_spill] sm:$0xff] }
 0x381   : > { %v4463_v46 = vmul.f32 %v5421_v34, %v4429_v20 }
 0x382   : > { %v4474_v45 = vrot.slane %v4464_v11, %v6396_v8  ;;  %v4499_v14 = vrot.slane %v4464_v11, %v6670_v0  ;;  %v4528_v29 = vrot.slane %v4464_v11, %v6718_v58  ;;  %v4557_v28 = vrot.slane %v4464_v11, %v6721_v38 }
 0x383   : > { %v4470_v19 = vrot.slane %v4463_v46, %v6396_v8  ;;  %v4495_v31 = vrot.slane %v4463_v46, %v6670_v0  ;;  %v4524_v25 = vrot.slane %v4463_v46, %v6718_v58  ;;  %v4553_v1 = vrot.slane %v4463_v46, %v6721_v38  ;;  %v7005_v0 = vld [vmem:[#allocation16_spill] sm:$0xff] }
 0x384   : > { %v4582_v27 = vrot.slane %v4463_v46, %v4581_v60  ;;  %v4611_v20 = vrot.slane %v4463_v46, %v4610_v49  ;;  %v4640_v8 = vrot.slane %v4463_v46, %v4639_v10  ;;  %v4487_v5 = vmul.f32 %v6997_v23, %v4474_v45 }
 0x385   : > { %v4485_v42 = vmul.f32 %v6997_v23, %v4470_v19  ;;  %v4486_v16 = vmul.f32 %v6998_v54, %v4470_v19  ;;  %v4510_v53 = vmul.f32 %v6999_v4, %v4495_v31  ;;  %v4511_v40 = vmul.f32 %v7000_v56, %v4495_v31  ;;  %v7011_v23 = vld [vmem:[#allocation22_spill] sm:$0xff] }
 0x386   : > { %v4539_v41 = vmul.f32 %v7001_v57, %v4524_v25  ;;  %v4540_v22 = vmul.f32 %v7002_v21, %v4524_v25  ;;  %v4568_v36 = vmul.f32 %v7003_v30, %v4553_v1  ;;  %v4569_v9 = vmul.f32 %v7004_v43, %v4553_v1 }
 0x387   : > { %v4514_v3 = vadd.f32 %v4510_v53, %v4485_v42  ;;  %v4515_v37 = vadd.f32 %v4511_v40, %v4486_v16  ;;  %v4597_v50 = vmul.f32 %v7005_v0, %v4582_v27  ;;  %v4669_v18 = vrot.slane %v4463_v46, %v4668_v52  ;;  %v7012_v40 = vld [vmem:[#allocation24_spill] sm:$0xff] }
 0x388   : > { %v4512_v24 = vmul.f32 %v6999_v4, %v4499_v14  ;;  %v4598_v6 = vmul.f32 %v7006_v33, %v4582_v27  ;;  %v4626_v58 = vmul.f32 %v7007_v55, %v4611_v20  ;;  %v4541_v59 = vmul.f32 %v7001_v57, %v4528_v29 }
 0x389   : > { %v4543_v35 = vadd.f32 %v4539_v41, %v4514_v3  ;;  %v4544_v26 = vadd.f32 %v4540_v22, %v4515_v37  ;;  %v4586_v61 = vrot.slane %v4464_v11, %v4581_v60  ;;  %v4488_v2 = vmul.f32 %v6998_v54, %v4474_v45 }
 0x38a   : > { %v4516_v38 = vadd.f32 %v4512_v24, %v4487_v5  ;;  %v4627_v63 = vmul.f32 %v7008_v15, %v4611_v20  ;;  %v4655_v39 = vmul.f32 %v7009_v32, %v4640_v8  ;;  %v4570_v44 = vmul.f32 %v7003_v30, %v4557_v28  ;;  %v412_v5 = vld [vmem:[%s5625_s29] sm:$0xff]  ;;  %v418_v24 = vld [vmem:[%s5625_s29 + $0x30] sm:$0xff] }
 0x38b   : > { %v4572_v48 = vadd.f32 %v4568_v36, %v4543_v35  ;;  %v4573_v12 = vadd.f32 %v4569_v9, %v4544_v26  ;;  %v4615_v7 = vrot.slane %v4464_v11, %v4610_v49  ;;  %v4513_v47 = vmul.f32 %v7000_v56, %v4499_v14  ;;  %v414_v9 = vld [vmem:[%s5625_s29 + $0x10] sm:$0xff]  ;;  %429 = vst.msk [vmem:[%s6508_s15] sm:$0xff] %vm428_vm12, %v412_v5  ;;  %v424_v26 = vld [vmem:[%s5625_s29 + $0x60] sm:$0xff] }
 0x38c   : > { %v4545_v13 = vadd.f32 %v4541_v59, %v4516_v38  ;;  %v4656_v34 = vmul.f32 %v7010_v62, %v4640_v8  ;;  %v4644_v19 = vrot.slane %v4464_v11, %v4639_v10  ;;  %v4599_v31 = vmul.f32 %v7005_v0, %v4586_v61  ;;  %v415_v0 = vld [vmem:[%s5625_s29 + $0x18] sm:$0xff]  ;;  %431 = vst.msk [vmem:[%s6508_s15 + $0x10] sm:$0xff] %vm428_vm12, %v414_v9  ;;  %v425_v38 = vld [vmem:[%s5625_s29 + $0x68] sm:$0xff]  ;;  %v426_v59 = vld [vmem:[%s5625_s29 + $0x70] sm:$0xff] }
 0x38d   : > { %v4601_v51 = vadd.f32 %v4597_v50, %v4572_v48  ;;  %v4602_v46 = vadd.f32 %v4598_v6, %v4573_v12  ;;  %v4517_v25 = vadd.f32 %v4513_v47, %v4488_v2  ;;  %v4542_v1 = vmul.f32 %v7002_v21, %v4528_v29  ;;  %v416_v50 = vld [vmem:[%s5625_s29 + $0x20] sm:$0xff]  ;;  %v419_v48 = vld [vmem:[%s5625_s29 + $0x38] sm:$0xff]  ;;  %432 = vst.msk [vmem:[%s6508_s15 + $0x18] sm:$0xff] %vm428_vm12, %v415_v0  ;;  %v421_v6 = vld [vmem:[%s5625_s29 + $0x48] sm:$0xff] }
 0x38e   : > { %v4574_v60 = vadd.f32 %v4570_v44, %v4545_v13  ;;  %v4684_v42 = vmul.f32 %v7011_v23, %v4669_v18  ;;  %v4673_v16 = vrot.slane %v4464_v11, %v4668_v52  ;;  %v4628_v49 = vmul.f32 %v7007_v55, %v4615_v7  ;;  %433 = vst.msk [vmem:[%s6508_s15 + $0x20] sm:$0xff] %vm428_vm12, %v416_v50  ;;  %v422_v55 = vld [vmem:[%s5625_s29 + $0x50] sm:$0xff] }
 0x38f   : > { %v4630_v17 = vadd.f32 %v4626_v58, %v4601_v51  ;;  %v4631_v54 = vadd.f32 %v4627_v63, %v4602_v46  ;;  %v4546_v53 = vadd.f32 %v4542_v1, %v4517_v25  ;;  %v4571_v56 = vmul.f32 %v7004_v43, %v4557_v28  ;;  %v413_v43 = vld [vmem:[%s5625_s29 + $0x8] sm:$0xff]  ;;  %v423_v58 = vld [vmem:[%s5625_s29 + $0x58] sm:$0xff]  ;;  %435 = vst.msk [vmem:[%s6508_s15 + $0x30] sm:$0xff] %vm428_vm12, %v418_v24 }
 0x390   : > { %v4603_v4 = vadd.f32 %v4599_v31, %v4574_v60  ;;  %v4685_v27 = vmul.f32 %v7012_v40, %v4669_v18  ;;  %v4657_v57 = vmul.f32 %v7009_v32, %v4644_v19  ;;  %v4600_v20 = vmul.f32 %v7006_v33, %v4586_v61  ;;  %v417_v18 = vld [vmem:[%s5625_s29 + $0x28] sm:$0xff]  ;;  %430 = vst.msk [vmem:[%s6508_s15 + $0x8] sm:$0xff] %vm428_vm12, %v413_v43  ;;  %v420_v33 = vld [vmem:[%s5625_s29 + $0x40] sm:$0xff]  ;;  %v427_v61 = vld [vmem:[%s5625_s29 + $0x78] sm:$0xff] }
 0x391   : > { %v4659_v45 = vadd.f32 %v4655_v39, %v4630_v17  ;;  %v4660_v14 = vadd.f32 %v4656_v34, %v4631_v54  ;;  %v4575_v41 = vadd.f32 %v4571_v56, %v4546_v53  ;;  %v4686_v21 = vmul.f32 %v7011_v23, %v4673_v16  ;;  %434 = vst.msk [vmem:[%s6508_s15 + $0x28] sm:$0xff] %vm428_vm12, %v417_v18 }
 0x392   : > { %v4632_v3 = vadd.f32 %v4628_v49, %v4603_v4  ;;  %v4629_v8 = vmul.f32 %v7008_v15, %v4615_v7  ;;  %v4658_v35 = vmul.f32 %v7010_v62, %v4644_v19  ;;  %v4687_v36 = vmul.f32 %v7012_v40, %v4673_v16  ;;  %436 = vst.msk [vmem:[%s6508_s15 + $0x38] sm:$0xff] %vm428_vm12, %v419_v48 }
 0x393   : > { %v4688_v10 = vadd.f32 %v4684_v42, %v4659_v45  ;;  %v4689_v11 = vadd.f32 %v4685_v27, %v4660_v14  ;;  %v4604_v22 = vadd.f32 %v4600_v20, %v4575_v41  ;;  %437 = vst.msk [vmem:[%s6508_s15 + $0x40] sm:$0xff] %vm428_vm12, %v420_v33  ;;  %438 = vst.msk [vmem:[%s6508_s15 + $0x48] sm:$0xff] %vm428_vm12, %v421_v6 }
 0x394   : > { %v4661_v52 = vadd.f32 %v4657_v57, %v4632_v3  ;;  %439 = vst.msk [vmem:[%s6508_s15 + $0x50] sm:$0xff] %vm428_vm12, %v422_v55  ;;  %440 = vst.msk [vmem:[%s6508_s15 + $0x58] sm:$0xff] %vm428_vm12, %v423_v58 }
 0x395   : > { %5289 = vmatprep.mubr.msk.f32.mxu1 %vm484_vm8, %v4688_v10  ;;  %v4633_v28 = vadd.f32 %v4629_v8, %v4604_v22  ;;  %441 = vst.msk [vmem:[%s6508_s15 + $0x60] sm:$0xff] %vm428_vm12, %v424_v26  ;;  %442 = vst.msk [vmem:[%s6508_s15 + $0x68] sm:$0xff] %vm428_vm12, %v425_v38 }
 0x396   : > { %5290 = vmatmul.mubr.msk.f32.vlgmr.msra.gmra.mrb[22].mxu1 %vm484_vm8, %v4689_v11  ;;  %v4690_v29 = vadd.f32 %v4686_v21, %v4661_v52  ;;  %443 = vst.msk [vmem:[%s6508_s15 + $0x70] sm:$0xff] %vm428_vm12, %v426_v59  ;;  %444 = vst.msk [vmem:[%s6508_s15 + $0x78] sm:$0xff] %vm428_vm12, %v427_v61 }
 0x397   : > { %v4662_v30 = vadd.f32 %v4658_v35, %v4633_v28 }
 0x398   : > { %5292 = vmatprep.mubr.msk.f32.mxu1 %vm484_vm8, %v4690_v29 }
 0x399   : > { %v4691_v37 = vadd.f32 %v4687_v36, %v4662_v30 }
 0x39b   : > { %5293 = vmatmul.mubr.msk.f32.gmra.mrb[24].mxu1 %vm484_vm8, %v4691_v37 }
 0x469   : > { %v5291_v2 = vpop.f32.mrb[22].mxu1 }
 0x46a   : > { %5095 = vst.msk [vmem:[%s6508_s15 + $0xc8] sm:$0xff] %vm428_vm12, %v5291_v2  ;;  %v4770_v51 = vpop.f32.mrb[23].mxu1 }
 0x46b   : > { %5094 = vst.msk [vmem:[%s6508_s15 + $0xc0] sm:$0xff] %vm428_vm12, %v4770_v51 }
 0x46e   : > { %v5294_v15 = vpop.f32.mrb[24].mxu1 }
 0x46f   : > { %5097 = vst.msk [vmem:[%s6508_s15 + $0xd8] sm:$0xff] %vm428_vm12, %v5294_v15  ;;  %v4780_v63 = vpop.f32.mrb[25].mxu1 }
 0x470   : > { %5096 = vst.msk [vmem:[%s6508_s15 + $0xd0] sm:$0xff] %vm428_vm12, %v4780_v63 }
 0x471   : > { %5435 = shalt.err (!%p5432_p3)
}
 0x472   : > { %s5436_s15 = scalar_lea.hbm %s6875_s19, 4096  ;;  %s5440_s20 = scalar_lea.hbm %s6938_s12, 8192 }
 0x473   : > { %p5437_p4 = scmp.ne.s32.totalorder %s6875_s19, %s5436_s15  ;;  %p5441_p9 = scmp.lt.u32.totalorder %s6875_s19, %s6938_s12 }
 0x474   : > { %p5442_p10 = scmp.lt.u32.totalorder %s5440_s20, %s5436_s15  ;;  %p5444_p12 = scmp.lt.u32.totalorder %s5436_s15, %s6875_s19 }
 0x475   : > { %p5438_p7 = pnand %p5437_p4, %p5598_p5 }
 0x476   : > { %p5443_p11 = por %p5442_p10, %p5441_p9 }
 0x477   : > { %p5439_p8 = pneg %p5438_p7 }
 0x478   : > { %p5445_p13 = por %p5444_p12, %p5443_p11 }
 0x47a   : > { %p5446_p0 = pnand %p5445_p13, %p5439_p8 }
 0x47c   : > { %5449 = shalt.err (!%p5446_p0)
}
 0x47d   : > { %s5493_s25 = smov 128   ;;  %s5494_s16 = smov 8  }
 0x47e   : > { %5305 = dma.vmem_to_hbm [thread:$0]  (%p5598_p5), %s6877_s17, 4096, %s6875_s19, %s6885_s28, %s5493_s25, %s5493_s25, %s5494_s16  }
 0x47f PF: > { %p5311_p1 = scmp.ge.s32.totalorder %s5484_s24, 2  ;;  %s4926_s29 = sand.u32 1, %s5472_s21  }
 0x480   : > { %s4927_s15 = scalar_lea.sflag [#allocation4], %s4926_s29 }
 0x481   : > { %p5308_p2 = pnand %p5311_p1, %p5602_p6 }
 0x483   : > { %5467 = dma.done.wait (!%p5308_p2), %s4927_s15, 4096  }
 0x484   : > { %5469 = vsyncadd (!%p5308_p2), %s4927_s15, 4294963200  ;;  %p22_p3 = scmp.ge.s32.totalorder %s5585_s27, 4   ;;  %s7014_s21 = smov %s5476_s22 }
 0x485   : > { %s7015_s22 = smov %s5480_s23  ;;  %s7016_s23 = smov %s5596_s30 }
 0x486   : > { %s7017_s24 = smov %s5585_s27  ;;  %24 = sbr.rel (!%p22_p3) target bundleno = 5 (0x5), region = 124 }
 0x48d   :  { %4932 = vsyncpa [#allocation4], 1 }
 0x48e   :  { %4934 = vsyncpa [#allocation4 + $0x1], 1 }

</bundles_post_ra>
